<compile_context>
chip_gen: v7x
topology: tpu7x:2x2x1
jax: 0.10.0
libtpu: 0.0.40
codegen_flags: <defaults>
</compile_context>

<pallas_src>
import functools

import jax
import jax.numpy as jnp
from jax import lax
from jax.experimental import pallas as pl
from jax.experimental.pallas import tpu as pltpu


# MXU operand dtype: bf16 inputs, f32 accumulation. Set to jnp.float32 to recover
# near-bit parity with the f32 PyTorch reference.
_MXU_DTYPE = jnp.bfloat16


# ---------------------------------------------------------------------------
# In-kernel helpers (traced inside the Pallas kernel body)
# ---------------------------------------------------------------------------

def _mm(a, b):
    """2-D MXU matmul, bf16 operands / f32 accumulation."""
    return jnp.dot(a.astype(_MXU_DTYPE), b.astype(_MXU_DTYPE),
                   preferred_element_type=jnp.float32)


def _bmm(spec, a, b):
    """Single-batch-dim einsum on the MXU, bf16 operands / f32 accumulation."""
    return jnp.einsum(spec, a.astype(_MXU_DTYPE), b.astype(_MXU_DTYPE),
                      preferred_element_type=jnp.float32)


def _leaky(x, slope=0.2):
    return jnp.where(x >= 0, x, slope * x)


def _softmax_last(s):
    s = s - jnp.max(s, axis=-1, keepdims=True)
    e = jnp.exp(s)
    return e / jnp.sum(e, axis=-1, keepdims=True)


def _batchnorm_rows(y2d):
    """Training-mode BatchNorm1d over the rows of a (B*N, F) slab (gamma=1, beta=0, eps=1e-5)."""
    rows = y2d.shape[0]
    mean = jnp.sum(y2d, axis=0, keepdims=True) / rows
    d = y2d - mean
    var = jnp.sum(d * d, axis=0, keepdims=True) / rows
    return d * lax.rsqrt(var + 1e-5)


# ---------------------------------------------------------------------------
# Fully fused forward kernel
# ---------------------------------------------------------------------------

def _fused_forward_kernel(
        # inputs
        t_ref, nodes_ref,
        ext_wqk_ref, fc_w_ref, fc_b_ref,
        gcn0_w_ref, gcn0_b_ref, gcn1_w_ref, gcn1_b_ref,
        gcn2a_w_ref, gcn2a_b_ref, gcn2b_w_ref, gcn2b_b_ref,
        sc_w_ref, sc_b_ref, cls_ref, pool_wqk_ref,
        fcn1_w_ref, fcn1_b_ref, fcn2_w_ref, fcn2_b_ref, fcn3_w_ref, fcn3_b_ref,
        # outputs
        logits_ref, sig_sc_ref, cor_ref, m_ref, edge_ref,
        # scratch
        xin_ref,
        *, num_head, embed_dim, pool_head_dim, topk_l):
    B, N, TS = t_ref.shape
    H, E = num_head, embed_dim
    HE = H * E
    R = B * N

    # ---- extract Encoder: multi-head self-attention (attention maps never leave vregs) ----
    t3 = t_ref[...]                                            # (B, N, TS) f32
    t2d = t3.reshape(R, TS)
    qk2d = _mm(t2d, ext_wqk_ref[...])                          # (B*N, 2*H*E), fused Q||K proj
    scale = 1.0 / float(E) ** 0.5
    attn = jnp.zeros((B, N, N), jnp.float32)
    for h in range(H):                                         # static unroll (H = 4)
        qh = qk2d[:, h * E:(h + 1) * E].reshape(B, N, E)
        kh = qk2d[:, HE + h * E:HE + (h + 1) * E].reshape(B, N, E)
        s = _bmm('bne,bme->bnm', qh, kh) * scale
        attn = attn + _softmax_last(s)
    m_enc = _bmm('bnm,bmd->bnd', attn * (1.0 / H), t3)         # (B, N, TS)

    # ---- fc (Linear + Sigmoid) fused with Embed2GraphByProduct: m = sigmoid(e e^T) --------
    e2d = jax.nn.sigmoid(_mm(m_enc.reshape(R, TS), fc_w_ref[...]) + fc_b_ref[...])   # (R, 8)
    e3 = e2d.reshape(B, N, 8)
    mm3 = jax.nn.sigmoid(_bmm('bjk,bpk->bjp', e3, e3))          # (B, N, N)
    m_ref[...] = mm3

    # ---- edge_variance = mean_b( unbiased var over the N*N entries of m[b] ) --------------
    mu = jnp.sum(jnp.sum(mm3, axis=2, keepdims=True), axis=1, keepdims=True) / (N * N)
    dm = mm3 - mu
    var_b = jnp.sum(jnp.sum(dm * dm, axis=2, keepdims=True),
                    axis=1, keepdims=True) / (N * N - 1)        # (B, 1, 1)
    edge_ref[...] = (jnp.sum(var_b, axis=0, keepdims=True) / B)[0]   # (1, 1)

    # ---- GCNPredictor: 3 GCN layers, fully in a flat (B*N, F) layout -----------------------
    # einsum('ijk,ijp->ijp', m, x) == rowsum(m) * x ; rowsum(m) is layer-invariant.
    rs = jnp.sum(mm3, axis=-1, keepdims=True).reshape(R, 1)     # (R, 1)
    x = nodes_ref[...].reshape(R, N)                            # (R, N)
    x = _batchnorm_rows(_leaky(_mm(rs * x, gcn0_w_ref[...]) + gcn0_b_ref[...]))      # +0 residual
    xc = x
    x = _batchnorm_rows(_leaky(_mm(rs * x, gcn1_w_ref[...]) + gcn1_b_ref[...]) + xc)
    xc = x
    h2 = _leaky(_mm(rs * x, gcn2a_w_ref[...]) + gcn2a_b_ref[...])                    # (R, 64)
    h2 = _leaky(_mm(h2, gcn2b_w_ref[...]) + gcn2b_b_ref[...])                        # (R, 16)
    scp = _leaky(_mm(xc, sc_w_ref[...]) + sc_b_ref[...])                             # (R, 16)
    x = _batchnorm_rows(h2 + scp)                               # (R, 16)

    feat = x.shape[-1]
    x3 = x.reshape(B, N, feat)

    # ---- cls-token concat (tiny VMEM scratch; kept over jnp.concatenate for lowering safety)
    xin_ref[:, pl.ds(0, 1), :] = jnp.broadcast_to(cls_ref[...], (B, 1, feat))
    xin_ref[:, pl.ds(1, N), :] = x3
    x_in = xin_ref[...]                                         # (B, N+1, 16)

    # ---- pool Encoder: per-head attention; cor_matrix stored once per head -----------------
    N1 = N + 1
    Ep = pool_head_dim
    HEp = H * Ep
    qkp = _mm(x_in.reshape(B * N1, feat), pool_wqk_ref[...])    # (B*(N+1), 2*H*Ep)
    scale_p = 1.0 / float(Ep) ** 0.5
    acc_p = jnp.zeros((B, N1, N1), jnp.float32)
    score = jnp.zeros((B, N), jnp.float32)
    for h in range(H):
        qh = qkp[:, h * Ep:(h + 1) * Ep].reshape(B, N1, Ep)
        kh = qkp[:, HEp + h * Ep:HEp + (h + 1) * Ep].reshape(B, N1, Ep)
        p = _softmax_last(_bmm('bne,bme->bnm', qh, kh) * scale_p)    # (B, N+1, N+1)
        cor_ref[:, h, :, :] = p                                      # one store per head
        acc_p = acc_p + p
        score = score + p[:, 0, 1:]             # Σ_heads attention of cls query to the nodes
    out = _bmm('bnm,bmd->bnd', acc_p * (1.0 / H), x_in)              # (B, N+1, 16)

    sig_sc_ref[...] = jax.nn.sigmoid(score)

    # ---- top-k softmax pooling (order-free reformulation of sort + softmax + gather) -------
    # keep node i iff fewer than l nodes outrank it (ties broken by index); pooled output is
    # Σ_kept softmax(score_i) * out_i, identical to the reference sort/gather/softmax/matmul.
    ii = lax.broadcasted_iota(jnp.int32, (N, N), 0)
    jj = lax.broadcasted_iota(jnp.int32, (N, N), 1)
    s_i = score[:, :, None]                                     # (B, N, 1)
    s_j = score[:, None, :]                                     # (B, 1, N)
    outranks = (s_j > s_i) | ((s_j == s_i) & (jj < ii)[None, :, :])
    cnt = jnp.sum(outranks.astype(jnp.float32), axis=-1, keepdims=True)   # (B, N, 1)
    keep = cnt < float(topk_l)
    smax = jnp.max(score, axis=-1, keepdims=True)[:, :, None]   # (B, 1, 1); argmax is always kept
    w = jnp.where(keep, jnp.exp(s_i - smax), 0.0)               # (B, N, 1)
    denom = jnp.sum(w, axis=1, keepdims=True)                   # (B, 1, 1)
    x_body = out[:, 1:, :]                                      # (B, N, 16)
    pooled = (jnp.sum(w * x_body, axis=1, keepdims=True) / denom)[:, 0, :]   # (B, 16)

    # ---- fcn head: Linear(16,64)+Leaky -> Linear(64,32)+Leaky -> Linear(32,2) --------------
    hfc = _leaky(_mm(pooled, fcn1_w_ref[...]) + fcn1_b_ref[...])
    hfc = _leaky(_mm(hfc, fcn2_w_ref[...]) + fcn2_b_ref[...])
    logits_ref[...] = _mm(hfc, fcn3_w_ref[...]) + fcn3_b_ref[...]


# ---------------------------------------------------------------------------
# Wrapper
# ---------------------------------------------------------------------------

def graph_transformer_forward(params, t, nodes, pseudo, *, pool_ratio,
                              num_head, embedding_size, gcn_layer):
    del pseudo  # unused in the reference forward
    assert gcn_layer == 3, "fused kernel is specialized for the reference gcn_layer=3"
    B, N, _ = t.shape
    topk_l = int(N * pool_ratio)

    kernel = functools.partial(_fused_forward_kernel, num_head=num_head,
                               embed_dim=embedding_size, pool_head_dim=8, topk_l=topk_l)
    out_shape = [
        jax.ShapeDtypeStruct((B, 2), jnp.float32),                       # logits
        jax.ShapeDtypeStruct((B, N), jnp.float32),                       # sigmoid(score)
        jax.ShapeDtypeStruct((B, num_head, N + 1, N + 1), jnp.float32),  # cor_matrix
        jax.ShapeDtypeStruct((B, N, N), jnp.float32),                    # m
        jax.ShapeDtypeStruct((1, 1), jnp.float32),                       # edge_variance
    ]
    # Single grid-less invocation: BatchNorm1d statistics couple all B*N rows, and the whole
    # problem (<1 MiB activations + ~30 KiB weights) stays resident in VMEM.
    logits, sig_sc, cor_matrix, m, ev = pl.pallas_call(
        kernel,
        out_shape=out_shape,
        scratch_shapes=[pltpu.VMEM((B, N + 1, 16), jnp.float32)],
    )(
        t, nodes,
        params['ext_wqk'], params['fc_w'], params['fc_b'],
        params['gcn0_w'], params['gcn0_b'], params['gcn1_w'], params['gcn1_b'],
        params['gcn2a_w'], params['gcn2a_b'], params['gcn2b_w'], params['gcn2b_b'],
        params['sc_w'], params['sc_b'], params['cls'], params['pool_wqk'],
        params['fcn1_w'], params['fcn1_b'], params['fcn2_w'], params['fcn2_b'],
        params['fcn3_w'], params['fcn3_b'],
    )
    return (logits, sig_sc, cor_matrix), m, ev[0, 0]


# ---------------------------------------------------------------------------
# Parameters
# ---------------------------------------------------------------------------

def init_params(key, *, roi_num, time_series, embedding_size, num_head):
    keys = iter(jax.random.split(key, 16))

    def w(shape):
        return jax.random.normal(next(keys), shape, dtype=jnp.float32) / jnp.sqrt(shape[0])

    he = num_head * embedding_size
    hp = num_head * 8
    z = lambda f: jnp.zeros((1, f), jnp.float32)
    return dict(
        # extract Encoder(input_dim=time_series, num_head=4, embed_dim=embedding_size): Q||K fused
        ext_wqk=w((time_series, 2 * he)),
        # fc = Linear(time_series, 8) + Sigmoid
        fc_w=w((time_series, 8)), fc_b=z(8),
        # GCNPredictor gcn layers (gcn_layer = 3)
        gcn0_w=w((roi_num, roi_num)), gcn0_b=z(roi_num),
        gcn1_w=w((roi_num, roi_num)), gcn1_b=z(roi_num),
        gcn2a_w=w((roi_num, 64)), gcn2a_b=z(64),
        gcn2b_w=w((64, 16)), gcn2b_b=z(16),
        sc_w=w((roi_num, 16)), sc_b=z(16),
        cls=jnp.zeros((1, 1, 16), jnp.float32),
        # pool Encoder(input_dim=16, num_head=4, embed_dim=8): Q||K fused
        pool_wqk=w((16, 2 * hp)),
        # fcn head
        fcn1_w=w((16, 64)), fcn1_b=z(64),
        fcn2_w=w((64, 32)), fcn2_b=z(32),
        fcn3_w=w((32, 2)), fcn3_b=z(2),
    )


# ---------------------------------------------------------------------------
if __name__ == "__main__":
    B, ROI, TS, EMB, NUM_HEAD, GCN_LAYER, POOL_RATIO = 2, 16, 32, 8, 4, 3, 0.7

    key = jax.random.PRNGKey(0)
    k_t, k_n, k_p, k_params = jax.random.split(key, 4)
    t = jax.random.normal(k_t, (B, ROI, TS), dtype=jnp.float32)
    nodes = jax.random.normal(k_n, (B, ROI, ROI), dtype=jnp.float32)
    pseudo = jax.random.normal(k_p, (B, ROI, 4), dtype=jnp.float32)

    params = init_params(k_params, roi_num=ROI, time_series=TS,
                         embedding_size=EMB, num_head=NUM_HEAD)

    fwd = jax.jit(functools.partial(graph_transformer_forward,
                                    pool_ratio=POOL_RATIO, num_head=NUM_HEAD,
                                    embedding_size=EMB, gcn_layer=GCN_LAYER))

    (pred, m, edge_var) = fwd(params, t, nodes, pseudo)
    logits, sig_sc, cor_matrix = pred
    jax.block_until_ready((logits, sig_sc, cor_matrix, m, edge_var))

    assert logits.shape == (B, 2)
    assert sig_sc.shape == (B, ROI)
    assert cor_matrix.shape == (B, NUM_HEAD, ROI + 1, ROI + 1)
    assert m.shape == (B, ROI, ROI)
    assert edge_var.shape == ()
    print("KERNEL_OK")
</pallas_src>

<mosaic_0001>
module attributes {stable_mosaic.version = 11 : i64} {
  func.func @_fused_forward_kernel(%arg0: memref<2x16x32xf32, #tpu.memory_space<vmem>>, %arg1: memref<2x16x16xf32, #tpu.memory_space<vmem>>, %arg2: memref<32x64xf32, #tpu.memory_space<vmem>>, %arg3: memref<32x8xf32, #tpu.memory_space<vmem>>, %arg4: memref<1x8xf32, #tpu.memory_space<vmem>>, %arg5: memref<16x16xf32, #tpu.memory_space<vmem>>, %arg6: memref<1x16xf32, #tpu.memory_space<vmem>>, %arg7: memref<16x16xf32, #tpu.memory_space<vmem>>, %arg8: memref<1x16xf32, #tpu.memory_space<vmem>>, %arg9: memref<16x64xf32, #tpu.memory_space<vmem>>, %arg10: memref<1x64xf32, #tpu.memory_space<vmem>>, %arg11: memref<64x16xf32, #tpu.memory_space<vmem>>, %arg12: memref<1x16xf32, #tpu.memory_space<vmem>>, %arg13: memref<16x16xf32, #tpu.memory_space<vmem>>, %arg14: memref<1x16xf32, #tpu.memory_space<vmem>>, %arg15: memref<1x1x16xf32, #tpu.memory_space<vmem>>, %arg16: memref<16x64xf32, #tpu.memory_space<vmem>>, %arg17: memref<16x64xf32, #tpu.memory_space<vmem>>, %arg18: memref<1x64xf32, #tpu.memory_space<vmem>>, %arg19: memref<64x32xf32, #tpu.memory_space<vmem>>, %arg20: memref<1x32xf32, #tpu.memory_space<vmem>>, %arg21: memref<32x2xf32, #tpu.memory_space<vmem>>, %arg22: memref<1x2xf32, #tpu.memory_space<vmem>>, %arg23: memref<2x2xf32, #tpu.memory_space<vmem>>, %arg24: memref<2x16xf32, #tpu.memory_space<vmem>>, %arg25: memref<2x4x17x17xf32, #tpu.memory_space<vmem>>, %arg26: memref<2x16x16xf32, #tpu.memory_space<vmem>>, %arg27: memref<1x1xf32, #tpu.memory_space<vmem>>, %arg28: memref<2x17x16xf32, #tpu.memory_space<vmem>>) attributes {dimension_semantics = [], scalar_prefetch = 0 : i64, scratch_operands = 1 : i64, tpu.core_type = #tpu.core_type<tc>} {
    %c0 = arith.constant 0 : index
    %c0_0 = arith.constant 0 : index
    %c0_1 = arith.constant 0 : index
    %0 = vector.load %arg0[%c0, %c0_0, %c0_1] : memref<2x16x32xf32, #tpu.memory_space<vmem>>, vector<2x16x32xf32>
    %1 = vector.shape_cast %0 : vector<2x16x32xf32> to vector<32x32xf32>
    %c0_2 = arith.constant 0 : index
    %c0_3 = arith.constant 0 : index
    %2 = vector.load %arg2[%c0_2, %c0_3] : memref<32x64xf32, #tpu.memory_space<vmem>>, vector<32x64xf32>
    %3 = arith.truncf %1 : vector<32x32xf32> to vector<32x32xbf16>
    %4 = arith.truncf %2 : vector<32x64xf32> to vector<32x64xbf16>
    %cst = arith.constant dense<0.000000e+00> : vector<32x64xf32>
    %5 = tpu.matmul %3, %4, %cst {dimension_numbers = #tpu.dot_dimension_numbers<[1], [0], [0], [1], [0, 0, 1, 1], [], []>} : vector<32x32xbf16>, vector<32x64xbf16>, vector<32x64xf32> -> vector<32x64xf32>
    %cst_4 = arith.constant 0.000000e+00 : f32
    %6 = vector.broadcast %cst_4 : f32 to vector<2x16x16xf32>
    %7 = vector.extract_strided_slice %5 {offsets = [0, 0], sizes = [32, 8], strides = [1, 1]} : vector<32x64xf32> to vector<32x8xf32>
    %8 = vector.shape_cast %7 : vector<32x8xf32> to vector<2x16x8xf32>
    %9 = vector.extract_strided_slice %5 {offsets = [0, 32], sizes = [32, 8], strides = [1, 1]} : vector<32x64xf32> to vector<32x8xf32>
    %10 = vector.shape_cast %9 : vector<32x8xf32> to vector<2x16x8xf32>
    %11 = arith.truncf %8 : vector<2x16x8xf32> to vector<2x16x8xbf16>
    %12 = arith.truncf %10 : vector<2x16x8xf32> to vector<2x16x8xbf16>
    "tpu.trace_start"() <{level = 10 : i32, message = "bne,bme->bnm"}> : () -> ()
    %cst_5 = arith.constant dense<0.000000e+00> : vector<2x16x16xf32>
    %13 = tpu.matmul %11, %12, %cst_5 {dimension_numbers = #tpu.dot_dimension_numbers<[2], [2], [1], [1], [0, 0, 0, 1, 1, 1], [0], [0]>} : vector<2x16x8xbf16>, vector<2x16x8xbf16>, vector<2x16x16xf32> -> vector<2x16x16xf32>
    "tpu.trace_stop"() : () -> ()
    %cst_6 = arith.constant 0.353553385 : f32
    %14 = vector.broadcast %cst_6 : f32 to vector<2x16x16xf32>
    %15 = arith.mulf %13, %14 : vector<2x16x16xf32>
    %cst_7 = arith.constant dense<0xFF800000> : vector<2x16xf32>
    %16 = vector.multi_reduction <maximumf>, %15, %cst_7 [2] : vector<2x16x16xf32> to vector<2x16xf32>
    %17 = vector.shape_cast %16 : vector<2x16xf32> to vector<2x16x1xf32>
    %18 = vector.broadcast %17 : vector<2x16x1xf32> to vector<2x16x16xf32>
    %19 = arith.subf %15, %18 : vector<2x16x16xf32>
    %20 = math.exp %19 : vector<2x16x16xf32>
    %cst_8 = arith.constant dense<0.000000e+00> : vector<2x16xf32>
    %21 = vector.multi_reduction <add>, %20, %cst_8 [2] : vector<2x16x16xf32> to vector<2x16xf32>
    %22 = vector.shape_cast %21 : vector<2x16xf32> to vector<2x16x1xf32>
    %23 = vector.broadcast %22 : vector<2x16x1xf32> to vector<2x16x16xf32>
    %24 = arith.divf %20, %23 : vector<2x16x16xf32>
    %25 = arith.addf %6, %24 : vector<2x16x16xf32>
    %26 = vector.extract_strided_slice %5 {offsets = [0, 8], sizes = [32, 8], strides = [1, 1]} : vector<32x64xf32> to vector<32x8xf32>
    %27 = vector.shape_cast %26 : vector<32x8xf32> to vector<2x16x8xf32>
    %28 = vector.extract_strided_slice %5 {offsets = [0, 40], sizes = [32, 8], strides = [1, 1]} : vector<32x64xf32> to vector<32x8xf32>
    %29 = vector.shape_cast %28 : vector<32x8xf32> to vector<2x16x8xf32>
    %30 = arith.truncf %27 : vector<2x16x8xf32> to vector<2x16x8xbf16>
    %31 = arith.truncf %29 : vector<2x16x8xf32> to vector<2x16x8xbf16>
    "tpu.trace_start"() <{level = 10 : i32, message = "bne,bme->bnm"}> : () -> ()
    %cst_9 = arith.constant dense<0.000000e+00> : vector<2x16x16xf32>
    %32 = tpu.matmul %30, %31, %cst_9 {dimension_numbers = #tpu.dot_dimension_numbers<[2], [2], [1], [1], [0, 0, 0, 1, 1, 1], [0], [0]>} : vector<2x16x8xbf16>, vector<2x16x8xbf16>, vector<2x16x16xf32> -> vector<2x16x16xf32>
    "tpu.trace_stop"() : () -> ()
    %cst_10 = arith.constant 0.353553385 : f32
    %33 = vector.broadcast %cst_10 : f32 to vector<2x16x16xf32>
    %34 = arith.mulf %32, %33 : vector<2x16x16xf32>
    %cst_11 = arith.constant dense<0xFF800000> : vector<2x16xf32>
    %35 = vector.multi_reduction <maximumf>, %34, %cst_11 [2] : vector<2x16x16xf32> to vector<2x16xf32>
    %36 = vector.shape_cast %35 : vector<2x16xf32> to vector<2x16x1xf32>
    %37 = vector.broadcast %36 : vector<2x16x1xf32> to vector<2x16x16xf32>
    %38 = arith.subf %34, %37 : vector<2x16x16xf32>
    %39 = math.exp %38 : vector<2x16x16xf32>
    %cst_12 = arith.constant dense<0.000000e+00> : vector<2x16xf32>
    %40 = vector.multi_reduction <add>, %39, %cst_12 [2] : vector<2x16x16xf32> to vector<2x16xf32>
    %41 = vector.shape_cast %40 : vector<2x16xf32> to vector<2x16x1xf32>
    %42 = vector.broadcast %41 : vector<2x16x1xf32> to vector<2x16x16xf32>
    %43 = arith.divf %39, %42 : vector<2x16x16xf32>
    %44 = arith.addf %25, %43 : vector<2x16x16xf32>
    %45 = vector.extract_strided_slice %5 {offsets = [0, 16], sizes = [32, 8], strides = [1, 1]} : vector<32x64xf32> to vector<32x8xf32>
    %46 = vector.shape_cast %45 : vector<32x8xf32> to vector<2x16x8xf32>
    %47 = vector.extract_strided_slice %5 {offsets = [0, 48], sizes = [32, 8], strides = [1, 1]} : vector<32x64xf32> to vector<32x8xf32>
    %48 = vector.shape_cast %47 : vector<32x8xf32> to vector<2x16x8xf32>
    %49 = arith.truncf %46 : vector<2x16x8xf32> to vector<2x16x8xbf16>
    %50 = arith.truncf %48 : vector<2x16x8xf32> to vector<2x16x8xbf16>
    "tpu.trace_start"() <{level = 10 : i32, message = "bne,bme->bnm"}> : () -> ()
    %cst_13 = arith.constant dense<0.000000e+00> : vector<2x16x16xf32>
    %51 = tpu.matmul %49, %50, %cst_13 {dimension_numbers = #tpu.dot_dimension_numbers<[2], [2], [1], [1], [0, 0, 0, 1, 1, 1], [0], [0]>} : vector<2x16x8xbf16>, vector<2x16x8xbf16>, vector<2x16x16xf32> -> vector<2x16x16xf32>
    "tpu.trace_stop"() : () -> ()
    %cst_14 = arith.constant 0.353553385 : f32
    %52 = vector.broadcast %cst_14 : f32 to vector<2x16x16xf32>
    %53 = arith.mulf %51, %52 : vector<2x16x16xf32>
    %cst_15 = arith.constant dense<0xFF800000> : vector<2x16xf32>
    %54 = vector.multi_reduction <maximumf>, %53, %cst_15 [2] : vector<2x16x16xf32> to vector<2x16xf32>
    %55 = vector.shape_cast %54 : vector<2x16xf32> to vector<2x16x1xf32>
    %56 = vector.broadcast %55 : vector<2x16x1xf32> to vector<2x16x16xf32>
    %57 = arith.subf %53, %56 : vector<2x16x16xf32>
    %58 = math.exp %57 : vector<2x16x16xf32>
    %cst_16 = arith.constant dense<0.000000e+00> : vector<2x16xf32>
    %59 = vector.multi_reduction <add>, %58, %cst_16 [2] : vector<2x16x16xf32> to vector<2x16xf32>
    %60 = vector.shape_cast %59 : vector<2x16xf32> to vector<2x16x1xf32>
    %61 = vector.broadcast %60 : vector<2x16x1xf32> to vector<2x16x16xf32>
    %62 = arith.divf %58, %61 : vector<2x16x16xf32>
    %63 = arith.addf %44, %62 : vector<2x16x16xf32>
    %64 = vector.extract_strided_slice %5 {offsets = [0, 24], sizes = [32, 8], strides = [1, 1]} : vector<32x64xf32> to vector<32x8xf32>
    %65 = vector.shape_cast %64 : vector<32x8xf32> to vector<2x16x8xf32>
    %66 = vector.extract_strided_slice %5 {offsets = [0, 56], sizes = [32, 8], strides = [1, 1]} : vector<32x64xf32> to vector<32x8xf32>
    %67 = vector.shape_cast %66 : vector<32x8xf32> to vector<2x16x8xf32>
    %68 = arith.truncf %65 : vector<2x16x8xf32> to vector<2x16x8xbf16>
    %69 = arith.truncf %67 : vector<2x16x8xf32> to vector<2x16x8xbf16>
    "tpu.trace_start"() <{level = 10 : i32, message = "bne,bme->bnm"}> : () -> ()
    %cst_17 = arith.constant dense<0.000000e+00> : vector<2x16x16xf32>
    %70 = tpu.matmul %68, %69, %cst_17 {dimension_numbers = #tpu.dot_dimension_numbers<[2], [2], [1], [1], [0, 0, 0, 1, 1, 1], [0], [0]>} : vector<2x16x8xbf16>, vector<2x16x8xbf16>, vector<2x16x16xf32> -> vector<2x16x16xf32>
    "tpu.trace_stop"() : () -> ()
    %cst_18 = arith.constant 0.353553385 : f32
    %71 = vector.broadcast %cst_18 : f32 to vector<2x16x16xf32>
    %72 = arith.mulf %70, %71 : vector<2x16x16xf32>
    %cst_19 = arith.constant dense<0xFF800000> : vector<2x16xf32>
    %73 = vector.multi_reduction <maximumf>, %72, %cst_19 [2] : vector<2x16x16xf32> to vector<2x16xf32>
    %74 = vector.shape_cast %73 : vector<2x16xf32> to vector<2x16x1xf32>
    %75 = vector.broadcast %74 : vector<2x16x1xf32> to vector<2x16x16xf32>
    %76 = arith.subf %72, %75 : vector<2x16x16xf32>
    %77 = math.exp %76 : vector<2x16x16xf32>
    %cst_20 = arith.constant dense<0.000000e+00> : vector<2x16xf32>
    %78 = vector.multi_reduction <add>, %77, %cst_20 [2] : vector<2x16x16xf32> to vector<2x16xf32>
    %79 = vector.shape_cast %78 : vector<2x16xf32> to vector<2x16x1xf32>
    %80 = vector.broadcast %79 : vector<2x16x1xf32> to vector<2x16x16xf32>
    %81 = arith.divf %77, %80 : vector<2x16x16xf32>
    %82 = arith.addf %63, %81 : vector<2x16x16xf32>
    %cst_21 = arith.constant 2.500000e-01 : f32
    %83 = vector.broadcast %cst_21 : f32 to vector<2x16x16xf32>
    %84 = arith.mulf %82, %83 : vector<2x16x16xf32>
    %85 = arith.truncf %84 : vector<2x16x16xf32> to vector<2x16x16xbf16>
    %86 = arith.truncf %0 : vector<2x16x32xf32> to vector<2x16x32xbf16>
    "tpu.trace_start"() <{level = 10 : i32, message = "bnm,bmd->bnd"}> : () -> ()
    %cst_22 = arith.constant dense<0.000000e+00> : vector<2x16x32xf32>
    %87 = tpu.matmul %85, %86, %cst_22 {dimension_numbers = #tpu.dot_dimension_numbers<[2], [1], [1], [2], [0, 0, 0, 1, 1, 2], [0], [0]>} : vector<2x16x16xbf16>, vector<2x16x32xbf16>, vector<2x16x32xf32> -> vector<2x16x32xf32>
    "tpu.trace_stop"() : () -> ()
    %88 = vector.shape_cast %87 : vector<2x16x32xf32> to vector<32x32xf32>
    %c0_23 = arith.constant 0 : index
    %c0_24 = arith.constant 0 : index
    %89 = vector.load %arg3[%c0_23, %c0_24] : memref<32x8xf32, #tpu.memory_space<vmem>>, vector<32x8xf32>
    %90 = arith.truncf %88 : vector<32x32xf32> to vector<32x32xbf16>
    %91 = arith.truncf %89 : vector<32x8xf32> to vector<32x8xbf16>
    %cst_25 = arith.constant dense<0.000000e+00> : vector<32x8xf32>
    %92 = tpu.matmul %90, %91, %cst_25 {dimension_numbers = #tpu.dot_dimension_numbers<[1], [0], [0], [1], [0, 0, 1, 1], [], []>} : vector<32x32xbf16>, vector<32x8xbf16>, vector<32x8xf32> -> vector<32x8xf32>
    %c0_26 = arith.constant 0 : index
    %c0_27 = arith.constant 0 : index
    %93 = vector.load %arg4[%c0_26, %c0_27] : memref<1x8xf32, #tpu.memory_space<vmem>>, vector<1x8xf32>
    %94 = vector.broadcast %93 : vector<1x8xf32> to vector<32x8xf32>
    %95 = arith.addf %92, %94 : vector<32x8xf32>
    %96 = arith.negf %95 : vector<32x8xf32>
    %97 = math.exp %96 : vector<32x8xf32>
    %cst_28 = arith.constant 1.000000e+00 : f32
    %98 = vector.broadcast %cst_28 : f32 to vector<32x8xf32>
    %99 = arith.addf %98, %97 : vector<32x8xf32>
    %100 = arith.divf %98, %99 : vector<32x8xf32>
    %101 = vector.shape_cast %100 : vector<32x8xf32> to vector<2x16x8xf32>
    %102 = arith.truncf %101 : vector<2x16x8xf32> to vector<2x16x8xbf16>
    %103 = arith.truncf %101 : vector<2x16x8xf32> to vector<2x16x8xbf16>
    "tpu.trace_start"() <{level = 10 : i32, message = "bjk,bpk->bjp"}> : () -> ()
    %cst_29 = arith.constant dense<0.000000e+00> : vector<2x16x16xf32>
    %104 = tpu.matmul %102, %103, %cst_29 {dimension_numbers = #tpu.dot_dimension_numbers<[2], [2], [1], [1], [0, 0, 0, 1, 1, 1], [0], [0]>} : vector<2x16x8xbf16>, vector<2x16x8xbf16>, vector<2x16x16xf32> -> vector<2x16x16xf32>
    "tpu.trace_stop"() : () -> ()
    %105 = arith.negf %104 : vector<2x16x16xf32>
    %106 = math.exp %105 : vector<2x16x16xf32>
    %cst_30 = arith.constant 1.000000e+00 : f32
    %107 = vector.broadcast %cst_30 : f32 to vector<2x16x16xf32>
    %108 = arith.addf %107, %106 : vector<2x16x16xf32>
    %109 = arith.divf %107, %108 : vector<2x16x16xf32>
    %c0_31 = arith.constant 0 : index
    %c0_32 = arith.constant 0 : index
    %c0_33 = arith.constant 0 : index
    %110 = vector.load %arg26[%c0_31, %c0_32, %c0_33] : memref<2x16x16xf32, #tpu.memory_space<vmem>>, vector<2x16x16xf32>
    tpu.vector_store %arg26[%c0_31, %c0_32, %c0_33], %109 {strides = array<i32>} : memref<2x16x16xf32, #tpu.memory_space<vmem>>, vector<2x16x16xf32>,
    %cst_34 = arith.constant dense<0.000000e+00> : vector<2x16xf32>
    %111 = vector.multi_reduction <add>, %109, %cst_34 [2] : vector<2x16x16xf32> to vector<2x16xf32>
    %112 = vector.shape_cast %111 : vector<2x16xf32> to vector<2x16x1xf32>
    %cst_35 = arith.constant dense<0.000000e+00> : vector<2x1xf32>
    %113 = vector.multi_reduction <add>, %112, %cst_35 [1] : vector<2x16x1xf32> to vector<2x1xf32>
    %114 = vector.shape_cast %113 : vector<2x1xf32> to vector<2x1x1xf32>
    %cst_36 = arith.constant 2.560000e+02 : f32
    %115 = vector.broadcast %cst_36 : f32 to vector<2x1x1xf32>
    %116 = arith.divf %114, %115 : vector<2x1x1xf32>
    %117 = vector.broadcast %116 : vector<2x1x1xf32> to vector<2x16x16xf32>
    %118 = arith.subf %109, %117 : vector<2x16x16xf32>
    %119 = arith.mulf %118, %118 : vector<2x16x16xf32>
    %cst_37 = arith.constant dense<0.000000e+00> : vector<2x16xf32>
    %120 = vector.multi_reduction <add>, %119, %cst_37 [2] : vector<2x16x16xf32> to vector<2x16xf32>
    %121 = vector.shape_cast %120 : vector<2x16xf32> to vector<2x16x1xf32>
    %cst_38 = arith.constant dense<0.000000e+00> : vector<2x1xf32>
    %122 = vector.multi_reduction <add>, %121, %cst_38 [1] : vector<2x16x1xf32> to vector<2x1xf32>
    %123 = vector.shape_cast %122 : vector<2x1xf32> to vector<2x1x1xf32>
    %cst_39 = arith.constant 2.550000e+02 : f32
    %124 = vector.broadcast %cst_39 : f32 to vector<2x1x1xf32>
    %125 = arith.divf %123, %124 : vector<2x1x1xf32>
    %cst_40 = arith.constant dense<0.000000e+00> : vector<1x1xf32>
    %126 = vector.multi_reduction <add>, %125, %cst_40 [0] : vector<2x1x1xf32> to vector<1x1xf32>
    %127 = vector.shape_cast %126 : vector<1x1xf32> to vector<1x1x1xf32>
    %cst_41 = arith.constant 2.000000e+00 : f32
    %128 = vector.broadcast %cst_41 : f32 to vector<1x1x1xf32>
    %129 = arith.divf %127, %128 : vector<1x1x1xf32>
    %130 = vector.shape_cast %129 : vector<1x1x1xf32> to vector<1x1xf32>
    %c0_42 = arith.constant 0 : index
    %c0_43 = arith.constant 0 : index
    %131 = vector.load %arg27[%c0_42, %c0_43] : memref<1x1xf32, #tpu.memory_space<vmem>>, vector<1x1xf32>
    tpu.vector_store %arg27[%c0_42, %c0_43], %130 {strides = array<i32>} : memref<1x1xf32, #tpu.memory_space<vmem>>, vector<1x1xf32>,
    %cst_44 = arith.constant dense<0.000000e+00> : vector<2x16xf32>
    %132 = vector.multi_reduction <add>, %109, %cst_44 [2] : vector<2x16x16xf32> to vector<2x16xf32>
    %133 = vector.shape_cast %132 : vector<2x16xf32> to vector<2x16x1xf32>
    %134 = vector.shape_cast %133 : vector<2x16x1xf32> to vector<32x1xf32>
    %c0_45 = arith.constant 0 : index
    %c0_46 = arith.constant 0 : index
    %c0_47 = arith.constant 0 : index
    %135 = vector.load %arg1[%c0_45, %c0_46, %c0_47] : memref<2x16x16xf32, #tpu.memory_space<vmem>>, vector<2x16x16xf32>
    %136 = vector.shape_cast %135 : vector<2x16x16xf32> to vector<32x16xf32>
    %137 = vector.broadcast %134 : vector<32x1xf32> to vector<32x16xf32>
    %138 = arith.mulf %137, %136 : vector<32x16xf32>
    %c0_48 = arith.constant 0 : index
    %c0_49 = arith.constant 0 : index
    %139 = vector.load %arg5[%c0_48, %c0_49] : memref<16x16xf32, #tpu.memory_space<vmem>>, vector<16x16xf32>
    %140 = arith.truncf %138 : vector<32x16xf32> to vector<32x16xbf16>
    %141 = arith.truncf %139 : vector<16x16xf32> to vector<16x16xbf16>
    %cst_50 = arith.constant dense<0.000000e+00> : vector<32x16xf32>
    %142 = tpu.matmul %140, %141, %cst_50 {dimension_numbers = #tpu.dot_dimension_numbers<[1], [0], [0], [1], [0, 0, 1, 1], [], []>} : vector<32x16xbf16>, vector<16x16xbf16>, vector<32x16xf32> -> vector<32x16xf32>
    %c0_51 = arith.constant 0 : index
    %c0_52 = arith.constant 0 : index
    %143 = vector.load %arg6[%c0_51, %c0_52] : memref<1x16xf32, #tpu.memory_space<vmem>>, vector<1x16xf32>
    %144 = vector.broadcast %143 : vector<1x16xf32> to vector<32x16xf32>
    %145 = arith.addf %142, %144 : vector<32x16xf32>
    %cst_53 = arith.constant 0.000000e+00 : f32
    %146 = vector.broadcast %cst_53 : f32 to vector<32x16xf32>
    %147 = arith.cmpf oge, %145, %146 : vector<32x16xf32>
    %cst_54 = arith.constant 2.000000e-01 : f32
    %148 = vector.broadcast %cst_54 : f32 to vector<32x16xf32>
    %149 = arith.mulf %148, %145 : vector<32x16xf32>
    %150 = arith.select %147, %145, %149 : vector<32x16xi1>, vector<32x16xf32>
    %cst_55 = arith.constant dense<0.000000e+00> : vector<16xf32>
    %151 = vector.multi_reduction <add>, %150, %cst_55 [0] : vector<32x16xf32> to vector<16xf32>
    %152 = vector.shape_cast %151 : vector<16xf32> to vector<1x16xf32>
    %cst_56 = arith.constant 3.200000e+01 : f32
    %153 = vector.broadcast %cst_56 : f32 to vector<1x16xf32>
    %154 = arith.divf %152, %153 : vector<1x16xf32>
    %155 = vector.broadcast %154 : vector<1x16xf32> to vector<32x16xf32>
    %156 = arith.subf %150, %155 : vector<32x16xf32>
    %157 = arith.mulf %156, %156 : vector<32x16xf32>
    %cst_57 = arith.constant dense<0.000000e+00> : vector<16xf32>
    %158 = vector.multi_reduction <add>, %157, %cst_57 [0] : vector<32x16xf32> to vector<16xf32>
    %159 = vector.shape_cast %158 : vector<16xf32> to vector<1x16xf32>
    %cst_58 = arith.constant 3.200000e+01 : f32
    %160 = vector.broadcast %cst_58 : f32 to vector<1x16xf32>
    %161 = arith.divf %159, %160 : vector<1x16xf32>
    %cst_59 = arith.constant 9.99999974E-6 : f32
    %162 = vector.broadcast %cst_59 : f32 to vector<1x16xf32>
    %163 = arith.addf %161, %162 : vector<1x16xf32>
    %164 = math.rsqrt %163 : vector<1x16xf32>
    %165 = vector.broadcast %164 : vector<1x16xf32> to vector<32x16xf32>
    %166 = arith.mulf %156, %165 : vector<32x16xf32>
    %167 = vector.broadcast %134 : vector<32x1xf32> to vector<32x16xf32>
    %168 = arith.mulf %167, %166 : vector<32x16xf32>
    %c0_60 = arith.constant 0 : index
    %c0_61 = arith.constant 0 : index
    %169 = vector.load %arg7[%c0_60, %c0_61] : memref<16x16xf32, #tpu.memory_space<vmem>>, vector<16x16xf32>
    %170 = arith.truncf %168 : vector<32x16xf32> to vector<32x16xbf16>
    %171 = arith.truncf %169 : vector<16x16xf32> to vector<16x16xbf16>
    %cst_62 = arith.constant dense<0.000000e+00> : vector<32x16xf32>
    %172 = tpu.matmul %170, %171, %cst_62 {dimension_numbers = #tpu.dot_dimension_numbers<[1], [0], [0], [1], [0, 0, 1, 1], [], []>} : vector<32x16xbf16>, vector<16x16xbf16>, vector<32x16xf32> -> vector<32x16xf32>
    %c0_63 = arith.constant 0 : index
    %c0_64 = arith.constant 0 : index
    %173 = vector.load %arg8[%c0_63, %c0_64] : memref<1x16xf32, #tpu.memory_space<vmem>>, vector<1x16xf32>
    %174 = vector.broadcast %173 : vector<1x16xf32> to vector<32x16xf32>
    %175 = arith.addf %172, %174 : vector<32x16xf32>
    %cst_65 = arith.constant 0.000000e+00 : f32
    %176 = vector.broadcast %cst_65 : f32 to vector<32x16xf32>
    %177 = arith.cmpf oge, %175, %176 : vector<32x16xf32>
    %cst_66 = arith.constant 2.000000e-01 : f32
    %178 = vector.broadcast %cst_66 : f32 to vector<32x16xf32>
    %179 = arith.mulf %178, %175 : vector<32x16xf32>
    %180 = arith.select %177, %175, %179 : vector<32x16xi1>, vector<32x16xf32>
    %181 = arith.addf %180, %166 : vector<32x16xf32>
    %cst_67 = arith.constant dense<0.000000e+00> : vector<16xf32>
    %182 = vector.multi_reduction <add>, %181, %cst_67 [0] : vector<32x16xf32> to vector<16xf32>
    %183 = vector.shape_cast %182 : vector<16xf32> to vector<1x16xf32>
    %cst_68 = arith.constant 3.200000e+01 : f32
    %184 = vector.broadcast %cst_68 : f32 to vector<1x16xf32>
    %185 = arith.divf %183, %184 : vector<1x16xf32>
    %186 = vector.broadcast %185 : vector<1x16xf32> to vector<32x16xf32>
    %187 = arith.subf %181, %186 : vector<32x16xf32>
    %188 = arith.mulf %187, %187 : vector<32x16xf32>
    %cst_69 = arith.constant dense<0.000000e+00> : vector<16xf32>
    %189 = vector.multi_reduction <add>, %188, %cst_69 [0] : vector<32x16xf32> to vector<16xf32>
    %190 = vector.shape_cast %189 : vector<16xf32> to vector<1x16xf32>
    %cst_70 = arith.constant 3.200000e+01 : f32
    %191 = vector.broadcast %cst_70 : f32 to vector<1x16xf32>
    %192 = arith.divf %190, %191 : vector<1x16xf32>
    %cst_71 = arith.constant 9.99999974E-6 : f32
    %193 = vector.broadcast %cst_71 : f32 to vector<1x16xf32>
    %194 = arith.addf %192, %193 : vector<1x16xf32>
    %195 = math.rsqrt %194 : vector<1x16xf32>
    %196 = vector.broadcast %195 : vector<1x16xf32> to vector<32x16xf32>
    %197 = arith.mulf %187, %196 : vector<32x16xf32>
    %198 = vector.broadcast %134 : vector<32x1xf32> to vector<32x16xf32>
    %199 = arith.mulf %198, %197 : vector<32x16xf32>
    %c0_72 = arith.constant 0 : index
    %c0_73 = arith.constant 0 : index
    %200 = vector.load %arg9[%c0_72, %c0_73] : memref<16x64xf32, #tpu.memory_space<vmem>>, vector<16x64xf32>
    %201 = arith.truncf %199 : vector<32x16xf32> to vector<32x16xbf16>
    %202 = arith.truncf %200 : vector<16x64xf32> to vector<16x64xbf16>
    %cst_74 = arith.constant dense<0.000000e+00> : vector<32x64xf32>
    %203 = tpu.matmul %201, %202, %cst_74 {dimension_numbers = #tpu.dot_dimension_numbers<[1], [0], [0], [1], [0, 0, 1, 1], [], []>} : vector<32x16xbf16>, vector<16x64xbf16>, vector<32x64xf32> -> vector<32x64xf32>
    %c0_75 = arith.constant 0 : index
    %c0_76 = arith.constant 0 : index
    %204 = vector.load %arg10[%c0_75, %c0_76] : memref<1x64xf32, #tpu.memory_space<vmem>>, vector<1x64xf32>
    %205 = vector.broadcast %204 : vector<1x64xf32> to vector<32x64xf32>
    %206 = arith.addf %203, %205 : vector<32x64xf32>
    %cst_77 = arith.constant 0.000000e+00 : f32
    %207 = vector.broadcast %cst_77 : f32 to vector<32x64xf32>
    %208 = arith.cmpf oge, %206, %207 : vector<32x64xf32>
    %cst_78 = arith.constant 2.000000e-01 : f32
    %209 = vector.broadcast %cst_78 : f32 to vector<32x64xf32>
    %210 = arith.mulf %209, %206 : vector<32x64xf32>
    %211 = arith.select %208, %206, %210 : vector<32x64xi1>, vector<32x64xf32>
    %c0_79 = arith.constant 0 : index
    %c0_80 = arith.constant 0 : index
    %212 = vector.load %arg11[%c0_79, %c0_80] : memref<64x16xf32, #tpu.memory_space<vmem>>, vector<64x16xf32>
    %213 = arith.truncf %211 : vector<32x64xf32> to vector<32x64xbf16>
    %214 = arith.truncf %212 : vector<64x16xf32> to vector<64x16xbf16>
    %cst_81 = arith.constant dense<0.000000e+00> : vector<32x16xf32>
    %215 = tpu.matmul %213, %214, %cst_81 {dimension_numbers = #tpu.dot_dimension_numbers<[1], [0], [0], [1], [0, 0, 1, 1], [], []>} : vector<32x64xbf16>, vector<64x16xbf16>, vector<32x16xf32> -> vector<32x16xf32>
    %c0_82 = arith.constant 0 : index
    %c0_83 = arith.constant 0 : index
    %216 = vector.load %arg12[%c0_82, %c0_83] : memref<1x16xf32, #tpu.memory_space<vmem>>, vector<1x16xf32>
    %217 = vector.broadcast %216 : vector<1x16xf32> to vector<32x16xf32>
    %218 = arith.addf %215, %217 : vector<32x16xf32>
    %cst_84 = arith.constant 0.000000e+00 : f32
    %219 = vector.broadcast %cst_84 : f32 to vector<32x16xf32>
    %220 = arith.cmpf oge, %218, %219 : vector<32x16xf32>
    %cst_85 = arith.constant 2.000000e-01 : f32
    %221 = vector.broadcast %cst_85 : f32 to vector<32x16xf32>
    %222 = arith.mulf %221, %218 : vector<32x16xf32>
    %223 = arith.select %220, %218, %222 : vector<32x16xi1>, vector<32x16xf32>
    %c0_86 = arith.constant 0 : index
    %c0_87 = arith.constant 0 : index
    %224 = vector.load %arg13[%c0_86, %c0_87] : memref<16x16xf32, #tpu.memory_space<vmem>>, vector<16x16xf32>
    %225 = arith.truncf %197 : vector<32x16xf32> to vector<32x16xbf16>
    %226 = arith.truncf %224 : vector<16x16xf32> to vector<16x16xbf16>
    %cst_88 = arith.constant dense<0.000000e+00> : vector<32x16xf32>
    %227 = tpu.matmul %225, %226, %cst_88 {dimension_numbers = #tpu.dot_dimension_numbers<[1], [0], [0], [1], [0, 0, 1, 1], [], []>} : vector<32x16xbf16>, vector<16x16xbf16>, vector<32x16xf32> -> vector<32x16xf32>
    %c0_89 = arith.constant 0 : index
    %c0_90 = arith.constant 0 : index
    %228 = vector.load %arg14[%c0_89, %c0_90] : memref<1x16xf32, #tpu.memory_space<vmem>>, vector<1x16xf32>
    %229 = vector.broadcast %228 : vector<1x16xf32> to vector<32x16xf32>
    %230 = arith.addf %227, %229 : vector<32x16xf32>
    %cst_91 = arith.constant 0.000000e+00 : f32
    %231 = vector.broadcast %cst_91 : f32 to vector<32x16xf32>
    %232 = arith.cmpf oge, %230, %231 : vector<32x16xf32>
    %cst_92 = arith.constant 2.000000e-01 : f32
    %233 = vector.broadcast %cst_92 : f32 to vector<32x16xf32>
    %234 = arith.mulf %233, %230 : vector<32x16xf32>
    %235 = arith.select %232, %230, %234 : vector<32x16xi1>, vector<32x16xf32>
    %236 = arith.addf %223, %235 : vector<32x16xf32>
    %cst_93 = arith.constant dense<0.000000e+00> : vector<16xf32>
    %237 = vector.multi_reduction <add>, %236, %cst_93 [0] : vector<32x16xf32> to vector<16xf32>
    %238 = vector.shape_cast %237 : vector<16xf32> to vector<1x16xf32>
    %cst_94 = arith.constant 3.200000e+01 : f32
    %239 = vector.broadcast %cst_94 : f32 to vector<1x16xf32>
    %240 = arith.divf %238, %239 : vector<1x16xf32>
    %241 = vector.broadcast %240 : vector<1x16xf32> to vector<32x16xf32>
    %242 = arith.subf %236, %241 : vector<32x16xf32>
    %243 = arith.mulf %242, %242 : vector<32x16xf32>
    %cst_95 = arith.constant dense<0.000000e+00> : vector<16xf32>
    %244 = vector.multi_reduction <add>, %243, %cst_95 [0] : vector<32x16xf32> to vector<16xf32>
    %245 = vector.shape_cast %244 : vector<16xf32> to vector<1x16xf32>
    %cst_96 = arith.constant 3.200000e+01 : f32
    %246 = vector.broadcast %cst_96 : f32 to vector<1x16xf32>
    %247 = arith.divf %245, %246 : vector<1x16xf32>
    %cst_97 = arith.constant 9.99999974E-6 : f32
    %248 = vector.broadcast %cst_97 : f32 to vector<1x16xf32>
    %249 = arith.addf %247, %248 : vector<1x16xf32>
    %250 = math.rsqrt %249 : vector<1x16xf32>
    %251 = vector.broadcast %250 : vector<1x16xf32> to vector<32x16xf32>
    %252 = arith.mulf %242, %251 : vector<32x16xf32>
    %253 = vector.shape_cast %252 : vector<32x16xf32> to vector<2x16x16xf32>
    %c0_98 = arith.constant 0 : index
    %c0_99 = arith.constant 0 : index
    %c0_100 = arith.constant 0 : index
    %254 = vector.load %arg15[%c0_98, %c0_99, %c0_100] : memref<1x1x16xf32, #tpu.memory_space<vmem>>, vector<1x1x16xf32>
    %255 = vector.shape_cast %254 : vector<1x1x16xf32> to vector<1x1x16xf32>
    %256 = vector.broadcast %255 : vector<1x1x16xf32> to vector<2x1x16xf32>
    %c0_101 = arith.constant 0 : index
    %c0_102 = arith.constant 0 : index
    %c0_103 = arith.constant 0 : index
    %257 = vector.load %arg28[%c0_101, %c0_102, %c0_103] : memref<2x17x16xf32, #tpu.memory_space<vmem>>, vector<2x1x16xf32>
    tpu.vector_store %arg28[%c0_101, %c0_102, %c0_103], %256 {strides = array<i32>} : memref<2x17x16xf32, #tpu.memory_space<vmem>>, vector<2x1x16xf32>,
    %c0_104 = arith.constant 0 : index
    %c1 = arith.constant 1 : index
    %c0_105 = arith.constant 0 : index
    %258 = vector.load %arg28[%c0_104, %c1, %c0_105] : memref<2x17x16xf32, #tpu.memory_space<vmem>>, vector<2x16x16xf32>
    tpu.vector_store %arg28[%c0_104, %c1, %c0_105], %253 {strides = array<i32>} : memref<2x17x16xf32, #tpu.memory_space<vmem>>, vector<2x16x16xf32>,
    %c0_106 = arith.constant 0 : index
    %c0_107 = arith.constant 0 : index
    %c0_108 = arith.constant 0 : index
    %259 = vector.load %arg28[%c0_106, %c0_107, %c0_108] : memref<2x17x16xf32, #tpu.memory_space<vmem>>, vector<2x17x16xf32>
    %260 = vector.shape_cast %259 : vector<2x17x16xf32> to vector<34x16xf32>
    %c0_109 = arith.constant 0 : index
    %c0_110 = arith.constant 0 : index
    %261 = vector.load %arg16[%c0_109, %c0_110] : memref<16x64xf32, #tpu.memory_space<vmem>>, vector<16x64xf32>
    %262 = arith.truncf %260 : vector<34x16xf32> to vector<34x16xbf16>
    %263 = arith.truncf %261 : vector<16x64xf32> to vector<16x64xbf16>
    %cst_111 = arith.constant dense<0.000000e+00> : vector<34x64xf32>
    %264 = tpu.matmul %262, %263, %cst_111 {dimension_numbers = #tpu.dot_dimension_numbers<[1], [0], [0], [1], [0, 0, 1, 1], [], []>} : vector<34x16xbf16>, vector<16x64xbf16>, vector<34x64xf32> -> vector<34x64xf32>
    %cst_112 = arith.constant 0.000000e+00 : f32
    %265 = vector.broadcast %cst_112 : f32 to vector<2x17x17xf32>
    %cst_113 = arith.constant 0.000000e+00 : f32
    %266 = vector.broadcast %cst_113 : f32 to vector<2x16xf32>
    %267 = vector.extract_strided_slice %264 {offsets = [0, 0], sizes = [34, 8], strides = [1, 1]} : vector<34x64xf32> to vector<34x8xf32>
    %268 = vector.shape_cast %267 : vector<34x8xf32> to vector<2x17x8xf32>
    %269 = vector.extract_strided_slice %264 {offsets = [0, 32], sizes = [34, 8], strides = [1, 1]} : vector<34x64xf32> to vector<34x8xf32>
    %270 = vector.shape_cast %269 : vector<34x8xf32> to vector<2x17x8xf32>
    %271 = arith.truncf %268 : vector<2x17x8xf32> to vector<2x17x8xbf16>
    %272 = arith.truncf %270 : vector<2x17x8xf32> to vector<2x17x8xbf16>
    "tpu.trace_start"() <{level = 10 : i32, message = "bne,bme->bnm"}> : () -> ()
    %cst_114 = arith.constant dense<0.000000e+00> : vector<2x17x17xf32>
    %273 = tpu.matmul %271, %272, %cst_114 {dimension_numbers = #tpu.dot_dimension_numbers<[2], [2], [1], [1], [0, 0, 0, 1, 1, 1], [0], [0]>} : vector<2x17x8xbf16>, vector<2x17x8xbf16>, vector<2x17x17xf32> -> vector<2x17x17xf32>
    "tpu.trace_stop"() : () -> ()
    %cst_115 = arith.constant 0.353553385 : f32
    %274 = vector.broadcast %cst_115 : f32 to vector<2x17x17xf32>
    %275 = arith.mulf %273, %274 : vector<2x17x17xf32>
    %cst_116 = arith.constant dense<0xFF800000> : vector<2x17xf32>
    %276 = vector.multi_reduction <maximumf>, %275, %cst_116 [2] : vector<2x17x17xf32> to vector<2x17xf32>
    %277 = vector.shape_cast %276 : vector<2x17xf32> to vector<2x17x1xf32>
    %278 = vector.broadcast %277 : vector<2x17x1xf32> to vector<2x17x17xf32>
    %279 = arith.subf %275, %278 : vector<2x17x17xf32>
    %280 = math.exp %279 : vector<2x17x17xf32>
    %cst_117 = arith.constant dense<0.000000e+00> : vector<2x17xf32>
    %281 = vector.multi_reduction <add>, %280, %cst_117 [2] : vector<2x17x17xf32> to vector<2x17xf32>
    %282 = vector.shape_cast %281 : vector<2x17xf32> to vector<2x17x1xf32>
    %283 = vector.broadcast %282 : vector<2x17x1xf32> to vector<2x17x17xf32>
    %284 = arith.divf %280, %283 : vector<2x17x17xf32>
    %c0_118 = arith.constant 0 : index
    %c0_119 = arith.constant 0 : index
    %c0_120 = arith.constant 0 : index
    %c0_121 = arith.constant 0 : index
    %285 = vector.load %arg25[%c0_118, %c0_119, %c0_120, %c0_121] : memref<2x4x17x17xf32, #tpu.memory_space<vmem>>, vector<2x1x17x17xf32>
    %286 = vector.shape_cast %285 : vector<2x1x17x17xf32> to vector<2x17x17xf32>
    %287 = vector.shape_cast %284 : vector<2x17x17xf32> to vector<2x1x17x17xf32>
    tpu.vector_store %arg25[%c0_118, %c0_119, %c0_120, %c0_121], %287 {strides = array<i32>} : memref<2x4x17x17xf32, #tpu.memory_space<vmem>>, vector<2x1x17x17xf32>,
    %288 = arith.addf %265, %284 : vector<2x17x17xf32>
    %289 = vector.extract_strided_slice %284 {offsets = [0, 0, 1], sizes = [2, 1, 16], strides = [1, 1, 1]} : vector<2x17x17xf32> to vector<2x1x16xf32>
    %290 = vector.shape_cast %289 : vector<2x1x16xf32> to vector<2x16xf32>
    %291 = arith.addf %266, %290 : vector<2x16xf32>
    %292 = vector.extract_strided_slice %264 {offsets = [0, 8], sizes = [34, 8], strides = [1, 1]} : vector<34x64xf32> to vector<34x8xf32>
    %293 = vector.shape_cast %292 : vector<34x8xf32> to vector<2x17x8xf32>
    %294 = vector.extract_strided_slice %264 {offsets = [0, 40], sizes = [34, 8], strides = [1, 1]} : vector<34x64xf32> to vector<34x8xf32>
    %295 = vector.shape_cast %294 : vector<34x8xf32> to vector<2x17x8xf32>
    %296 = arith.truncf %293 : vector<2x17x8xf32> to vector<2x17x8xbf16>
    %297 = arith.truncf %295 : vector<2x17x8xf32> to vector<2x17x8xbf16>
    "tpu.trace_start"() <{level = 10 : i32, message = "bne,bme->bnm"}> : () -> ()
    %cst_122 = arith.constant dense<0.000000e+00> : vector<2x17x17xf32>
    %298 = tpu.matmul %296, %297, %cst_122 {dimension_numbers = #tpu.dot_dimension_numbers<[2], [2], [1], [1], [0, 0, 0, 1, 1, 1], [0], [0]>} : vector<2x17x8xbf16>, vector<2x17x8xbf16>, vector<2x17x17xf32> -> vector<2x17x17xf32>
    "tpu.trace_stop"() : () -> ()
    %cst_123 = arith.constant 0.353553385 : f32
    %299 = vector.broadcast %cst_123 : f32 to vector<2x17x17xf32>
    %300 = arith.mulf %298, %299 : vector<2x17x17xf32>
    %cst_124 = arith.constant dense<0xFF800000> : vector<2x17xf32>
    %301 = vector.multi_reduction <maximumf>, %300, %cst_124 [2] : vector<2x17x17xf32> to vector<2x17xf32>
    %302 = vector.shape_cast %301 : vector<2x17xf32> to vector<2x17x1xf32>
    %303 = vector.broadcast %302 : vector<2x17x1xf32> to vector<2x17x17xf32>
    %304 = arith.subf %300, %303 : vector<2x17x17xf32>
    %305 = math.exp %304 : vector<2x17x17xf32>
    %cst_125 = arith.constant dense<0.000000e+00> : vector<2x17xf32>
    %306 = vector.multi_reduction <add>, %305, %cst_125 [2] : vector<2x17x17xf32> to vector<2x17xf32>
    %307 = vector.shape_cast %306 : vector<2x17xf32> to vector<2x17x1xf32>
    %308 = vector.broadcast %307 : vector<2x17x1xf32> to vector<2x17x17xf32>
    %309 = arith.divf %305, %308 : vector<2x17x17xf32>
    %c0_126 = arith.constant 0 : index
    %c1_127 = arith.constant 1 : index
    %c0_128 = arith.constant 0 : index
    %c0_129 = arith.constant 0 : index
    %310 = vector.load %arg25[%c0_126, %c1_127, %c0_128, %c0_129] : memref<2x4x17x17xf32, #tpu.memory_space<vmem>>, vector<2x1x17x17xf32>
    %311 = vector.shape_cast %310 : vector<2x1x17x17xf32> to vector<2x17x17xf32>
    %312 = vector.shape_cast %309 : vector<2x17x17xf32> to vector<2x1x17x17xf32>
    tpu.vector_store %arg25[%c0_126, %c1_127, %c0_128, %c0_129], %312 {strides = array<i32>} : memref<2x4x17x17xf32, #tpu.memory_space<vmem>>, vector<2x1x17x17xf32>,
    %313 = arith.addf %288, %309 : vector<2x17x17xf32>
    %314 = vector.extract_strided_slice %309 {offsets = [0, 0, 1], sizes = [2, 1, 16], strides = [1, 1, 1]} : vector<2x17x17xf32> to vector<2x1x16xf32>
    %315 = vector.shape_cast %314 : vector<2x1x16xf32> to vector<2x16xf32>
    %316 = arith.addf %291, %315 : vector<2x16xf32>
    %317 = vector.extract_strided_slice %264 {offsets = [0, 16], sizes = [34, 8], strides = [1, 1]} : vector<34x64xf32> to vector<34x8xf32>
    %318 = vector.shape_cast %317 : vector<34x8xf32> to vector<2x17x8xf32>
    %319 = vector.extract_strided_slice %264 {offsets = [0, 48], sizes = [34, 8], strides = [1, 1]} : vector<34x64xf32> to vector<34x8xf32>
    %320 = vector.shape_cast %319 : vector<34x8xf32> to vector<2x17x8xf32>
    %321 = arith.truncf %318 : vector<2x17x8xf32> to vector<2x17x8xbf16>
    %322 = arith.truncf %320 : vector<2x17x8xf32> to vector<2x17x8xbf16>
    "tpu.trace_start"() <{level = 10 : i32, message = "bne,bme->bnm"}> : () -> ()
    %cst_130 = arith.constant dense<0.000000e+00> : vector<2x17x17xf32>
    %323 = tpu.matmul %321, %322, %cst_130 {dimension_numbers = #tpu.dot_dimension_numbers<[2], [2], [1], [1], [0, 0, 0, 1, 1, 1], [0], [0]>} : vector<2x17x8xbf16>, vector<2x17x8xbf16>, vector<2x17x17xf32> -> vector<2x17x17xf32>
    "tpu.trace_stop"() : () -> ()
    %cst_131 = arith.constant 0.353553385 : f32
    %324 = vector.broadcast %cst_131 : f32 to vector<2x17x17xf32>
    %325 = arith.mulf %323, %324 : vector<2x17x17xf32>
    %cst_132 = arith.constant dense<0xFF800000> : vector<2x17xf32>
    %326 = vector.multi_reduction <maximumf>, %325, %cst_132 [2] : vector<2x17x17xf32> to vector<2x17xf32>
    %327 = vector.shape_cast %326 : vector<2x17xf32> to vector<2x17x1xf32>
    %328 = vector.broadcast %327 : vector<2x17x1xf32> to vector<2x17x17xf32>
    %329 = arith.subf %325, %328 : vector<2x17x17xf32>
    %330 = math.exp %329 : vector<2x17x17xf32>
    %cst_133 = arith.constant dense<0.000000e+00> : vector<2x17xf32>
    %331 = vector.multi_reduction <add>, %330, %cst_133 [2] : vector<2x17x17xf32> to vector<2x17xf32>
    %332 = vector.shape_cast %331 : vector<2x17xf32> to vector<2x17x1xf32>
    %333 = vector.broadcast %332 : vector<2x17x1xf32> to vector<2x17x17xf32>
    %334 = arith.divf %330, %333 : vector<2x17x17xf32>
    %c0_134 = arith.constant 0 : index
    %c2 = arith.constant 2 : index
    %c0_135 = arith.constant 0 : index
    %c0_136 = arith.constant 0 : index
    %335 = vector.load %arg25[%c0_134, %c2, %c0_135, %c0_136] : memref<2x4x17x17xf32, #tpu.memory_space<vmem>>, vector<2x1x17x17xf32>
    %336 = vector.shape_cast %335 : vector<2x1x17x17xf32> to vector<2x17x17xf32>
    %337 = vector.shape_cast %334 : vector<2x17x17xf32> to vector<2x1x17x17xf32>
    tpu.vector_store %arg25[%c0_134, %c2, %c0_135, %c0_136], %337 {strides = array<i32>} : memref<2x4x17x17xf32, #tpu.memory_space<vmem>>, vector<2x1x17x17xf32>,
    %338 = arith.addf %313, %334 : vector<2x17x17xf32>
    %339 = vector.extract_strided_slice %334 {offsets = [0, 0, 1], sizes = [2, 1, 16], strides = [1, 1, 1]} : vector<2x17x17xf32> to vector<2x1x16xf32>
    %340 = vector.shape_cast %339 : vector<2x1x16xf32> to vector<2x16xf32>
    %341 = arith.addf %316, %340 : vector<2x16xf32>
    %342 = vector.extract_strided_slice %264 {offsets = [0, 24], sizes = [34, 8], strides = [1, 1]} : vector<34x64xf32> to vector<34x8xf32>
    %343 = vector.shape_cast %342 : vector<34x8xf32> to vector<2x17x8xf32>
    %344 = vector.extract_strided_slice %264 {offsets = [0, 56], sizes = [34, 8], strides = [1, 1]} : vector<34x64xf32> to vector<34x8xf32>
    %345 = vector.shape_cast %344 : vector<34x8xf32> to vector<2x17x8xf32>
    %346 = arith.truncf %343 : vector<2x17x8xf32> to vector<2x17x8xbf16>
    %347 = arith.truncf %345 : vector<2x17x8xf32> to vector<2x17x8xbf16>
    "tpu.trace_start"() <{level = 10 : i32, message = "bne,bme->bnm"}> : () -> ()
    %cst_137 = arith.constant dense<0.000000e+00> : vector<2x17x17xf32>
    %348 = tpu.matmul %346, %347, %cst_137 {dimension_numbers = #tpu.dot_dimension_numbers<[2], [2], [1], [1], [0, 0, 0, 1, 1, 1], [0], [0]>} : vector<2x17x8xbf16>, vector<2x17x8xbf16>, vector<2x17x17xf32> -> vector<2x17x17xf32>
    "tpu.trace_stop"() : () -> ()
    %cst_138 = arith.constant 0.353553385 : f32
    %349 = vector.broadcast %cst_138 : f32 to vector<2x17x17xf32>
    %350 = arith.mulf %348, %349 : vector<2x17x17xf32>
    %cst_139 = arith.constant dense<0xFF800000> : vector<2x17xf32>
    %351 = vector.multi_reduction <maximumf>, %350, %cst_139 [2] : vector<2x17x17xf32> to vector<2x17xf32>
    %352 = vector.shape_cast %351 : vector<2x17xf32> to vector<2x17x1xf32>
    %353 = vector.broadcast %352 : vector<2x17x1xf32> to vector<2x17x17xf32>
    %354 = arith.subf %350, %353 : vector<2x17x17xf32>
    %355 = math.exp %354 : vector<2x17x17xf32>
    %cst_140 = arith.constant dense<0.000000e+00> : vector<2x17xf32>
    %356 = vector.multi_reduction <add>, %355, %cst_140 [2] : vector<2x17x17xf32> to vector<2x17xf32>
    %357 = vector.shape_cast %356 : vector<2x17xf32> to vector<2x17x1xf32>
    %358 = vector.broadcast %357 : vector<2x17x1xf32> to vector<2x17x17xf32>
    %359 = arith.divf %355, %358 : vector<2x17x17xf32>
    %c0_141 = arith.constant 0 : index
    %c3 = arith.constant 3 : index
    %c0_142 = arith.constant 0 : index
    %c0_143 = arith.constant 0 : index
    %360 = vector.load %arg25[%c0_141, %c3, %c0_142, %c0_143] : memref<2x4x17x17xf32, #tpu.memory_space<vmem>>, vector<2x1x17x17xf32>
    %361 = vector.shape_cast %360 : vector<2x1x17x17xf32> to vector<2x17x17xf32>
    %362 = vector.shape_cast %359 : vector<2x17x17xf32> to vector<2x1x17x17xf32>
    tpu.vector_store %arg25[%c0_141, %c3, %c0_142, %c0_143], %362 {strides = array<i32>} : memref<2x4x17x17xf32, #tpu.memory_space<vmem>>, vector<2x1x17x17xf32>,
    %363 = arith.addf %338, %359 : vector<2x17x17xf32>
    %364 = vector.extract_strided_slice %359 {offsets = [0, 0, 1], sizes = [2, 1, 16], strides = [1, 1, 1]} : vector<2x17x17xf32> to vector<2x1x16xf32>
    %365 = vector.shape_cast %364 : vector<2x1x16xf32> to vector<2x16xf32>
    %366 = arith.addf %341, %365 : vector<2x16xf32>
    %cst_144 = arith.constant 2.500000e-01 : f32
    %367 = vector.broadcast %cst_144 : f32 to vector<2x17x17xf32>
    %368 = arith.mulf %363, %367 : vector<2x17x17xf32>
    %369 = arith.truncf %368 : vector<2x17x17xf32> to vector<2x17x17xbf16>
    %370 = arith.truncf %259 : vector<2x17x16xf32> to vector<2x17x16xbf16>
    "tpu.trace_start"() <{level = 10 : i32, message = "bnm,bmd->bnd"}> : () -> ()
    %cst_145 = arith.constant dense<0.000000e+00> : vector<2x17x16xf32>
    %371 = tpu.matmul %369, %370, %cst_145 {dimension_numbers = #tpu.dot_dimension_numbers<[2], [1], [1], [2], [0, 0, 0, 1, 1, 2], [0], [0]>} : vector<2x17x17xbf16>, vector<2x17x16xbf16>, vector<2x17x16xf32> -> vector<2x17x16xf32>
    "tpu.trace_stop"() : () -> ()
    %372 = arith.negf %366 : vector<2x16xf32>
    %373 = math.exp %372 : vector<2x16xf32>
    %cst_146 = arith.constant 1.000000e+00 : f32
    %374 = vector.broadcast %cst_146 : f32 to vector<2x16xf32>
    %375 = arith.addf %374, %373 : vector<2x16xf32>
    %376 = arith.divf %374, %375 : vector<2x16xf32>
    %c0_147 = arith.constant 0 : index
    %c0_148 = arith.constant 0 : index
    %377 = vector.load %arg24[%c0_147, %c0_148] : memref<2x16xf32, #tpu.memory_space<vmem>>, vector<2x16xf32>
    tpu.vector_store %arg24[%c0_147, %c0_148], %376 {strides = array<i32>} : memref<2x16xf32, #tpu.memory_space<vmem>>, vector<2x16xf32>,
    %378 = tpu.iota {dimensions = array<i32: 0>} : vector<16x16xi32>
    %379 = tpu.iota {dimensions = array<i32: 1>} : vector<16x16xi32>
    %380 = vector.shape_cast %366 : vector<2x16xf32> to vector<2x16x1xf32>
    %381 = vector.shape_cast %366 : vector<2x16xf32> to vector<2x1x16xf32>
    %382 = vector.broadcast %381 : vector<2x1x16xf32> to vector<2x16x16xf32>
    %383 = vector.broadcast %380 : vector<2x16x1xf32> to vector<2x16x16xf32>
    %384 = arith.cmpf ogt, %382, %383 : vector<2x16x16xf32>
    %385 = vector.broadcast %381 : vector<2x1x16xf32> to vector<2x16x16xf32>
    %386 = vector.broadcast %380 : vector<2x16x1xf32> to vector<2x16x16xf32>
    %387 = arith.cmpf oeq, %385, %386 : vector<2x16x16xf32>
    %388 = arith.cmpi slt, %379, %378 : vector<16x16xi32>
    %389 = vector.shape_cast %388 : vector<16x16xi1> to vector<1x16x16xi1>
    %390 = vector.broadcast %389 : vector<1x16x16xi1> to vector<2x16x16xi1>
    %391 = arith.andi %387, %390 : vector<2x16x16xi1>
    %392 = arith.ori %384, %391 : vector<2x16x16xi1>
    %393 = arith.extui %392 : vector<2x16x16xi1> to vector<2x16x16xi32>
    %394 = arith.sitofp %393 : vector<2x16x16xi32> to vector<2x16x16xf32>
    %cst_149 = arith.constant dense<0.000000e+00> : vector<2x16xf32>
    %395 = vector.multi_reduction <add>, %394, %cst_149 [2] : vector<2x16x16xf32> to vector<2x16xf32>
    %396 = vector.shape_cast %395 : vector<2x16xf32> to vector<2x16x1xf32>
    %cst_150 = arith.constant 1.100000e+01 : f32
    %397 = vector.broadcast %cst_150 : f32 to vector<2x16x1xf32>
    %398 = arith.cmpf olt, %396, %397 : vector<2x16x1xf32>
    %cst_151 = arith.constant dense<0xFF800000> : vector<2xf32>
    %399 = vector.multi_reduction <maximumf>, %366, %cst_151 [1] : vector<2x16xf32> to vector<2xf32>
    %400 = vector.shape_cast %399 : vector<2xf32> to vector<2x1xf32>
    %401 = vector.shape_cast %400 : vector<2x1xf32> to vector<2x1x1xf32>
    %402 = vector.broadcast %401 : vector<2x1x1xf32> to vector<2x16x1xf32>
    %403 = arith.subf %380, %402 : vector<2x16x1xf32>
    %404 = math.exp %403 : vector<2x16x1xf32>
    %cst_152 = arith.constant 0.000000e+00 : f32
    %405 = vector.broadcast %cst_152 : f32 to vector<2x16x1xf32>
    %406 = arith.select %398, %404, %405 : vector<2x16x1xi1>, vector<2x16x1xf32>
    %cst_153 = arith.constant dense<0.000000e+00> : vector<2x1xf32>
    %407 = vector.multi_reduction <add>, %406, %cst_153 [1] : vector<2x16x1xf32> to vector<2x1xf32>
    %408 = vector.shape_cast %407 : vector<2x1xf32> to vector<2x1x1xf32>
    %409 = vector.extract_strided_slice %371 {offsets = [0, 1, 0], sizes = [2, 16, 16], strides = [1, 1, 1]} : vector<2x17x16xf32> to vector<2x16x16xf32>
    %410 = vector.broadcast %406 : vector<2x16x1xf32> to vector<2x16x16xf32>
    %411 = arith.mulf %410, %409 : vector<2x16x16xf32>
    %cst_154 = arith.constant dense<0.000000e+00> : vector<2x16xf32>
    %412 = vector.multi_reduction <add>, %411, %cst_154 [1] : vector<2x16x16xf32> to vector<2x16xf32>
    %413 = vector.shape_cast %412 : vector<2x16xf32> to vector<2x1x16xf32>
    %414 = vector.broadcast %408 : vector<2x1x1xf32> to vector<2x1x16xf32>
    %415 = arith.divf %413, %414 : vector<2x1x16xf32>
    %416 = vector.shape_cast %415 : vector<2x1x16xf32> to vector<2x16xf32>
    %c0_155 = arith.constant 0 : index
    %c0_156 = arith.constant 0 : index
    %417 = vector.load %arg17[%c0_155, %c0_156] : memref<16x64xf32, #tpu.memory_space<vmem>>, vector<16x64xf32>
    %418 = arith.truncf %416 : vector<2x16xf32> to vector<2x16xbf16>
    %419 = arith.truncf %417 : vector<16x64xf32> to vector<16x64xbf16>
    %cst_157 = arith.constant dense<0.000000e+00> : vector<2x64xf32>
    %420 = tpu.matmul %418, %419, %cst_157 {dimension_numbers = #tpu.dot_dimension_numbers<[1], [0], [0], [1], [0, 0, 1, 1], [], []>} : vector<2x16xbf16>, vector<16x64xbf16>, vector<2x64xf32> -> vector<2x64xf32>
    %c0_158 = arith.constant 0 : index
    %c0_159 = arith.constant 0 : index
    %421 = vector.load %arg18[%c0_158, %c0_159] : memref<1x64xf32, #tpu.memory_space<vmem>>, vector<1x64xf32>
    %422 = vector.broadcast %421 : vector<1x64xf32> to vector<2x64xf32>
    %423 = arith.addf %420, %422 : vector<2x64xf32>
    %cst_160 = arith.constant 0.000000e+00 : f32
    %424 = vector.broadcast %cst_160 : f32 to vector<2x64xf32>
    %425 = arith.cmpf oge, %423, %424 : vector<2x64xf32>
    %cst_161 = arith.constant 2.000000e-01 : f32
    %426 = vector.broadcast %cst_161 : f32 to vector<2x64xf32>
    %427 = arith.mulf %426, %423 : vector<2x64xf32>
    %428 = arith.select %425, %423, %427 : vector<2x64xi1>, vector<2x64xf32>
    %c0_162 = arith.constant 0 : index
    %c0_163 = arith.constant 0 : index
    %429 = vector.load %arg19[%c0_162, %c0_163] : memref<64x32xf32, #tpu.memory_space<vmem>>, vector<64x32xf32>
    %430 = arith.truncf %428 : vector<2x64xf32> to vector<2x64xbf16>
    %431 = arith.truncf %429 : vector<64x32xf32> to vector<64x32xbf16>
    %cst_164 = arith.constant dense<0.000000e+00> : vector<2x32xf32>
    %432 = tpu.matmul %430, %431, %cst_164 {dimension_numbers = #tpu.dot_dimension_numbers<[1], [0], [0], [1], [0, 0, 1, 1], [], []>} : vector<2x64xbf16>, vector<64x32xbf16>, vector<2x32xf32> -> vector<2x32xf32>
    %c0_165 = arith.constant 0 : index
    %c0_166 = arith.constant 0 : index
    %433 = vector.load %arg20[%c0_165, %c0_166] : memref<1x32xf32, #tpu.memory_space<vmem>>, vector<1x32xf32>
    %434 = vector.broadcast %433 : vector<1x32xf32> to vector<2x32xf32>
    %435 = arith.addf %432, %434 : vector<2x32xf32>
    %cst_167 = arith.constant 0.000000e+00 : f32
    %436 = vector.broadcast %cst_167 : f32 to vector<2x32xf32>
    %437 = arith.cmpf oge, %435, %436 : vector<2x32xf32>
    %cst_168 = arith.constant 2.000000e-01 : f32
    %438 = vector.broadcast %cst_168 : f32 to vector<2x32xf32>
    %439 = arith.mulf %438, %435 : vector<2x32xf32>
    %440 = arith.select %437, %435, %439 : vector<2x32xi1>, vector<2x32xf32>
    %c0_169 = arith.constant 0 : index
    %c0_170 = arith.constant 0 : index
    %441 = vector.load %arg21[%c0_169, %c0_170] : memref<32x2xf32, #tpu.memory_space<vmem>>, vector<32x2xf32>
    %442 = arith.truncf %440 : vector<2x32xf32> to vector<2x32xbf16>
    %443 = arith.truncf %441 : vector<32x2xf32> to vector<32x2xbf16>
    %cst_171 = arith.constant dense<0.000000e+00> : vector<2x2xf32>
    %444 = tpu.matmul %442, %443, %cst_171 {dimension_numbers = #tpu.dot_dimension_numbers<[1], [0], [0], [1], [0, 0, 1, 1], [], []>} : vector<2x32xbf16>, vector<32x2xbf16>, vector<2x2xf32> -> vector<2x2xf32>
    %c0_172 = arith.constant 0 : index
    %c0_173 = arith.constant 0 : index
    %445 = vector.load %arg22[%c0_172, %c0_173] : memref<1x2xf32, #tpu.memory_space<vmem>>, vector<1x2xf32>
    %446 = vector.broadcast %445 : vector<1x2xf32> to vector<2x2xf32>
    %447 = arith.addf %444, %446 : vector<2x2xf32>
    %c0_174 = arith.constant 0 : index
    %c0_175 = arith.constant 0 : index
    %448 = vector.load %arg23[%c0_174, %c0_175] : memref<2x2xf32, #tpu.memory_space<vmem>>, vector<2x2xf32>
    tpu.vector_store %arg23[%c0_174, %c0_175], %447 {strides = array<i32>} : memref<2x2xf32, #tpu.memory_space<vmem>>, vector<2x2xf32>,
    return
  }
}

</mosaic_0001>

<bundles_post_ra>
// kernel: graph_transformer_forward.1
= control target key start
LH: loop header
LB: loop body
LE: loop exit
PB: predicated region body
PF: predicated region fallthrough
CT: control target
= control target key end

     0   :  { %s6447_s0 = inlined_call_operand.vmem [shape: f32[2,16,32], index: 0, kind: input, shape index: {}]   ;;  %s6448_s1 = inlined_call_operand.vmem [shape: f32[2,16,16], index: 1, kind: input, shape index: {}]   ;;  %s6449_s2 = inlined_call_operand.vmem [shape: f32[32,64], index: 2, kind: input, shape index: {}]   ;;  %s6450_s3 = inlined_call_operand.vmem [shape: f32[32,8], index: 3, kind: input, shape index: {}]   ;;  %s6451_s4 = inlined_call_operand.vmem [shape: f32[1,8], index: 4, kind: input, shape index: {}]   ;;  %s6452_s5 = inlined_call_operand.vmem [shape: f32[16,16], index: 5, kind: input, shape index: {}]   ;;  %s6453_s6 = inlined_call_operand.vmem [shape: f32[1,16], index: 6, kind: input, shape index: {}]   ;;  %s6454_s7 = inlined_call_operand.vmem [shape: f32[16,16], index: 7, kind: input, shape index: {}]   ;;  %s6455_s8 = inlined_call_operand.vmem [shape: f32[1,16], index: 8, kind: input, shape index: {}]   ;;  %s6456_s9 = inlined_call_operand.vmem [shape: f32[16,64], index: 9, kind: input, shape index: {}]   ;;  %s6457_s10 = inlined_call_operand.vmem [shape: f32[1,64], index: 10, kind: input, shape index: {}]   ;;  %s6458_s11 = inlined_call_operand.vmem [shape: f32[64,16], index: 11, kind: input, shape index: {}]   ;;  %s6459_s12 = inlined_call_operand.vmem [shape: f32[1,16], index: 12, kind: input, shape index: {}]   ;;  %s6460_s13 = inlined_call_operand.vmem [shape: f32[16,16], index: 13, kind: input, shape index: {}]   ;;  %s6461_s14 = inlined_call_operand.vmem [shape: f32[1,16], index: 14, kind: input, shape index: {}]   ;;  %s6462_s15 = inlined_call_operand.vmem [shape: f32[1,1,16], index: 15, kind: input, shape index: {}]   ;;  %s6463_s16 = inlined_call_operand.vmem [shape: f32[16,64], index: 16, kind: input, shape index: {}]   ;;  %s6464_s17 = inlined_call_operand.vmem [shape: f32[16,64], index: 17, kind: input, shape index: {}]   ;;  %s6465_s18 = inlined_call_operand.vmem [shape: f32[1,64], index: 18, kind: input, shape index: {}]   ;;  %s6466_s19 = inlined_call_operand.vmem [shape: f32[64,32], index: 19, kind: input, shape index: {}]   ;;  %s6467_s20 = inlined_call_operand.vmem [shape: f32[1,32], index: 20, kind: input, shape index: {}]   ;;  %s6468_s21 = inlined_call_operand.vmem [shape: f32[32,2], index: 21, kind: input, shape index: {}]   ;;  %s6469_s22 = inlined_call_operand.vmem [shape: f32[1,2], index: 22, kind: input, shape index: {}]   ;;  %s6470_s23 = inlined_call_operand.hbm [shape: f32[2,2], index: 23, kind: output, shape index: {0}]   ;;  %s6471_s24 = inlined_call_operand.hbm [shape: f32[2,16], index: 24, kind: output, shape index: {1}]   ;;  %s6472_s25 = inlined_call_operand.vmem [shape: f32[2,4,17,17], index: 25, kind: output, shape index: {2}]   ;;  %s6473_s26 = inlined_call_operand.hbm [shape: f32[2,16,16], index: 26, kind: output, shape index: {3}]   ;;  %s6474_s27 = inlined_call_operand.hbm [shape: f32[1,1], index: 27, kind: output, shape index: {4}]  }
   0x1   :  { %6491 = sst [smem:[#allocation13_spill]] %s6447_s0 }
   0x2   :  { %6492 = sst [smem:[#allocation14_spill]] %s6448_s1 }
   0x3   :  { %6493 = sst [smem:[#allocation15_spill]] %s6449_s2 }
   0x4   :  { %6494 = sst [smem:[#allocation16_spill]] %s6450_s3 }
   0x5   :  { %6495 = sst [smem:[#allocation17_spill]] %s6451_s4 }
   0x6   :  { %6496 = sst [smem:[#allocation18_spill]] %s6452_s5 }
   0x7   :  { %6497 = sst [smem:[#allocation19_spill]] %s6453_s6 }
   0x8   :  { %6498 = sst [smem:[#allocation20_spill]] %s6454_s7 }
   0x9   :  { %6499 = sst [smem:[#allocation21_spill]] %s6455_s8 }
   0xa   :  { %6500 = sst [smem:[#allocation22_spill]] %s6456_s9 }
   0xb   :  { %6501 = sst [smem:[#allocation23_spill]] %s6457_s10 }
   0xc   :  { %6502 = sst [smem:[#allocation24_spill]] %s6458_s11 }
   0xd   :  { %33 = vsyncpa [#allocation4], 0 }
   0xe   :  { %34 = vsyncpa [#allocation6], 0  ;;  %s6503_s8 = sld [smem:[#allocation15_spill]]  ;;  %s6504_s6 = sld [smem:[#allocation13_spill]]  ;;  %vm6487_vm0 = vcmask 261120  }
  0x14   :  { %v87_v0 = vld [vmem:[%s6503_s8] sm:$0xff]  ;;  %v88_v1 = vld [vmem:[%s6503_s8 + $0x8] sm:$0xff]  ;;  %v89_v2 = vld [vmem:[%s6503_s8 + $0x10] sm:$0xff] }
  0x15   :  { %v93_v3 = vpack.c.bf16 %v88_v1, %v87_v0  ;;  %v90_v4 = vld [vmem:[%s6503_s8 + $0x18] sm:$0xff]  ;;  %v83_v5 = vld [vmem:[%s6504_s6] sm:$0xff]  ;;  %v84_v6 = vld [vmem:[%s6504_s6 + $0x8] sm:$0xff] }
  0x16   :  { %v94_v7 = vpack.c.bf16 %v90_v4, %v89_v2  ;;  %v5157_v8 = vpack.c.bf16 %v84_v6, %v83_v5 }
  0x17   :  { %35 = vsyncpa [#allocation9], 0  ;;  %4375 = vmatprep.subr.bf16.mxu0 %v93_v3  ;;  %v85_v9 = vld [vmem:[%s6504_s6 + $0x10] sm:$0xff]  ;;  %v86_v10 = vld [vmem:[%s6504_s6 + $0x18] sm:$0xff]  ;;  %v4980_v12 = vmov 0.0   ;;  %vm6489_vm1 = vmmov 0  }
  0x18   :  { %4376 = vmatpush3.bf16.msra.mxu0 %v93_v3  ;;  %4379 = vmatprep.mubr.msk.bf16.mxu0 %vm6487_vm0, %v5157_v8  ;;  %v5167_v11 = vpack.c.bf16 %v86_v10, %v85_v9  ;;  %s4982_s30 = smov 88   ;;  %s4983_s9 = smov 96   ;;  %vm156_vm2 = vcmask 64512   ;;  %vm258_vm3 = vcmask 130048  }
  0x19   :  { %4377 = vmatprep.subr.bf16.mxu0 %v94_v7  ;;  %4383 = vmatprep.subr.bf16.mxu1 %v4980_v12  ;;  %s4984_s5 = smov 80   ;;  %s4985_s28 = smov 120  }
  0x1a   :  { %4385 = vmatprep.mubr.msk.bf16.mxu1 %vm6489_vm1, %v4980_v12  ;;  %s6485_s0 = smov 72   ;;  %s4987_s10 = smov 112  }
  0x1b   :  { %s6483_s29 = smov 104   ;;  %s6505_s11 = sld [smem:[#allocation16_spill]] }
  0x1c   :  { %4378 = vmatpush3.bf16.msra.mxu0 %v94_v7  ;;  %s6506_s6 = sld [smem:[#allocation17_spill]]  ;;  %s6507_s3 = sld [smem:[#allocation18_spill]] }
  0x1d   :  { %4389 = vmatprep.subr.bf16.mxu0 %v4980_v12  ;;  %s6508_s1 = sld [smem:[#allocation14_spill]]  ;;  %s6509_s8 = sld [smem:[#allocation20_spill]] }
  0x1e   :  { %s6510_s2 = sld [smem:[#allocation19_spill]]  ;;  %s6512_s7 = sld [smem:[#allocation24_spill]] }
  0x1f   :  { %4380 = vmatmul.mubr.msk.bf16.vlgmr.msra.gmra.mrb[0].mxu0 %vm6487_vm0, %v5167_v11 }
  0x20   :  { %4391 = vmatprep.mubr.msk.bf16.mxu0 %vm6489_vm1, %v4980_v12 }
  0xf2   :  { %v4381_v13 = vpop.f32.mrb[0].mxu0 }
  0xf3   :  { %v136_v14 = vpop.f32.mrb[1].mxu0 }
  0xf4   :  { %v4382_v15 = vpop.f32.mrb[2].mxu0 }
  0xf5   :  { %v152_v16 = vpack.c.bf16 %v4382_v15, %v4381_v13  ;;  %v139_v17 = vpop.f32.mrb[3].mxu0 }
  0xf6   :  { %v151_v18 = vpack.c.bf16 %v139_v17, %v136_v14 }
  0xf8   :  { %309 = vrot.lane.b32.xlu1 %v151_v18, %s4982_s30  ;;  %154 = vrot.lane.b32.xlu0 %v151_v18, %s4983_s9 }
  0xfc   :  { %360 = vrot.lane.b32.xlu1 %v152_v16, %s4982_s30  ;;  %205 = vrot.lane.b32.xlu0 %v152_v16, %s4983_s9 }
 0x100   :  { %463 = vrot.lane.b32.xlu1 %v151_v18, %s4984_s5  ;;  %307 = vrot.lane.b32.xlu0 %v151_v18, %s4985_s28 }
 0x104   :  { %514 = vrot.lane.b32.xlu1 %v152_v16, %s4984_s5  ;;  %358 = vrot.lane.b32.xlu0 %v152_v16, %s4985_s28 }
 0x108   :  { %617 = vrot.lane.b32.xlu1 %v151_v18, %s6485_s0  ;;  %461 = vrot.lane.b32.xlu0 %v151_v18, %s4987_s10 }
 0x10c   :  { %668 = vrot.lane.b32.xlu1 %v152_v16, %s6485_s0  ;;  %512 = vrot.lane.b32.xlu0 %v152_v16, %s4987_s10  ;;  %s6511_s0 = sld [smem:[#allocation22_spill]] }
 0x110   :  { %666 = vrot.lane.b32.xlu1 %v152_v16, %s6483_s29  ;;  %615 = vrot.lane.b32.xlu0 %v151_v18, %s6483_s29 }
 0x16a   :  { %v310_v19 = vpop.permute.xlu1 %309  ;;  %v155_v20 = vpop.permute.xlu0 %154 }
 0x16b   :  { %v161_v21 = vsel %vm156_vm2, %v155_v20, 0  ;;  %v315_v27 = vsel %vm156_vm2, %v310_v19, 0 }
 0x16c   :  { %4384 = vmatpush3.bf16.xpose.msra.mxu1 %v161_v21 }
 0x16d   :  { %4395 = vmatprep.subr.bf16.mxu1 %v4980_v12 }
 0x16e   :  { %v361_v22 = vpop.permute.xlu1 %360  ;;  %v206_v23 = vpop.permute.xlu0 %205 }
 0x16f   :  { %v211_v24 = vsel %vm156_vm2, %v206_v23, 0  ;;  %v366_v28 = vsel %vm156_vm2, %v361_v22, 0 }
 0x170   :  { %4390 = vmatpush3.bf16.xpose.msra.mxu0 %v211_v24 }
 0x171   :  { %4401 = vmatprep.subr.bf16.mxu0 %v4980_v12 }
 0x172   :  { %v464_v25 = vpop.permute.xlu1 %463  ;;  %v308_v26 = vpop.permute.xlu0 %307 }
 0x173   :  { %4386 = vmatmul.mubr.msk.bf16.vlgmr.msra.gmra.mrb[0].mxu1 %vm156_vm2, %v151_v18  ;;  %v469_v31 = vsel %vm156_vm2, %v464_v25, 0 }
 0x174   :  { %4396 = vmatpush3.bf16.xpose.msra.mxu1 %v315_v27  ;;  %4397 = vmatprep.mubr.msk.bf16.mxu1 %vm6489_vm1, %v4980_v12 }
 0x175   :  { %4407 = vmatprep.subr.bf16.mxu1 %v4980_v12 }
 0x176   :  { %v515_v29 = vpop.permute.xlu1 %514  ;;  %v359_v30 = vpop.permute.xlu0 %358 }
 0x177   :  { %4392 = vmatmul.mubr.msk.bf16.vlgmr.msra.gmra.mrb[4].mxu0 %vm156_vm2, %v152_v16  ;;  %v520_v34 = vsel %vm156_vm2, %v515_v29, 0 }
 0x178   :  { %4402 = vmatpush3.bf16.xpose.msra.mxu0 %v366_v28  ;;  %4403 = vmatprep.mubr.msk.bf16.mxu0 %vm6489_vm1, %v4980_v12 }
 0x179   :  { %4413 = vmatprep.subr.bf16.mxu0 %v4980_v12 }
 0x17a   :  { %v618_v32 = vpop.permute.xlu1 %617  ;;  %v462_v33 = vpop.permute.xlu0 %461 }
 0x17b   :  { %4398 = vmatmul.mubr.msk.bf16.vlgmr.msra.gmra.mrb[4].mxu1 %vm156_vm2, %v308_v26  ;;  %v623_v35 = vsel %vm156_vm2, %v618_v32, 0 }
 0x17c   :  { %4408 = vmatpush3.bf16.xpose.msra.mxu1 %v469_v31  ;;  %4409 = vmatprep.mubr.msk.bf16.mxu1 %vm6489_vm1, %v4980_v12 }
 0x17d   :  { %4419 = vmatprep.subr.bf16.mxu1 %v4980_v12 }
 0x17e   :  { %v669_v36 = vpop.permute.xlu1 %668  ;;  %v513_v37 = vpop.permute.xlu0 %512 }
 0x17f   :  { %4404 = vmatmul.mubr.msk.bf16.vlgmr.msra.gmra.mrb[8].mxu0 %vm156_vm2, %v359_v30  ;;  %v674_v38 = vsel %vm156_vm2, %v669_v36, 0 }
 0x180   :  { %4414 = vmatpush3.bf16.xpose.msra.mxu0 %v520_v34  ;;  %4415 = vmatprep.mubr.msk.bf16.mxu0 %vm6489_vm1, %v4980_v12 }
 0x181   :  { %4425 = vmatprep.subr.bf16.mxu0 %v4980_v12 }
 0x182   :  { %v616_v39 = vpop.permute.xlu0 %615  ;;  %v667_v40 = vpop.permute.xlu1 %666 }
 0x183   :  { %4410 = vmatmul.mubr.msk.bf16.vlgmr.msra.gmra.mrb[8].mxu1 %vm156_vm2, %v462_v33 }
 0x184   :  { %4420 = vmatpush3.bf16.xpose.msra.mxu1 %v623_v35  ;;  %4421 = vmatprep.mubr.msk.bf16.mxu1 %vm6489_vm1, %v4980_v12 }
 0x185   :  { %4431 = vmatprep.subr.bf16.mxu1 %v4980_v12 }
 0x187   :  { %4416 = vmatmul.mubr.msk.bf16.vlgmr.msra.gmra.mrb[12].mxu0 %vm156_vm2, %v513_v37 }
 0x188   :  { %4426 = vmatpush3.bf16.xpose.msra.mxu0 %v674_v38  ;;  %4427 = vmatprep.mubr.msk.bf16.mxu0 %vm6489_vm1, %v4980_v12 }
 0x189   :  { %4437 = vmatprep.subr.bf16.mxu0 %v4980_v12 }
 0x18b   :  { %4422 = vmatmul.mubr.msk.bf16.vlgmr.msra.gmra.mrb[12].mxu1 %vm156_vm2, %v616_v39 }
 0x18c   :  { %4432 = vmatpush3.bf16.msra.mxu1 %v5157_v8  ;;  %4433 = vmatprep.mubr.msk.bf16.mxu1 %vm6489_vm1, %v4980_v12 }
 0x18f   :  { %4428 = vmatmul.mubr.msk.bf16.vlgmr.msra.gmra.mrb[16].mxu0 %vm156_vm2, %v667_v40 }
 0x190   :  { %4438 = vmatpush3.bf16.msra.mxu0 %v5167_v11  ;;  %4439 = vmatprep.mubr.msk.bf16.mxu0 %vm6489_vm1, %v4980_v12 }
 0x191   :  { %4451 = vmatprep.subr.bf16.mxu0 %v4980_v12 }
 0x246   :  { %v197_v41 = vpop.f32.mrb[0].mxu1 }
 0x247   :  { %v5234_v42 = vmul.f32 0.35355338, %v197_v41  ;;  %v4387_v43 = vpop.f32.mrb[1].mxu1 }
 0x248   :  { %v200_v44 = vpop.f32.mrb[2].mxu1 }
 0x249   :  { %v4388_v45 = vpop.f32.mrb[3].mxu1  ;;  %v259_v46 = vsel %vm258_vm3, %v5234_v42, -inf  ;;  %v5240_v51 = vmul.f32 0.35355338, %v200_v44 }
 0x24a   :  { %260 = vmax.xlane.f32.xlu0 %v259_v46  ;;  %v247_v47 = vpop.f32.mrb[4].mxu0 }
 0x24b   :  { %v5238_v48 = vmul.f32 0.35355338, %v247_v47  ;;  %v4393_v49 = vpop.f32.mrb[5].mxu0  ;;  %v262_v61 = vsel %vm258_vm3, %v5240_v51, -inf }
 0x24c   :  { %v250_v50 = vpop.f32.mrb[6].mxu0 }
 0x24d   :  { %v5242_v52 = vmul.f32 0.35355338, %v250_v50  ;;  %v4394_v53 = vpop.f32.mrb[7].mxu0  ;;  %v265_v54 = vsel %vm258_vm3, %v5238_v48, -inf }
 0x24e   :  { %266 = vmax.xlane.f32.xlu1 %v265_v54  ;;  %v351_v55 = vpop.f32.mrb[4].mxu1 }
 0x24f   :  { %v5246_v56 = vmul.f32 0.35355338, %v351_v55  ;;  %v4399_v57 = vpop.f32.mrb[5].mxu1  ;;  %v268_v58 = vsel %vm258_vm3, %v5242_v52, -inf }
 0x250   :  { %269 = vmax.xlane.f32.xlu0 %v268_v58  ;;  %v354_v59 = vpop.f32.mrb[6].mxu1 }
 0x251   :  { %v4400_v60 = vpop.f32.mrb[7].mxu1  ;;  %v413_v1 = vsel %vm258_vm3, %v5246_v56, -inf  ;;  %v5260_v7 = vmul.f32 0.35355338, %v354_v59 }
 0x252   :  { %263 = vmax.xlane.f32.xlu1 %v262_v61  ;;  %v402_v62 = vpop.f32.mrb[8].mxu0 }
 0x253   :  { %v5252_v63 = vmul.f32 0.35355338, %v402_v62  ;;  %v4405_v0 = vpop.f32.mrb[9].mxu0  ;;  %v416_v16 = vsel %vm258_vm3, %v5260_v7, -inf }
 0x254   :  { %414 = vmax.xlane.f32.xlu0 %v413_v1  ;;  %v405_v2 = vpop.f32.mrb[10].mxu0 }
 0x255   :  { %v5256_v3 = vmul.f32 0.35355338, %v405_v2  ;;  %v4406_v4 = vpop.f32.mrb[11].mxu0  ;;  %v419_v5 = vsel %vm258_vm3, %v5252_v63, -inf }
 0x256   :  { %420 = vmax.xlane.f32.xlu1 %v419_v5  ;;  %v505_v6 = vpop.f32.mrb[8].mxu1 }
 0x257   :  { %v4411_v8 = vpop.f32.mrb[9].mxu1  ;;  %v422_v9 = vsel %vm258_vm3, %v5256_v3, -inf  ;;  %v5268_v18 = vmul.f32 0.35355338, %v505_v6 }
 0x258   :  { %423 = vmax.xlane.f32.xlu0 %v422_v9  ;;  %v508_v10 = vpop.f32.mrb[10].mxu1 }
 0x259   :  { %v4412_v11 = vpop.f32.mrb[11].mxu1  ;;  %v5274_v23 = vmul.f32 0.35355338, %v508_v10  ;;  %v567_v29 = vsel %vm258_vm3, %v5268_v18, -inf }
 0x25a   :  { %v556_v13 = vpop.f32.mrb[12].mxu0 }
 0x25b   :  { %v5264_v14 = vmul.f32 0.35355338, %v556_v13  ;;  %v4417_v15 = vpop.f32.mrb[13].mxu0  ;;  %v570_v33 = vsel %vm258_vm3, %v5274_v23, -inf }
 0x25c   :  { %417 = vmax.xlane.f32.xlu0 %v416_v16  ;;  %v559_v17 = vpop.f32.mrb[14].mxu0 }
 0x25d   :  { %v5270_v19 = vmul.f32 0.35355338, %v559_v17  ;;  %v4418_v20 = vpop.f32.mrb[15].mxu0  ;;  %v573_v21 = vsel %vm258_vm3, %v5264_v14, -inf }
 0x25e   :  { %574 = vmax.xlane.f32.xlu1 %v573_v21  ;;  %v659_v22 = vpop.f32.mrb[12].mxu1 }
 0x25f   :  { %v4423_v24 = vpop.f32.mrb[13].mxu1  ;;  %v576_v25 = vsel %vm258_vm3, %v5270_v19, -inf  ;;  %v5278_v27 = vmul.f32 0.35355338, %v659_v22 }
 0x260   :  { %577 = vmax.xlane.f32.xlu0 %v576_v25  ;;  %v662_v26 = vpop.f32.mrb[14].mxu1 }
 0x261   :  { %v4424_v28 = vpop.f32.mrb[15].mxu1  ;;  %v5282_v31 = vmul.f32 0.35355338, %v662_v26  ;;  %v721_v37 = vsel %vm258_vm3, %v5278_v27, -inf }
 0x262   :  { %568 = vmax.xlane.f32.xlu1 %v567_v29  ;;  %v710_v30 = vpop.f32.mrb[16].mxu0 }
 0x263   :  { %v4429_v32 = vpop.f32.mrb[17].mxu0  ;;  %v5286_v35 = vmul.f32 0.35355338, %v710_v30  ;;  %v724_v39 = vsel %vm258_vm3, %v5282_v31, -inf }
 0x264   :  { %571 = vmax.xlane.f32.xlu0 %v570_v33  ;;  %v713_v34 = vpop.f32.mrb[18].mxu0 }
 0x265   :  { %v4430_v36 = vpop.f32.mrb[19].mxu0  ;;  %v5290_v38 = vmul.f32 0.35355338, %v713_v34  ;;  %v727_v40 = vsel %vm258_vm3, %v5286_v35, -inf }
 0x266   :  { %722 = vmax.xlane.f32.xlu1 %v721_v37 }
 0x267   :  { %v730_v41 = vsel %vm258_vm3, %v5290_v38, -inf }
 0x268   :  { %725 = vmax.xlane.f32.xlu0 %v724_v39 }
 0x26a   :  { %728 = vmax.xlane.f32.xlu1 %v727_v40 }
 0x26c   :  { %731 = vmax.xlane.f32.xlu0 %v730_v41 }
 0x2d7   :  { %v261_v43 = vpop.xlane.xlu0 %260 }
 0x2d8   :  { %v271_v44 = vsub.f32 %v5234_v42, %v261_v43 }
 0x2da   :  { %v275_v47 = vmul.f32 1.442695, %v271_v44 }
 0x2db   :  { %v267_v45 = vpop.xlane.xlu1 %266 }
 0x2dc   :  { %v273_v46 = vsub.f32 %v5238_v48, %v267_v45 }
 0x2dd   :  { %v270_v49 = vpop.xlane.xlu0 %269 }
 0x2de   :  { %v279_v50 = vmul.f32 1.442695, %v273_v46  ;;  %v274_v53 = vsub.f32 %v5242_v52, %v270_v49 }
 0x2df   :  { %v264_v54 = vpop.xlane.xlu1 %263 }
 0x2e0   :  { %4668 = vpow2.f32 %v279_v50  ;;  %v281_v55 = vmul.f32 1.442695, %v274_v53  ;;  %v272_v57 = vsub.f32 %v5240_v51, %v264_v54 }
 0x2e1   :  { %4670 = vpow2.f32 %v275_v47  ;;  %v415_v58 = vpop.xlane.xlu0 %414 }
 0x2e2   :  { %4672 = vpow2.f32 %v281_v55  ;;  %v277_v59 = vmul.f32 1.442695, %v272_v57  ;;  %v425_v60 = vsub.f32 %v5246_v56, %v415_v58 }
 0x2e3   :  { %v421_v42 = vpop.xlane.xlu1 %420 }
 0x2e4   :  { %4674 = vpow2.f32 %v277_v59  ;;  %v427_v48 = vsub.f32 %v5252_v63, %v421_v42  ;;  %v429_v61 = vmul.f32 1.442695, %v425_v60 }
 0x2e5   :  { %v424_v62 = vpop.xlane.xlu0 %423 }
 0x2e6   :  { %v433_v0 = vmul.f32 1.442695, %v427_v48  ;;  %v428_v52 = vsub.f32 %v5256_v3, %v424_v62 }
 0x2e8   :  { %4676 = vpow2.f32 %v433_v0  ;;  %v435_v1 = vmul.f32 1.442695, %v428_v52 }
 0x2e9   :  { %4678 = vpow2.f32 %v429_v61  ;;  %v418_v2 = vpop.xlane.xlu0 %417 }
 0x2ea   :  { %v5305_v51 = vpop.eup %4668  ;;  %4680 = vpow2.f32 %v435_v1  ;;  %v426_v4 = vsub.f32 %v5260_v7, %v418_v2 }
 0x2eb   :  { %v5308_v5 = vpop.eup %4670  ;;  %v575_v56 = vpop.xlane.xlu1 %574  ;;  %v289_v63 = vsel %vm258_vm3, %v5305_v51, 0.0 }
 0x2ec   :  { %v5312_v6 = vpop.eup %4672  ;;  %v431_v8 = vmul.f32 1.442695, %v426_v4  ;;  %v581_v3 = vsub.f32 %v5264_v14, %v575_v56  ;;  %290 = vadd.xlane.f32.xlu1 %v289_v63  ;;  %v283_v16 = vsel %vm258_vm3, %v5308_v5, 0.0 }
 0x2ed   :  { %v578_v9 = vpop.xlane.xlu0 %577  ;;  %v292_v10 = vsel %vm258_vm3, %v5312_v6, 0.0 }
 0x2ee   :  { %v5317_v11 = vpop.eup %4674  ;;  %4682 = vpow2.f32 %v431_v8  ;;  %v587_v7 = vmul.f32 1.442695, %v581_v3  ;;  %v582_v13 = vsub.f32 %v5270_v19, %v578_v9  ;;  %293 = vadd.xlane.f32.xlu0 %v292_v10 }
 0x2ef   :  { %v569_v15 = vpop.xlane.xlu1 %568  ;;  %v286_v21 = vsel %vm258_vm3, %v5317_v11, 0.0 }
 0x2f0   :  { %4684 = vpow2.f32 %v587_v7  ;;  %v589_v17 = vmul.f32 1.442695, %v582_v13  ;;  %v579_v14 = vsub.f32 %v5268_v18, %v569_v15  ;;  %284 = vadd.xlane.f32.xlu1 %v283_v16 }
 0x2f1   :  { %v572_v20 = vpop.xlane.xlu0 %571 }
 0x2f2   :  { %v5325_v22 = vpop.eup %4676  ;;  %4686 = vpow2.f32 %v589_v17  ;;  %v583_v24 = vmul.f32 1.442695, %v579_v14  ;;  %v580_v19 = vsub.f32 %v5274_v23, %v572_v20  ;;  %287 = vadd.xlane.f32.xlu0 %v286_v21 }
 0x2f3   :  { %v5328_v25 = vpop.eup %4678  ;;  %v723_v26 = vpop.xlane.xlu1 %722  ;;  %v443_v28 = vsel %vm258_vm3, %v5325_v22, 0.0 }
 0x2f4   :  { %v5332_v29 = vpop.eup %4680  ;;  %4688 = vpow2.f32 %v583_v24  ;;  %v585_v18 = vmul.f32 1.442695, %v580_v19  ;;  %v733_v30 = vsub.f32 %v5278_v27, %v723_v26  ;;  %444 = vadd.xlane.f32.xlu1 %v443_v28  ;;  %v437_v37 = vsel %vm258_vm3, %v5328_v25, 0.0 }
 0x2f5   :  { %v726_v32 = vpop.xlane.xlu0 %725  ;;  %v446_v33 = vsel %vm258_vm3, %v5332_v29, 0.0 }
 0x2f6   :  { %4690 = vpow2.f32 %v585_v18  ;;  %v737_v23 = vmul.f32 1.442695, %v733_v30  ;;  %v734_v34 = vsub.f32 %v5282_v31, %v726_v32  ;;  %447 = vadd.xlane.f32.xlu0 %v446_v33 }
 0x2f7   :  { %v729_v36 = vpop.xlane.xlu1 %728 }
 0x2f8   :  { %v5340_v39 = vpop.eup %4682  ;;  %4692 = vpow2.f32 %v737_v23  ;;  %v739_v40 = vmul.f32 1.442695, %v734_v34  ;;  %v735_v27 = vsub.f32 %v5286_v35, %v729_v36  ;;  %438 = vadd.xlane.f32.xlu1 %v437_v37 }
 0x2f9   :  { %v732_v41 = vpop.xlane.xlu0 %731  ;;  %v440_v43 = vsel %vm258_vm3, %v5340_v39, 0.0 }
 0x2fa   :  { %v5345_v44 = vpop.eup %4684  ;;  %4694 = vpow2.f32 %v739_v40  ;;  %v741_v31 = vmul.f32 1.442695, %v735_v27  ;;  %v736_v45 = vsub.f32 %v5290_v38, %v732_v41  ;;  %441 = vadd.xlane.f32.xlu0 %v440_v43 }
 0x2fb   :  { %v597_v46 = vsel %vm258_vm3, %v5345_v44, 0.0 }
 0x2fc   :  { %v5350_v47 = vpop.eup %4686  ;;  %4696 = vpow2.f32 %v741_v31  ;;  %v743_v49 = vmul.f32 1.442695, %v736_v45  ;;  %598 = vadd.xlane.f32.xlu1 %v597_v46 }
 0x2fd   :  { %v600_v35 = vsel %vm258_vm3, %v5350_v47, 0.0 }
 0x2fe   :  { %v5354_v50 = vpop.eup %4688  ;;  %4698 = vpow2.f32 %v743_v49  ;;  %601 = vadd.xlane.f32.xlu0 %v600_v35 }
 0x2ff   :  { %v591_v53 = vsel %vm258_vm3, %v5354_v50, 0.0 }
 0x300   :  { %v5358_v38 = vpop.eup %4690  ;;  %592 = vadd.xlane.f32.xlu1 %v591_v53 }
 0x301   :  { %v594_v54 = vsel %vm258_vm3, %v5358_v38, 0.0 }
 0x302   :  { %v5362_v55 = vpop.eup %4692  ;;  %595 = vadd.xlane.f32.xlu0 %v594_v54 }
 0x303   :  { %v745_v57 = vsel %vm258_vm3, %v5362_v55, 0.0 }
 0x304   :  { %v5366_v58 = vpop.eup %4694  ;;  %746 = vadd.xlane.f32.xlu1 %v745_v57 }
 0x305   :  { %v748_v59 = vsel %vm258_vm3, %v5366_v58, 0.0 }
 0x306   :  { %v5370_v60 = vpop.eup %4696  ;;  %749 = vadd.xlane.f32.xlu0 %v748_v59 }
 0x307   :  { %v751_v42 = vsel %vm258_vm3, %v5370_v60, 0.0 }
 0x308   :  { %v5374_v48 = vpop.eup %4698  ;;  %752 = vadd.xlane.f32.xlu1 %v751_v42 }
 0x309   :  { %v754_v61 = vsel %vm258_vm3, %v5374_v48, 0.0 }
 0x30a   :  { %755 = vadd.xlane.f32.xlu0 %v754_v61 }
 0x379   :  { %v291_v62 = vpop.xlane.xlu1 %290 }
 0x37a   :  { %4700 = vrcp.f32 %v291_v62 }
 0x37b   :  { %v294_v0 = vpop.xlane.xlu0 %293 }
 0x37c   :  { %4702 = vrcp.f32 %v294_v0 }
 0x37d   :  { %v285_v52 = vpop.xlane.xlu1 %284 }
 0x37e   :  { %4704 = vrcp.f32 %v285_v52 }
 0x37f   :  { %v288_v1 = vpop.xlane.xlu0 %287 }
 0x380   :  { %4706 = vrcp.f32 %v288_v1 }
 0x381   :  { %v445_v2 = vpop.xlane.xlu1 %444 }
 0x383   :  { %v448_v4 = vpop.xlane.xlu0 %447 }
 0x384   :  { %v4701_v7 = vpop.eup %4700 }
 0x385   :  { %v439_v56 = vpop.xlane.xlu1 %438  ;;  %v300_v31 = vmul.f32 %v4701_v7, %v5305_v51 }
 0x386   :  { %4708 = vrcp.f32 %v439_v56  ;;  %v4703_v13 = vpop.eup %4702  ;;  %v865_v56 = vld [vmem:[%s6505_s11 + $0x10] sm:$0xff] }
 0x387   :  { %v442_v63 = vpop.xlane.xlu0 %441  ;;  %4710 = vrcp.f32 %v445_v2 }
 0x388   :  { %4712 = vrcp.f32 %v442_v63  ;;  %v4705_v16 = vpop.eup %4704  ;;  %v866_v63 = vld [vmem:[%s6505_s11 + $0x18] sm:$0xff] }
 0x389   :  { %v599_v8 = vpop.xlane.xlu1 %598  ;;  %4714 = vrcp.f32 %v448_v4  ;;  %v296_v33 = vmul.f32 %v4705_v16, %v5308_v5 }
 0x38a   :  { %v4707_v17 = vpop.eup %4706 }
 0x38b   :  { %v602_v3 = vpop.xlane.xlu0 %601  ;;  %v298_v40 = vmul.f32 %v4707_v17, %v5317_v11 }
 0x38d   :  { %v593_v9 = vpop.xlane.xlu1 %592 }
 0x38e   :  { %4716 = vrcp.f32 %v593_v9 }
 0x38f   :  { %4718 = vrcp.f32 %v599_v8  ;;  %v596_v10 = vpop.xlane.xlu0 %595  ;;  %v870_v8 = vpack.c.bf16 %v866_v63, %v865_v56 }
 0x390   :  { %4720 = vrcp.f32 %v596_v10  ;;  %v4709_v20 = vpop.eup %4708 }
 0x391   :  { %4722 = vrcp.f32 %v602_v3  ;;  %v747_v15 = vpop.xlane.xlu1 %746  ;;  %v4711_v21 = vpop.eup %4710  ;;  %v450_v28 = vmul.f32 %v4709_v20, %v5328_v25 }
 0x392   :  { %4724 = vrcp.f32 %v747_v15  ;;  %v4713_v19 = vpop.eup %4712  ;;  %v454_v27 = vmul.f32 %v4711_v21, %v5325_v22  ;;  %v4182_v21 = vld [vmem:[%s6506_s6] ss:$0 sm:$0xff]  ;;  %s6513_s6 = sld [smem:[#allocation21_spill]] }
 0x393   :  { %v750_v14 = vpop.xlane.xlu0 %749  ;;  %v4715_v26 = vpop.eup %4714  ;;  %v452_v23 = vmul.f32 %v4713_v19, %v5340_v39  ;;  %v457_v41 = vadd.f32 %v450_v28, %v296_v33 }
 0x394   :  { %4726 = vrcp.f32 %v750_v14  ;;  %v456_v45 = vmul.f32 %v4715_v26, %v5332_v29  ;;  %v459_v22 = vadd.f32 %v454_v27, %v300_v31 }
 0x395   :  { %v753_v24 = vpop.xlane.xlu1 %752  ;;  %v458_v46 = vadd.f32 %v452_v23, %v298_v40 }
 0x396   :  { %4728 = vrcp.f32 %v753_v24 }
 0x397   :  { %v756_v18 = vpop.xlane.xlu0 %755 }
 0x398   :  { %v4717_v30 = vpop.eup %4716  ;;  %4730 = vrcp.f32 %v756_v18 }
 0x399   :  { %v4719_v32 = vpop.eup %4718  ;;  %v604_v34 = vmul.f32 %v4717_v30, %v5354_v50  ;;  %v302_v50 = vmul.f32 %v4703_v13, %v5312_v6 }
 0x39a   :  { %v4721_v36 = vpop.eup %4720  ;;  %v608_v5 = vmul.f32 %v4719_v32, %v5345_v44 }
 0x39b   :  { %v4723_v37 = vpop.eup %4722  ;;  %v606_v43 = vmul.f32 %v4721_v36, %v5358_v38  ;;  %v611_v39 = vadd.f32 %v604_v34, %v457_v41  ;;  %v460_v51 = vadd.f32 %v456_v45, %v302_v50 }
 0x39c   :  { %v4725_v25 = vpop.eup %4724  ;;  %v610_v11 = vmul.f32 %v4723_v37, %v5350_v47  ;;  %v613_v59 = vadd.f32 %v608_v5, %v459_v22 }
 0x39d   :  { %v758_v49 = vmul.f32 %v4725_v25, %v5362_v55  ;;  %v612_v53 = vadd.f32 %v606_v43, %v458_v46 }
 0x39e   :  { %v4727_v35 = vpop.eup %4726  ;;  %v614_v61 = vadd.f32 %v610_v11, %v460_v51 }
 0x39f   :  { %v760_v38 = vmul.f32 %v4727_v35, %v5366_v58  ;;  %v765_v54 = vadd.f32 %v758_v49, %v611_v39 }
 0x3a0   :  { %v4729_v57 = vpop.eup %4728 }
 0x3a1   :  { %v762_v29 = vmul.f32 %v4729_v57, %v5370_v60  ;;  %v766_v42 = vadd.f32 %v760_v38, %v612_v53  ;;  %v769_v62 = vmul.f32 0.25, %v765_v54  ;;  %v863_v60 = vld [vmem:[%s6505_s11] sm:$0xff] }
 0x3a2   :  { %v4731_v44 = vpop.eup %4730 }
 0x3a3   :  { %v764_v55 = vmul.f32 %v4731_v44, %v5374_v48  ;;  %v770_v0 = vmul.f32 0.25, %v766_v42  ;;  %v767_v6 = vadd.f32 %v762_v29, %v613_v59  ;;  %v864_v48 = vld [vmem:[%s6505_s11 + $0x8] sm:$0xff] }
 0x3a4   :  { %v869_v4 = vpack.c.bf16 %v864_v48, %v863_v60 }
 0x3a5   :  { %v773_v52 = vpack.c.bf16 %v770_v0, %v769_v62  ;;  %v768_v47 = vadd.f32 %v764_v55, %v614_v61  ;;  %v771_v1 = vmul.f32 0.25, %v767_v6 }
 0x3a6   :  { %4443 = vmatprep.subr.bf16.mxu1 %v869_v4 }
 0x3a7   :  { %4434 = vmatmul.mubr.msk.bf16.vlgmr.msra.gmra.mrb[16].mxu1 %vm258_vm3, %v773_v52  ;;  %v772_v58 = vmul.f32 0.25, %v768_v47 }
 0x3a8   :  { %4444 = vmatpush3.bf16.msra.mxu1 %v869_v4 }
 0x3a9   :  { %v774_v2 = vpack.c.bf16 %v772_v58, %v771_v1  ;;  %4445 = vmatprep.subr.bf16.mxu1 %v870_v8 }
 0x3ab   :  { %4440 = vmatmul.mubr.msk.bf16.vlgmr.msra.gmra.mrb[20].mxu0 %vm258_vm3, %v774_v2 }
 0x3ac   :  { %4453 = vmatprep.mubr.msk.bf16.mxu0 %vm6489_vm1, %v4980_v12  ;;  %4446 = vmatpush3.bf16.msra.mxu1 %v870_v8 }
 0x3ad   :  { %4457 = vmatprep.subr.bf16.mxu1 %v4980_v12 }
 0x47a   :  { %v812_v3 = vpop.f32.mrb[16].mxu1 }
 0x47b   :  { %v4435_v9 = vpop.f32.mrb[17].mxu1 }
 0x47c   :  { %v815_v10 = vpop.f32.mrb[18].mxu1 }
 0x47d   :  { %v867_v7 = vpack.c.bf16 %v815_v10, %v812_v3  ;;  %v4436_v13 = vpop.f32.mrb[19].mxu1 }
 0x47e   :  { %v856_v15 = vpop.f32.mrb[20].mxu0  ;;  %v1154_v13 = vld [vmem:[%s6507_s3] sm:$0xff] }
 0x47f   :  { %v4441_v16 = vpop.f32.mrb[21].mxu0  ;;  %4447 = vmatprep.mubr.msk.bf16.mxu1 %vm6487_vm0, %v867_v7 }
 0x480   :  { %v859_v17 = vpop.f32.mrb[22].mxu0 }
 0x481   :  { %v868_v14 = vpack.c.bf16 %v859_v17, %v856_v15  ;;  %v4442_v20 = vpop.f32.mrb[23].mxu0  ;;  %v1155_v15 = vld [vmem:[%s6507_s3 + $0x8] sm:$0xff]  ;;  %v1146_v17 = vld [vmem:[%s6508_s1] sm:$0xff]  ;;  %s6514_s3 = sld [smem:[#allocation23_spill]] }
 0x482   :  { %v1158_v16 = vpack.c.bf16 %v1155_v15, %v1154_v13  ;;  %v1147_v20 = vld [vmem:[%s6508_s1 + $0x8] sm:$0xff] }
 0x483   :  { %4448 = vmatmul.mubr.msk.bf16.vlgmr.msra.gmra.mrb[20].mxu1 %vm6487_vm0, %v868_v14 }
 0x484   :  { %4459 = vmatprep.mubr.msk.bf16.mxu1 %vm6489_vm1, %v4980_v12 }
 0x556   :  { %v4449_v24 = vpop.f32.mrb[20].mxu1 }
 0x557   :  { %v927_v19 = vadd.f32 %v4449_v24, %v4182_v21  ;;  %v918_v26 = vpop.f32.mrb[21].mxu1 }
 0x558   :  { %v919_v28 = vadd.f32 %v4182_v21, %v918_v26  ;;  %v4450_v18 = vpop.f32.mrb[22].mxu1  ;;  %v1148_v26 = vld [vmem:[%s6508_s1 + $0x10] sm:$0xff] }
 0x559   :  { %v4187_v30 = vmul.f32 -1.442695, %v927_v19  ;;  %v930_v32 = vadd.f32 %v4450_v18, %v4182_v21  ;;  %v921_v33 = vpop.f32.mrb[23].mxu1  ;;  %v1149_v18 = vld [vmem:[%s6508_s1 + $0x18] sm:$0xff] }
 0x55a   :  { %v4185_v23 = vmul.f32 -1.442695, %v919_v28  ;;  %v922_v34 = vadd.f32 %v4182_v21, %v921_v33 }
 0x55b   :  { %4732 = vpow2.f32 %v4187_v30  ;;  %v4188_v36 = vmul.f32 -1.442695, %v930_v32 }
 0x55c   :  { %4734 = vpow2.f32 %v4185_v23  ;;  %v4186_v37 = vmul.f32 -1.442695, %v922_v34 }
 0x55d   :  { %4736 = vpow2.f32 %v4188_v36  ;;  %v1280_v36 = vld [vmem:[%s6509_s8] sm:$0xff] }
 0x55e   :  { %4738 = vpow2.f32 %v4186_v37  ;;  %v1281_v37 = vld [vmem:[%s6509_s8 + $0x8] sm:$0xff] }
 0x565   :  { %v4733_v40 = vpop.eup %4732 }
 0x566   :  { %v4735_v27 = vpop.eup %4734  ;;  %v947_v41 = vadd.f32 1.0, %v4733_v40  ;;  %v1284_v40 = vpack.c.bf16 %v1281_v37, %v1280_v36 }
 0x567   :  { %v4737_v43 = vpop.eup %4736  ;;  %v945_v25 = vadd.f32 1.0, %v4735_v27  ;;  %v4195_v27 = vld [vmem:[%s6510_s2] ss:$0 sm:$0xff] }
 0x568   :  { %v4739_v31 = vpop.eup %4738  ;;  %4740 = vrcp.f32 %v947_v41  ;;  %v948_v45 = vadd.f32 1.0, %v4737_v43 }
 0x569   :  { %4742 = vrcp.f32 %v945_v25  ;;  %v946_v46 = vadd.f32 1.0, %v4739_v31 }
 0x56a   :  { %4744 = vrcp.f32 %v948_v45 }
 0x56b   :  { %4746 = vrcp.f32 %v946_v46 }
 0x572   :  { %v4741_v5 = vpop.eup %4740 }
 0x573   :  { %v4743_v39 = vpop.eup %4742 }
 0x574   :  { %v4745_v49 = vpop.eup %4744 }
 0x575   :  { %v4747_v35 = vpop.eup %4746  ;;  %v958_v50 = vpack.c.bf16 %v4745_v49, %v4741_v5 }
 0x576   :  { %v957_v11 = vpack.c.bf16 %v4747_v35, %v4743_v39 }
 0x577   :  { %v1004_v22 = vsel %vm156_vm2, %v958_v50, 0 }
 0x578   :  { %4458 = vmatpush3.bf16.xpose.msra.mxu1 %v1004_v22  ;;  %v960_v53 = vsel %vm156_vm2, %v957_v11, 0 }
 0x579   :  { %4452 = vmatpush3.bf16.xpose.msra.mxu0 %v960_v53  ;;  %4469 = vmatprep.subr.bf16.mxu1 %v1284_v40 }
 0x57a   :  { %4463 = vmatprep.subr.bf16.mxu0 %v1158_v16 }
 0x57f   :  { %4460 = vmatmul.mubr.msk.bf16.vlgmr.msra.gmra.mrb[24].mxu1 %vm156_vm2, %v958_v50 }
 0x580   :  { %4454 = vmatmul.mubr.msk.bf16.vlgmr.msra.gmra.mrb[24].mxu0 %vm156_vm2, %v957_v11  ;;  %4470 = vmatpush3.bf16.msra.mxu1 %v1284_v40 }
 0x581   :  { %4464 = vmatpush3.bf16.msra.mxu0 %v1158_v16 }
 0x652   :  { %v1040_v38 = vpop.f32.mrb[24].mxu1 }
 0x653   :  { %v4193_v54 = vmul.f32 -1.442695, %v1040_v38  ;;  %v996_v57 = vpop.f32.mrb[24].mxu0  ;;  %v4461_v51 = vpop.f32.mrb[25].mxu1 }
 0x654   :  { %v4191_v59 = vmul.f32 -1.442695, %v996_v57  ;;  %v4455_v29 = vpop.f32.mrb[25].mxu0  ;;  %v1043_v42 = vpop.f32.mrb[26].mxu1 }
 0x655   :  { %4748 = vpow2.f32 %v4193_v54  ;;  %v4194_v44 = vmul.f32 -1.442695, %v1043_v42  ;;  %v999_v61 = vpop.f32.mrb[26].mxu0  ;;  %v4462_v55 = vpop.f32.mrb[27].mxu1 }
 0x656   :  { %4750 = vpow2.f32 %v4191_v59  ;;  %v4192_v62 = vmul.f32 -1.442695, %v999_v61  ;;  %v4456_v0 = vpop.f32.mrb[27].mxu0 }
 0x657   :  { %4752 = vpow2.f32 %v4194_v44 }
 0x658   :  { %4754 = vpow2.f32 %v4192_v62 }
 0x65f   :  { %v4749_v6 = vpop.eup %4748 }
 0x660   :  { %v4751_v52 = vpop.eup %4750  ;;  %v1061_v47 = vadd.f32 1.0, %v4749_v6 }
 0x661   :  { %v4753_v1 = vpop.eup %4752  ;;  %v1059_v58 = vadd.f32 1.0, %v4751_v52 }
 0x662   :  { %v4755_v2 = vpop.eup %4754  ;;  %4756 = vrcp.f32 %v1061_v47  ;;  %v1062_v60 = vadd.f32 1.0, %v4753_v1 }
 0x663   :  { %4758 = vrcp.f32 %v1059_v58  ;;  %v1060_v48 = vadd.f32 1.0, %v4755_v2 }
 0x664   :  { %4760 = vrcp.f32 %v1062_v60 }
 0x665   :  { %4762 = vrcp.f32 %v1060_v48 }
 0x66c   :  { %v5422_v4 = vpop.eup %4756 }
 0x66d   :  { %v5424_v56 = vpop.eup %4758  ;;  %1073 = vst.msk [vmem:[#allocation7 + $0x10] sm:$0xff] %vm258_vm3, %v5422_v4  ;;  %v1081_v10 = vsel %vm258_vm3, %v5422_v4, 0.0 }
 0x66e   :  { %v5428_v63 = vpop.eup %4760  ;;  %1071 = vst.msk [vmem:[#allocation7] sm:$0xff] %vm258_vm3, %v5424_v56  ;;  %v1075_v8 = vsel %vm258_vm3, %v5424_v56, 0.0 }
 0x66f   :  { %v5434_v3 = vpop.eup %4762  ;;  %1074 = vst.msk [vmem:[#allocation7 + $0x18] sm:$0xff] %vm258_vm3, %v5428_v63  ;;  %1076 = vadd.xlane.f32.xlu1 %v1075_v8  ;;  %v1084_v7 = vsel %vm258_vm3, %v5428_v63, 0.0 }
 0x670   :  { %1072 = vst.msk [vmem:[#allocation7 + $0x8] sm:$0xff] %vm258_vm3, %v5434_v3  ;;  %v1078_v9 = vsel %vm258_vm3, %v5434_v3, 0.0 }
 0x671   :  { %1079 = vadd.xlane.f32.xlu0 %v1078_v9 }
 0x673   :  { %1082 = vadd.xlane.f32.xlu1 %v1081_v10 }
 0x675   :  { %1085 = vadd.xlane.f32.xlu0 %v1084_v7 }
 0x6fc   :  { %v5455_v14 = vpop.xlane.xlu1 %1076 }
 0x6fd   :  { %v1150_v24 = vmul.f32 %v1146_v17, %v5455_v14 }
 0x6fe   :  { %v5460_v21 = vpop.xlane.xlu0 %1079 }
 0x6ff   :  { %v1151_v19 = vmul.f32 %v1147_v20, %v5460_v21 }
 0x700   :  { %v5467_v28 = vpop.xlane.xlu1 %1082 }
 0x701   :  { %v1156_v30 = vpack.c.bf16 %v1151_v19, %v1150_v24  ;;  %v1152_v33 = vmul.f32 %v1148_v26, %v5467_v28 }
 0x702   :  { %v5472_v32 = vpop.xlane.xlu0 %1085 }
 0x703   :  { %v1153_v23 = vmul.f32 %v1149_v18, %v5472_v32  ;;  %4465 = vmatprep.mubr.msk.bf16.mxu0 %vm258_vm3, %v1156_v30 }
 0x705   :  { %v1157_v34 = vpack.c.bf16 %v1153_v23, %v1152_v33 }
 0x707   :  { %4466 = vmatmul.mubr.msk.bf16.vlgmr.msra.gmra.mrb[28].mxu0 %vm258_vm3, %v1157_v34 }
 0x7da   :  { %v4467_v41 = vpop.f32.mrb[28].mxu0 }
 0x7db   :  { %v1215_v43 = vadd.f32 %v4467_v41, %v4195_v27  ;;  %v1206_v25 = vpop.f32.mrb[29].mxu0 }
 0x7dc   :  { %v1207_v31 = vadd.f32 %v4195_v27, %v1206_v25  ;;  %v4468_v45 = vpop.f32.mrb[30].mxu0 }
 0x7dd   :  { %v1218_v46 = vadd.f32 %v4468_v45, %v4195_v27  ;;  %v1209_v5 = vpop.f32.mrb[31].mxu0  ;;  %v1227_v39 = vmul.f32 0.2, %v1215_v43  ;;  %vm1223_vm5 = vcmp.ge.f32.partialorder %v1215_v43, 0.0 }
 0x7de   :  { %vm1221_vm4 = vcmp.ge.f32.partialorder %v1207_v31, 0.0  ;;  %v1225_v49 = vmul.f32 0.2, %v1207_v31  ;;  %v1210_v35 = vadd.f32 %v4195_v27, %v1209_v5 }
 0x7df   :  { %v1228_v11 = vmul.f32 0.2, %v1218_v46  ;;  %vm1224_vm7 = vcmp.ge.f32.partialorder %v1218_v46, 0.0  ;;  %v1231_v53 = vsel %vm1223_vm5, %v1215_v43, %v1227_v39  ;;  %vm1703_vm5 = vcmask 122880  }
 0x7e0   :  { %v1229_v50 = vsel %vm1221_vm4, %v1207_v31, %v1225_v49  ;;  %vm1222_vm6 = vcmp.ge.f32.partialorder %v1210_v35, 0.0  ;;  %v1226_v22 = vmul.f32 0.2, %v1210_v35  ;;  %v1236_v29 = vsel %vm258_vm3, %v1231_v53, 0.0 }
 0x7e1   :  { %v1233_v54 = vsel %vm258_vm3, %v1229_v50, 0.0  ;;  %v1232_v51 = vsel %vm1224_vm7, %v1218_v46, %v1228_v11  ;;  %vm6488_vm4 = vcmask 523264  }
 0x7e2   :  { %v1230_v38 = vsel %vm1222_vm6, %v1210_v35, %v1226_v22  ;;  %v1238_v44 = vsel %vm258_vm3, %v1232_v51, 0.0  ;;  %v1409_v35 = vld [vmem:[%s6511_s0] sm:$0xff] }
 0x7e3   :  { %v1234_v57 = vsel %vm258_vm3, %v1230_v38, 0.0  ;;  %v1577_v22 = vld [vmem:[%s6460_s13] sm:$0xff] }
 0x7e4   :  { %v1235_v59 = vadd.f32 %v1234_v57, %v1233_v54  ;;  %v1488_v54 = vld [vmem:[%s6512_s7] sm:$0xff]  ;;  %v1489_v57 = vld [vmem:[%s6512_s7 + $0x8] sm:$0xff] }
 0x7e6   :  { %v1237_v42 = vadd.f32 %v1236_v29, %v1235_v59  ;;  %v4198_v59 = vld [vmem:[%s6513_s6] ss:$0 sm:$0xff] }
 0x7e8   :  { %v1239_v61 = vadd.f32 %v1238_v44, %v1237_v42 }
 0x7ea   :  { %v1240_v55 = vrot.slane %v1239_v61, 4 }
 0x7ec   :  { %v1241_v62 = vadd.f32 %v1240_v55, %v1239_v61 }
 0x7ee   :  { %v1242_v0 = vrot.slane %v1241_v62, 2 }
 0x7f0   :  { %v1243_v6 = vadd.f32 %v1242_v0, %v1241_v62 }
 0x7f2   :  { %v1244_v52 = vrot.slane %v1243_v6, 1 }
 0x7f4   :  { %v1245_v47 = vadd.f32 %v1244_v52, %v1243_v6 }
 0x7f6   :  { %v1247_v1 = vmul.f32 0.03125, %v1245_v47 }
 0x7f8   :  { %v1248_v58 = vsub.f32 %v1229_v50, %v1247_v1  ;;  %v1249_v2 = vsub.f32 %v1230_v38, %v1247_v1  ;;  %v1250_v60 = vsub.f32 %v1231_v53, %v1247_v1  ;;  %v1251_v48 = vsub.f32 %v1232_v51, %v1247_v1  ;;  %v1410_v50 = vld [vmem:[%s6511_s0 + $0x8] sm:$0xff] }
 0x7f9   :  { %v1413_v11 = vpack.c.bf16 %v1410_v50, %v1409_v35  ;;  %v1578_v53 = vld [vmem:[%s6460_s13 + $0x8] sm:$0xff]  ;;  %v1498_v51 = vpack.c.bf16 %v1489_v57, %v1488_v54 }
 0x7fa   :  { %v1252_v8 = vmul.f32 %v1248_v58, %v1248_v58  ;;  %v1253_v9 = vmul.f32 %v1249_v2, %v1249_v2  ;;  %v1254_v10 = vmul.f32 %v1250_v60, %v1250_v60  ;;  %v1255_v7 = vmul.f32 %v1251_v48, %v1251_v48 }
 0x7fb   :  { %4475 = vmatprep.subr.bf16.mxu0 %v1413_v11  ;;  %v5513_v38 = vpack.c.bf16 %v1578_v53, %v1577_v22  ;;  %4481 = vmatprep.subr.bf16.mxu1 %v1498_v51 }
 0x7fc   :  { %v1256_v13 = vsel %vm258_vm3, %v1252_v8, 0.0  ;;  %v1257_v15 = vsel %vm258_vm3, %v1253_v9, 0.0  ;;  %v1259_v17 = vsel %vm258_vm3, %v1254_v10, 0.0  ;;  %v1261_v24 = vsel %vm258_vm3, %v1255_v7, 0.0  ;;  %4476 = vmatpush3.bf16.msra.mxu0 %v1413_v11 }
 0x7fd   :  { %v1258_v16 = vadd.f32 %v1257_v15, %v1256_v13  ;;  %4493 = vmatprep.subr.bf16.mxu0 %v5513_v38 }
 0x7ff   :  { %v1260_v20 = vadd.f32 %v1259_v17, %v1258_v16 }
 0x801   :  { %v1262_v19 = vadd.f32 %v1261_v24, %v1260_v20 }
 0x803   :  { %v1263_v26 = vrot.slane %v1262_v19, 4 }
 0x805   :  { %v1264_v18 = vadd.f32 %v1263_v26, %v1262_v19 }
 0x807   :  { %v1265_v30 = vrot.slane %v1264_v18, 2 }
 0x809   :  { %v1266_v33 = vadd.f32 %v1265_v30, %v1264_v18 }
 0x80b   :  { %v1267_v23 = vrot.slane %v1266_v33, 1 }
 0x80d   :  { %v1268_v34 = vadd.f32 %v1267_v23, %v1266_v33 }
 0x80f   :  { %v1269_v36 = vmul.f32 0.03125, %v1268_v34 }
 0x811   :  { %v1270_v37 = vadd.f32 1e-05, %v1269_v36 }
 0x813   :  { %4764 = vrsqrt.f32 %v1270_v37 }
 0x81d   :  { %v4765_v40 = vpop.eup %4764 }
 0x81e   :  { %v1273_v27 = vmul.f32 %v4765_v40, %v1249_v2  ;;  %v1272_v41 = vmul.f32 %v4765_v40, %v1248_v58  ;;  %v1274_v43 = vmul.f32 %v4765_v40, %v1250_v60  ;;  %v1275_v25 = vmul.f32 %v4765_v40, %v1251_v48 }
 0x820   :  { %v1276_v31 = vmul.f32 %v1272_v41, %v5455_v14  ;;  %v1277_v45 = vmul.f32 %v1273_v27, %v5460_v21  ;;  %v1278_v46 = vmul.f32 %v1274_v43, %v5467_v28  ;;  %v1279_v5 = vmul.f32 %v1275_v25, %v5472_v32 }
 0x822   :  { %v1282_v39 = vpack.c.bf16 %v1277_v45, %v1276_v31  ;;  %v1283_v49 = vpack.c.bf16 %v1279_v5, %v1278_v46 }
 0x824   :  { %4471 = vmatprep.mubr.msk.bf16.mxu1 %vm258_vm3, %v1282_v39 }
 0x825   :  { %4472 = vmatmul.mubr.msk.bf16.vlgmr.msra.gmra.mrb[28].mxu1 %vm258_vm3, %v1283_v49 }
 0x826   :  { %4482 = vmatpush3.bf16.msra.mxu1 %v1498_v51 }
 0x8f8   :  { %v4473_v29 = vpop.f32.mrb[28].mxu1 }
 0x8f9   :  { %v1341_v42 = vadd.f32 %v4473_v29, %v4198_v59  ;;  %v1332_v44 = vpop.f32.mrb[29].mxu1 }
 0x8fa   :  { %v1333_v61 = vadd.f32 %v4198_v59, %v1332_v44  ;;  %v4474_v55 = vpop.f32.mrb[30].mxu1 }
 0x8fb   :  { %vm1349_vm8 = vcmp.ge.f32.partialorder %v1341_v42, 0.0  ;;  %v1353_v62 = vmul.f32 0.2, %v1341_v42  ;;  %v1344_v0 = vadd.f32 %v4474_v55, %v4198_v59  ;;  %v1335_v6 = vpop.f32.mrb[31].mxu1 }
 0x8fc   :  { %vm1347_vm9 = vcmp.ge.f32.partialorder %v1333_v61, 0.0  ;;  %v1351_v52 = vmul.f32 0.2, %v1333_v61  ;;  %v1336_v47 = vadd.f32 %v4198_v59, %v1335_v6 }
 0x8fd   :  { %vm1350_vm10 = vcmp.ge.f32.partialorder %v1344_v0, 0.0  ;;  %v1354_v1 = vmul.f32 0.2, %v1344_v0  ;;  %v1357_v58 = vsel %vm1349_vm8, %v1341_v42, %v1353_v62 }
 0x8fe   :  { %v1355_v2 = vsel %vm1347_vm9, %v1333_v61, %v1351_v52  ;;  %vm1348_vm11 = vcmp.ge.f32.partialorder %v1336_v47, 0.0  ;;  %v1352_v60 = vmul.f32 0.2, %v1336_v47  ;;  %v1361_v10 = vadd.f32 %v1357_v58, %v1274_v43 }
 0x8ff   :  { %v1359_v48 = vadd.f32 %v1355_v2, %v1272_v41  ;;  %v1358_v8 = vsel %vm1350_vm10, %v1344_v0, %v1354_v1 }
 0x900   :  { %v1356_v9 = vsel %vm1348_vm11, %v1336_v47, %v1352_v60  ;;  %v1362_v15 = vadd.f32 %v1358_v8, %v1275_v25  ;;  %v1366_v20 = vsel %vm258_vm3, %v1361_v10, 0.0 }
 0x901   :  { %v1360_v7 = vadd.f32 %v1356_v9, %v1273_v27  ;;  %v1363_v13 = vsel %vm258_vm3, %v1359_v48, 0.0  ;;  %v1490_v9 = vld [vmem:[%s6512_s7 + $0x10] sm:$0xff] }
 0x902   :  { %v1368_v19 = vsel %vm258_vm3, %v1362_v15, 0.0 }
 0x903   :  { %v1364_v16 = vsel %vm258_vm3, %v1360_v7, 0.0 }
 0x904   :  { %v1365_v17 = vadd.f32 %v1364_v16, %v1363_v13  ;;  %v1493_v13 = vld [vmem:[%s6512_s7 + $0x28] sm:$0xff]  ;;  %v1494_v16 = vld [vmem:[%s6512_s7 + $0x30] sm:$0xff] }
 0x906   :  { %v1367_v24 = vadd.f32 %v1366_v20, %v1365_v17  ;;  %v1495_v17 = vld [vmem:[%s6512_s7 + $0x38] sm:$0xff] }
 0x907   :  { %v1501_v20 = vpack.c.bf16 %v1495_v17, %v1494_v16 }
 0x908   :  { %v1369_v26 = vadd.f32 %v1368_v19, %v1367_v24  ;;  %v4201_v24 = vld [vmem:[%s6514_s3] ss:$0 sm:$0xff] }
 0x90a   :  { %v1370_v18 = vrot.slane %v1369_v26, 4 }
 0x90c   :  { %v1371_v30 = vadd.f32 %v1370_v18, %v1369_v26 }
 0x90e   :  { %v1372_v33 = vrot.slane %v1371_v30, 2 }
 0x910   :  { %v1373_v23 = vadd.f32 %v1372_v33, %v1371_v30 }
 0x912   :  { %v1374_v34 = vrot.slane %v1373_v23, 1 }
 0x914   :  { %v1375_v36 = vadd.f32 %v1374_v34, %v1373_v23 }
 0x916   :  { %v1376_v37 = vmul.f32 0.03125, %v1375_v36 }
 0x918   :  { %v1377_v40 = vsub.f32 %v1359_v48, %v1376_v37  ;;  %v1378_v27 = vsub.f32 %v1360_v7, %v1376_v37  ;;  %v1379_v41 = vsub.f32 %v1361_v10, %v1376_v37  ;;  %v1380_v43 = vsub.f32 %v1362_v15, %v1376_v37  ;;  %v1491_v10 = vld [vmem:[%s6512_s7 + $0x18] sm:$0xff] }
 0x919   :  { %v1499_v7 = vpack.c.bf16 %v1491_v10, %v1490_v9 }
 0x91a   :  { %v1381_v25 = vmul.f32 %v1377_v40, %v1377_v40  ;;  %v1382_v31 = vmul.f32 %v1378_v27, %v1378_v27  ;;  %v1383_v45 = vmul.f32 %v1379_v41, %v1379_v41  ;;  %v1384_v46 = vmul.f32 %v1380_v43, %v1380_v43 }
 0x91b   :  { %4483 = vmatprep.subr.bf16.mxu1 %v1499_v7 }
 0x91c   :  { %v1385_v5 = vsel %vm258_vm3, %v1381_v25, 0.0  ;;  %v1386_v39 = vsel %vm258_vm3, %v1382_v31, 0.0  ;;  %v1388_v35 = vsel %vm258_vm3, %v1383_v45, 0.0  ;;  %v1390_v11 = vsel %vm258_vm3, %v1384_v46, 0.0  ;;  %4484 = vmatpush3.bf16.msra.mxu1 %v1499_v7 }
 0x91d   :  { %v1387_v49 = vadd.f32 %v1386_v39, %v1385_v5 }
 0x91f   :  { %v1389_v50 = vadd.f32 %v1388_v35, %v1387_v49 }
 0x921   :  { %v1391_v22 = vadd.f32 %v1390_v11, %v1389_v50  ;;  %v1946_v11 = vld [vmem:[%s6463_s16] sm:$0xff] }
 0x923   :  { %v1392_v53 = vrot.slane %v1391_v22, 4 }
 0x925   :  { %v1393_v54 = vadd.f32 %v1392_v53, %v1391_v22  ;;  %v1947_v22 = vld [vmem:[%s6463_s16 + $0x8] sm:$0xff]  ;;  %v1702_v53 = vld [vmem:[%s6462_s15] sm:$0x1] }
 0x926   :  { %1704 = vst.msk [vmem:[#allocation2] sm:$0x1] %vm1703_vm5, %v1702_v53  ;;  %1705 = vst.msk [vmem:[#allocation2 + $0x18] sm:$0x1] %vm1703_vm5, %v1702_v53  ;;  %vm2828_vm5 = vcmask 138240  }
 0x927   :  { %v1394_v57 = vrot.slane %v1393_v54, 2 }
 0x929   :  { %v1395_v51 = vadd.f32 %v1394_v57, %v1393_v54  ;;  %v2167_v54 = vpack.c.bf16 %v1947_v22, %v1946_v11  ;;  %v4207_v57 = vld [vmem:[%s6461_s14] ss:$0 sm:$0xff]  ;;  %s6516_s14 = smov 104  }
 0x92b   :  { %v1396_v59 = vrot.slane %v1395_v51, 1 }
 0x92d   :  { %v1397_v29 = vadd.f32 %v1396_v59, %v1395_v51 }
 0x92f   :  { %v1398_v42 = vmul.f32 0.03125, %v1397_v29 }
 0x931   :  { %v1399_v44 = vadd.f32 1e-05, %v1398_v42 }
 0x933   :  { %4766 = vrsqrt.f32 %v1399_v44  ;;  %v4204_v44 = vld [vmem:[%s6459_s12] ss:$0 sm:$0xff]  ;;  %s6515_s12 = smov 72  }
 0x93d   :  { %v4767_v61 = vpop.eup %4766 }
 0x93e   :  { %v1402_v55 = vmul.f32 %v4767_v61, %v1378_v27  ;;  %v1401_v62 = vmul.f32 %v4767_v61, %v1377_v40  ;;  %v1403_v0 = vmul.f32 %v4767_v61, %v1379_v41  ;;  %v1404_v6 = vmul.f32 %v4767_v61, %v1380_v43 }
 0x940   :  { %v1405_v52 = vmul.f32 %v1401_v62, %v5455_v14  ;;  %v1406_v47 = vmul.f32 %v1402_v55, %v5460_v21  ;;  %v1407_v1 = vmul.f32 %v1403_v0, %v5467_v28  ;;  %v1408_v58 = vmul.f32 %v1404_v6, %v5472_v32 }
 0x941   :  { %v1579_v2 = vpack.c.bf16 %v1402_v55, %v1401_v62  ;;  %v1580_v60 = vpack.c.bf16 %v1404_v6, %v1403_v0 }
 0x942   :  { %v1411_v48 = vpack.c.bf16 %v1406_v47, %v1405_v52  ;;  %v1412_v8 = vpack.c.bf16 %v1408_v58, %v1407_v1 }
 0x944   :  { %4477 = vmatprep.mubr.msk.bf16.mxu0 %vm258_vm3, %v1411_v48 }
 0x945   :  { %4478 = vmatmul.mubr.msk.bf16.vlgmr.msra.gmra.mrb[32].mxu0 %vm258_vm3, %v1412_v8 }
 0x946   :  { %4495 = vmatprep.mubr.msk.bf16.mxu0 %vm258_vm3, %v1579_v2  ;;  %4494 = vmatpush3.bf16.msra.mxu0 %v5513_v38  ;;  %v1492_v38 = vld [vmem:[%s6512_s7 + $0x20] sm:$0xff] }
 0x947   :  { %4499 = vmatprep.subr.bf16.mxu0 %v4980_v12  ;;  %v1500_v15 = vpack.c.bf16 %v1493_v13, %v1492_v38 }
 0x949   :  { %4485 = vmatprep.subr.bf16.mxu1 %v1500_v15 }
 0x94a   :  { %4486 = vmatpush3.bf16.msra.mxu1 %v1500_v15 }
 0x94b   :  { %4487 = vmatprep.subr.bf16.mxu1 %v1501_v20 }
 0x94d   :  { %4496 = vmatmul.mubr.msk.bf16.vlgmr.msra.gmra.mrb[36].mxu0 %vm258_vm3, %v1580_v60 }
 0x94e   :  { %4501 = vmatprep.mubr.msk.bf16.mxu0 %vm6489_vm1, %v4980_v12  ;;  %4488 = vmatpush3.bf16.msra.mxu1 %v1501_v20 }
 0x94f   :  { %4500 = vmatpush3.bf16.msra.mxu0 %v2167_v54 }
 0xa18   :  { %v4479_v19 = vpop.f32.mrb[32].mxu0 }
 0xa19   :  { %v1470_v26 = vadd.f32 %v4479_v19, %v4201_v24  ;;  %v1461_v18 = vpop.f32.mrb[33].mxu0 }
 0xa1a   :  { %v1462_v30 = vadd.f32 %v4201_v24, %v1461_v18  ;;  %v4480_v33 = vpop.f32.mrb[34].mxu0 }
 0xa1b   :  { %v1482_v23 = vmul.f32 0.2, %v1470_v26  ;;  %v1473_v34 = vadd.f32 %v4480_v33, %v4201_v24  ;;  %v1464_v36 = vpop.f32.mrb[35].mxu0  ;;  %vm1478_vm12 = vcmp.ge.f32.partialorder %v1470_v26, 0.0 }
 0xa1c   :  { %v1480_v37 = vmul.f32 0.2, %v1462_v30  ;;  %v1465_v40 = vadd.f32 %v4201_v24, %v1464_v36  ;;  %vm1476_vm13 = vcmp.ge.f32.partialorder %v1462_v30, 0.0 }
 0xa1d   :  { %vm1479_vm14 = vcmp.ge.f32.partialorder %v1473_v34, 0.0  ;;  %v1483_v27 = vmul.f32 0.2, %v1473_v34  ;;  %v1486_v43 = vsel %vm1478_vm12, %v1470_v26, %v1482_v23 }
 0xa1e   :  { %vm1477_vm15 = vcmp.ge.f32.partialorder %v1465_v40, 0.0  ;;  %v1481_v41 = vmul.f32 0.2, %v1465_v40  ;;  %v1484_v31 = vsel %vm1476_vm13, %v1462_v30, %v1480_v37 }
 0xa1f   :  { %v1487_v25 = vsel %vm1479_vm14, %v1473_v34, %v1483_v27  ;;  %vm3591_vm14 = vcmask 1040384  }
 0xa20   :  { %v1497_v45 = vpack.c.bf16 %v1487_v25, %v1486_v43  ;;  %v1485_v46 = vsel %vm1477_vm15, %v1465_v40, %v1481_v41  ;;  %v4497_v5 = vpop.f32.mrb[36].mxu0  ;;  %vm2835_vm15 = vcmask 131072  }
 0xa21   :  { %v1496_v39 = vpack.c.bf16 %v1485_v46, %v1484_v31  ;;  %v1629_v49 = vpop.f32.mrb[37].mxu0  ;;  %v1638_v51 = vadd.f32 %v4497_v5, %v4207_v57 }
 0xa22   :  { %v4498_v35 = vpop.f32.mrb[38].mxu0  ;;  %v1630_v59 = vadd.f32 %v4207_v57, %v1629_v49 }
 0xa23   :  { %4489 = vmatprep.mubr.msk.bf16.mxu1 %vm6488_vm4, %v1496_v39  ;;  %v1632_v50 = vpop.f32.mrb[39].mxu0  ;;  %v1650_v29 = vmul.f32 0.2, %v1638_v51  ;;  %v1641_v42 = vadd.f32 %v4498_v35, %v4207_v57  ;;  %vm1646_vm6 = vcmp.ge.f32.partialorder %v1638_v51, 0.0 }
 0xa24   :  { %4490 = vmatmul.mubr.msk.bf16.vlgmr.msra.gmra.mrb[32].mxu1 %vm6488_vm4, %v1497_v45  ;;  %v1648_v61 = vmul.f32 0.2, %v1630_v59  ;;  %vm1644_vm7 = vcmp.ge.f32.partialorder %v1630_v59, 0.0  ;;  %v1633_v55 = vadd.f32 %v4207_v57, %v1632_v50 }
 0xa25   :  { %v1654_v52 = vsel %vm1646_vm6, %v1638_v51, %v1650_v29  ;;  %vm1647_vm8 = vcmp.ge.f32.partialorder %v1641_v42, 0.0  ;;  %v1651_v47 = vmul.f32 0.2, %v1641_v42  ;;  %vm6490_vm6 = vcmask 1041409  }
 0xa26   :  { %v1652_v2 = vsel %vm1644_vm7, %v1630_v59, %v1648_v61  ;;  %v1649_v9 = vmul.f32 0.2, %v1633_v55  ;;  %vm1645_vm11 = vcmp.ge.f32.partialorder %v1633_v55, 0.0 }
 0xa27   :  { %v1655_v20 = vsel %vm1647_vm8, %v1641_v42, %v1651_v47 }
 0xa28   :  { %v1653_v26 = vsel %vm1645_vm11, %v1633_v55, %v1649_v9 }
 0xaf7   :  { %v4491_v62 = vpop.f32.mrb[32].mxu1 }
 0xaf8   :  { %v1559_v0 = vadd.f32 %v4491_v62, %v4204_v44  ;;  %v1550_v6 = vpop.f32.mrb[33].mxu1 }
 0xaf9   :  { %v1551_v1 = vadd.f32 %v4204_v44, %v1550_v6  ;;  %v4492_v58 = vpop.f32.mrb[34].mxu1 }
 0xafa   :  { %vm1567_vm9 = vcmp.ge.f32.partialorder %v1559_v0, 0.0  ;;  %v1571_v60 = vmul.f32 0.2, %v1559_v0  ;;  %v1562_v48 = vadd.f32 %v4492_v58, %v4204_v44  ;;  %v1553_v8 = vpop.f32.mrb[35].mxu1 }
 0xafb   :  { %vm1565_vm10 = vcmp.ge.f32.partialorder %v1551_v1, 0.0  ;;  %v1569_v10 = vmul.f32 0.2, %v1551_v1  ;;  %v1554_v7 = vadd.f32 %v4204_v44, %v1553_v8  ;;  %v1726_v8 = vlaneseq }
 0xafc   :  { %v1575_v38 = vsel %vm1567_vm9, %v1559_v0, %v1571_v60  ;;  %vm1568_vm12 = vcmp.ge.f32.partialorder %v1562_v48, 0.0  ;;  %v1572_v13 = vmul.f32 0.2, %v1562_v48  ;;  %v4989_v60 = vmov 1966171168  }
 0xafd   :  { %v1658_v15 = vadd.f32 %v1654_v52, %v1575_v38  ;;  %v1573_v16 = vsel %vm1565_vm10, %v1551_v1, %v1569_v10  ;;  %vm1566_vm13 = vcmp.ge.f32.partialorder %v1554_v7, 0.0  ;;  %v1570_v17 = vmul.f32 0.2, %v1554_v7 }
 0xafe   :  { %v1656_v24 = vadd.f32 %v1652_v2, %v1573_v16  ;;  %v1576_v19 = vsel %vm1568_vm12, %v1562_v48, %v1572_v13  ;;  %v1724_v48 = vunpack.c.l.s4 %v4989_v60  ;;  %v5597_v16 = vshrl.u32 %v1726_v8, 7 }
 0xaff   :  { %v1659_v18 = vadd.f32 %v1655_v20, %v1576_v19  ;;  %v1574_v30 = vsel %vm1566_vm13, %v1554_v7, %v1570_v17  ;;  %v1663_v37 = vsel %vm258_vm3, %v1658_v15, 0.0 }
 0xb00   :  { %v1657_v33 = vadd.f32 %v1653_v26, %v1574_v30  ;;  %v1660_v23 = vsel %vm258_vm3, %v1656_v24, 0.0 }
 0xb01   :  { %v1665_v27 = vsel %vm258_vm3, %v1659_v18, 0.0 }
 0xb02   :  { %v1661_v34 = vsel %vm258_vm3, %v1657_v33, 0.0 }
 0xb03   :  { %v1662_v36 = vadd.f32 %v1661_v34, %v1660_v23 }
 0xb05   :  { %v1664_v40 = vadd.f32 %v1663_v37, %v1662_v36 }
 0xb07   :  { %v1666_v41 = vadd.f32 %v1665_v27, %v1664_v40 }
 0xb09   :  { %v1667_v43 = vrot.slane %v1666_v41, 4 }
 0xb0b   :  { %v1668_v25 = vadd.f32 %v1667_v43, %v1666_v41 }
 0xb0d   :  { %v1669_v31 = vrot.slane %v1668_v25, 2 }
 0xb0f   :  { %v1670_v45 = vadd.f32 %v1669_v31, %v1668_v25 }
 0xb11   :  { %v1671_v46 = vrot.slane %v1670_v45, 1 }
 0xb13   :  { %v1672_v5 = vadd.f32 %v1671_v46, %v1670_v45 }
 0xb15   :  { %v1673_v39 = vmul.f32 0.03125, %v1672_v5 }
 0xb17   :  { %v1674_v49 = vsub.f32 %v1656_v24, %v1673_v39  ;;  %v1675_v35 = vsub.f32 %v1657_v33, %v1673_v39  ;;  %v1676_v50 = vsub.f32 %v1658_v15, %v1673_v39  ;;  %v1677_v11 = vsub.f32 %v1659_v18, %v1673_v39 }
 0xb18   :  { %v1725_v15 = vunpack.c.0.s8 %v1724_v48 }
 0xb19   :  { %v1678_v22 = vmul.f32 %v1674_v49, %v1674_v49  ;;  %v1679_v53 = vmul.f32 %v1675_v35, %v1675_v35  ;;  %v1680_v54 = vmul.f32 %v1676_v50, %v1676_v50  ;;  %v1681_v57 = vmul.f32 %v1677_v11, %v1677_v11 }
 0xb1a   :  { %v5600_v17 = vsub.s32 %v1725_v15, %v5597_v16 }
 0xb1b   :  { %v1682_v51 = vsel %vm258_vm3, %v1678_v22, 0.0  ;;  %v1683_v59 = vsel %vm258_vm3, %v1679_v53, 0.0  ;;  %v1685_v42 = vsel %vm258_vm3, %v1680_v54, 0.0  ;;  %v1687_v61 = vsel %vm258_vm3, %v1681_v57, 0.0 }
 0xb1c   :  { %v1684_v29 = vadd.f32 %v1683_v59, %v1682_v51 }
 0xb1e   :  { %v1686_v44 = vadd.f32 %v1685_v42, %v1684_v29 }
 0xb20   :  { %v1688_v55 = vadd.f32 %v1687_v61, %v1686_v44 }
 0xb22   :  { %v1689_v62 = vrot.slane %v1688_v55, 4 }
 0xb24   :  { %v1690_v0 = vadd.f32 %v1689_v62, %v1688_v55 }
 0xb26   :  { %v1691_v6 = vrot.slane %v1690_v0, 2 }
 0xb28   :  { %v1692_v52 = vadd.f32 %v1691_v6, %v1690_v0 }
 0xb2a   :  { %v1693_v47 = vrot.slane %v1692_v52, 1 }
 0xb2c   :  { %v1694_v1 = vadd.f32 %v1693_v47, %v1692_v52 }
 0xb2e   :  { %v1695_v58 = vmul.f32 0.03125, %v1694_v1 }
 0xb30   :  { %v1696_v2 = vadd.f32 1e-05, %v1695_v58 }
 0xb32   :  { %4768 = vrsqrt.f32 %v1696_v2 }
 0xb3c   :  { %v4769_v9 = vpop.eup %4768 }
 0xb3d   :  { %v1698_v10 = vmul.f32 %v4769_v9, %v1674_v49  ;;  %v1699_v7 = vmul.f32 %v4769_v9, %v1675_v35  ;;  %v1700_v38 = vmul.f32 %v4769_v9, %v1676_v50  ;;  %v1701_v13 = vmul.f32 %v4769_v9, %v1677_v11 }
 0xb3f   :  { %1706 = vst.msk [vmem:[#allocation2 + $0x1] sm:$0xff] %vm258_vm3, %v1698_v10  ;;  %1707 = vst.msk [vmem:[#allocation2 + $0x9] sm:$0xff] %vm258_vm3, %v1699_v7 }
 0xb40   :  { %1708 = vst.msk [vmem:[#allocation2 + $0x19] sm:$0xff] %vm258_vm3, %v1700_v38  ;;  %1709 = vst.msk [vmem:[#allocation2 + $0x21] sm:$0xff] %vm258_vm3, %v1701_v13 }
 0xb46   :  { %v5602_v20 = vld [vmem:[#allocation2] sm:$0xff]  ;;  %v5604_v24 = vld [vmem:[#allocation2 + $0x8] sm:$0xff]  ;;  %v5606_v19 = vld [vmem:[#allocation2 + $0x10] sm:$0x1] }
 0xb47   :  { %v1722_v26 = vcombine.high %v5602_v20, %v5602_v20  ;;  %v1729_v18 = vrot.slane %v5602_v20, %v5600_v17  ;;  %v1771_v30 = vcombine.high %v5604_v24, %v5604_v24  ;;  %v1778_v33 = vrot.slane %v5604_v24, %v5600_v17  ;;  %v5616_v23 = vld [vmem:[#allocation2 + $0x18] sm:$0xff]  ;;  %v5618_v34 = vld [vmem:[#allocation2 + $0x20] sm:$0xff] }
 0xb48   :  { %v1826_v36 = vrot.slane %v5606_v19, %v5600_v17  ;;  %v1834_v37 = vcombine.high %v5616_v23, %v5616_v23  ;;  %v1841_v40 = vrot.slane %v5616_v23, %v5600_v17  ;;  %v1883_v25 = vcombine.high %v5618_v34, %v5618_v34 }
 0xb49   :  { %v1736_v27 = vrot.slane %v1722_v26, %v5600_v17  ;;  %v1737_v41 = vcombine.high %v1729_v18, %v1729_v18  ;;  %v1785_v43 = vrot.slane %v1771_v30, %v5600_v17  ;;  %v1745_v31 = vrot.slane %v1729_v18, %v5600_v17 }
 0xb4a   :  { %v1786_v45 = vcombine.high %v1778_v33, %v1778_v33  ;;  %v1794_v46 = vrot.slane %v1778_v33, %v5600_v17  ;;  %v1848_v5 = vrot.slane %v1834_v37, %v5600_v17  ;;  %v1849_v53 = vcombine.high %v1841_v40, %v1841_v40 }
 0xb4b   :  { %v1738_v39 = vcombine.high %v1736_v27, %v1736_v27  ;;  %v1752_v49 = vrot.slane %v1736_v27, %v5600_v17  ;;  %v1759_v35 = vrot.slane %v1737_v41, %v5600_v17  ;;  %v1787_v50 = vcombine.high %v1785_v43, %v1785_v43 }
 0xb4c   :  { %v1801_v11 = vrot.slane %v1785_v43, %v5600_v17  ;;  %v1808_v22 = vrot.slane %v1786_v45, %v5600_v17  ;;  %v1850_v54 = vcombine.high %v1848_v5, %v1848_v5  ;;  %v1857_v61 = vrot.slane %v1841_v40, %v5600_v17 }
 0xb4d   :  { %v1766_v57 = vrot.slane %v1738_v39, %v5600_v17  ;;  %v1815_v51 = vrot.slane %v1787_v50, %v5600_v17  ;;  %v1948_v59 = vcombine.low %v1745_v31, %v1759_v35  ;;  %v4210_v29 = vcombine.high %v1745_v31, %v1759_v35 }
 0xb4e   :  { %v1997_v42 = vcombine.low %v1794_v46, %v1808_v22  ;;  %v4212_v44 = vcombine.high %v1794_v46, %v1808_v22  ;;  %v1864_v55 = vrot.slane %v1848_v5, %v5600_v17  ;;  %v1871_v10 = vrot.slane %v1849_v53, %v5600_v17 }
 0xb4f   :  { %v1950_v62 = vcombine.low %v1752_v49, %v1766_v57  ;;  %v4211_v0 = vcombine.high %v1752_v49, %v1766_v57  ;;  %v1958_v6 = vrot.slane %v1948_v59, %v5600_v17  ;;  %v1965_v52 = vrot.slane %v4210_v29, %v5600_v17 }
 0xb50   :  { %v1999_v47 = vcombine.low %v1801_v11, %v1815_v51  ;;  %v4213_v1 = vcombine.high %v1801_v11, %v1815_v51  ;;  %v2007_v58 = vrot.slane %v1997_v42, %v5600_v17  ;;  %v2014_v2 = vrot.slane %v4212_v44, %v5600_v17  ;;  %v1715_v42 = vld [vmem:[#allocation2 + $0x28] sm:$0x1] }
 0xb51   :  { %v1972_v60 = vrot.slane %v1950_v62, %v5600_v17  ;;  %v1979_v48 = vrot.slane %v4211_v0, %v5600_v17  ;;  %v1980_v9 = vcombine.low %v1958_v6, %v1965_v52  ;;  %v1878_v15 = vrot.slane %v1850_v54, %v5600_v17 }
 0xb52   :  { %v2021_v7 = vrot.slane %v1999_v47, %v5600_v17  ;;  %v2028_v38 = vrot.slane %v4213_v1, %v5600_v17  ;;  %v2029_v13 = vcombine.low %v2007_v58, %v2014_v2  ;;  %v1833_v18 = vrot.slane %v1826_v36, %v5600_v17 }
 0xb53   :  { %v1981_v26 = vcombine.low %v1972_v60, %v1979_v48  ;;  %v1879_v30 = vcombine.high %v1857_v61, %v1857_v61  ;;  %v1880_v33 = vcombine.high %v1864_v55, %v1864_v55  ;;  %v1988_v37 = vrot.slane %v1980_v9, %v5600_v17 }
 0xb54   :  { %v2030_v40 = vcombine.low %v2021_v7, %v2028_v38  ;;  %v2037_v27 = vrot.slane %v2029_v13, %v5600_v17  ;;  %v1881_v41 = vcombine.high %v1871_v10, %v1871_v10  ;;  %v1882_v31 = vcombine.high %v1878_v15, %v1878_v15 }
 0xb55   :  { %v1995_v43 = vrot.slane %v1981_v26, %v5600_v17  ;;  %v1890_v45 = vrot.slane %v5618_v34, %v5600_v17  ;;  %v1897_v46 = vrot.slane %v1883_v25, %v5600_v17  ;;  %v2047_v39 = vcombine.low %v1871_v10, %v1879_v30 }
 0xb56   :  { %v2044_v5 = vrot.slane %v2030_v40, %v5600_v17  ;;  %v2048_v36 = vcombine.low %v1881_v41, %v1864_v55  ;;  %v2049_v49 = vcombine.low %v1878_v15, %v1880_v33  ;;  %v2046_v57 = vcombine.low %v1833_v18, %v1857_v61 }
 0xb57   :  { %v1996_v35 = vcombine.low %v1988_v37, %v1995_v43  ;;  %v1898_v50 = vcombine.high %v1890_v45, %v1890_v45  ;;  %v1899_v11 = vcombine.high %v1897_v46, %v1897_v46  ;;  %v1906_v22 = vrot.slane %v1890_v45, %v5600_v17 }
 0xb58   :  { %v2045_v53 = vcombine.low %v2037_v27, %v2044_v5  ;;  %v1913_v54 = vrot.slane %v1897_v46, %v5600_v17  ;;  %v2070_v29 = vrot.slane %v2048_v36, %v5600_v17  ;;  %v2063_v62 = vrot.slane %v2047_v39, %v5600_v17 }
 0xb59   :  { %v1920_v51 = vrot.slane %v1898_v50, %v5600_v17  ;;  %v1927_v59 = vrot.slane %v1899_v11, %v5600_v17  ;;  %v1928_v25 = vcombine.high %v1906_v22, %v1906_v22  ;;  %v2077_v0 = vrot.slane %v2049_v49, %v5600_v17 }
 0xb5a   :  { %v2164_v44 = vpack.c.bf16 %v2045_v53, %v1996_v35  ;;  %v1929_v55 = vcombine.high %v1913_v54, %v1913_v54  ;;  %v2095_v52 = vcombine.low %v1882_v31, %v1906_v22  ;;  %v2056_v61 = vrot.slane %v2046_v57, %v5600_v17 }
 0xb5b   :  { %v1930_v6 = vcombine.high %v1920_v51, %v1920_v51  ;;  %v2096_v47 = vcombine.low %v1920_v51, %v1928_v25  ;;  %v2079_v1 = vcombine.low %v2070_v29, %v2077_v0  ;;  %v1938_v2 = vrot.slane %v1715_v42, %v5600_v17 }
 0xb5c   :  { %4502 = vmatmul.mubr.msk.bf16.vlgmr.msra.gmra.mrb[40].mxu0 %vm258_vm3, %v2164_v44  ;;  %v2098_v58 = vcombine.low %v1927_v59, %v1929_v55  ;;  %v2105_v48 = vrot.slane %v2095_v52, %v5600_v17  ;;  %v5675_v10 = vpack.c.bf16 %v5604_v24, %v5602_v20  ;;  %v2078_v7 = vcombine.low %v2056_v61, %v2063_v62 }
 0xb5d   :  { %4505 = vmatprep.mubr.msk.bf16.mxu0 %vm6489_vm1, %v4980_v12  ;;  %v2097_v60 = vcombine.low %v1930_v6, %v1913_v54  ;;  %v2112_v9 = vrot.slane %v2096_v47, %v5600_v17  ;;  %v1931_v13 = vcombine.high %v1927_v59, %v1927_v59  ;;  %v4990_v15 = vmov 0  }
 0xb5e   :  { %v2126_v38 = vrot.slane %v2098_v58, %v5600_v17  ;;  %v5680_v26 = vsel %vm3591_vm14, 65535, %v4990_v15  ;;  %v5685_v33 = vpack.c.bf16 %v5618_v34, %v5616_v23  ;;  %v3584_v37 = vpack.c.bf16 %v1715_v42, %v1715_v42 }
 0xb5f   :  { %v2119_v18 = vrot.slane %v2097_v60, %v5600_v17  ;;  %v2127_v30 = vcombine.low %v2105_v48, %v2112_v9  ;;  %v2093_v20 = vrot.slane %v2079_v1, %v5600_v17  ;;  %v1945_v27 = vrot.slane %v1938_v2, %v5600_v17 }
 0xb60   :  { %v5691_v41 = vand.u32 %v5680_v26, %v3584_v37  ;;  %v2086_v43 = vrot.slane %v2078_v7, %v5600_v17 }
 0xb61   :  { %v2128_v24 = vcombine.low %v2119_v18, %v2126_v38  ;;  %v2135_v40 = vrot.slane %v2127_v30, %v5600_v17  ;;  %v2144_v45 = vcombine.low %v1931_v13, %v1945_v27 }
 0xb62   :  { %v2094_v46 = vcombine.low %v2086_v43, %v2093_v20 }
 0xb63   :  { %v2142_v31 = vrot.slane %v2128_v24, %v5600_v17  ;;  %v2151_v34 = vrot.slane %v2144_v45, %v5600_v17 }
 0xb65   :  { %v2143_v5 = vcombine.low %v2135_v40, %v2142_v31  ;;  %v2158_v39 = vrot.slane %v2151_v34, %v5600_v17 }
 0xb67   :  { %v2165_v23 = vpack.c.bf16 %v2143_v5, %v2094_v46  ;;  %v2166_v36 = vpack.c.bf16 %v2158_v39, %v2158_v39 }
 0xb69   :  { %4506 = vmatmul.mubr.msk.bf16.gmra.mrb[44].mxu0 %vm258_vm3, %v2165_v23 }
 0xb6a   :  { %4509 = vmatprep.mubr.msk.bf16.mxu0 %vm6489_vm1, %v4980_v12 }
 0xb71   :  { %4510 = vmatmul.mubr.msk.bf16.gmra.mrb[48].mxu0 %vm258_vm3, %v2166_v36 }
 0xc2f   :  { %v2211_v49 = vpop.f32.mrb[40].mxu0 }
 0xc30   :  { %v2238_v35 = vcombine.high %v2211_v49, %v2211_v49  ;;  %v2245_v50 = vrot.slane %v2211_v49, %v5600_v17  ;;  %v4503_v11 = vpop.f32.mrb[41].mxu0 }
 0xc31   :  { %v2214_v22 = vpop.f32.mrb[42].mxu0 }
 0xc32   :  { %v2252_v53 = vrot.slane %v2238_v35, %v5600_v17  ;;  %v2253_v54 = vcombine.high %v2245_v50, %v2245_v50  ;;  %v2287_v57 = vcombine.high %v2214_v22, %v2214_v22  ;;  %v4504_v51 = vpop.f32.mrb[43].mxu0  ;;  %v2294_v59 = vrot.slane %v2214_v22, %v5600_v17 }
 0xc33   :  { %v2261_v29 = vrot.slane %v2245_v50, %v5600_v17 }
 0xc34   :  { %v2254_v25 = vcombine.high %v2252_v53, %v2252_v53  ;;  %v2275_v42 = vrot.slane %v2253_v54, %v5600_v17  ;;  %v2301_v44 = vrot.slane %v2287_v57, %v5600_v17  ;;  %v2268_v55 = vrot.slane %v2252_v53, %v5600_v17 }
 0xc35   :  { %v2302_v62 = vcombine.high %v2294_v59, %v2294_v59  ;;  %v2310_v61 = vrot.slane %v2294_v59, %v5600_v17 }
 0xc36   :  { %v2282_v0 = vrot.slane %v2254_v25, %v5600_v17  ;;  %v2456_v6 = vcombine.low %v2261_v29, %v2275_v42  ;;  %v4217_v52 = vcombine.high %v2261_v29, %v2275_v42  ;;  %v2303_v47 = vcombine.high %v2301_v44, %v2301_v44 }
 0xc37   :  { %v2324_v1 = vrot.slane %v2302_v62, %v5600_v17  ;;  %v2317_v9 = vrot.slane %v2301_v44, %v5600_v17 }
 0xc38   :  { %v2458_v58 = vcombine.low %v2268_v55, %v2282_v0  ;;  %v4218_v2 = vcombine.high %v2268_v55, %v2282_v0  ;;  %v2466_v60 = vrot.slane %v2456_v6, %v5600_v17  ;;  %v2473_v48 = vrot.slane %v4217_v52, %v5600_v17 }
 0xc39   :  { %v2331_v7 = vrot.slane %v2303_v47, %v5600_v17  ;;  %v2505_v38 = vcombine.low %v2310_v61, %v2324_v1  ;;  %v4219_v13 = vcombine.high %v2310_v61, %v2324_v1 }
 0xc3a   :  { %v2480_v18 = vrot.slane %v2458_v58, %v5600_v17  ;;  %v2487_v30 = vrot.slane %v4218_v2, %v5600_v17  ;;  %v2488_v37 = vcombine.low %v2466_v60, %v2473_v48 }
 0xc3b   :  { %v2507_v20 = vcombine.low %v2317_v9, %v2331_v7  ;;  %v4220_v24 = vcombine.high %v2317_v9, %v2331_v7  ;;  %v2515_v40 = vrot.slane %v2505_v38, %v5600_v17  ;;  %v2522_v27 = vrot.slane %v4219_v13, %v5600_v17 }
 0xc3c   :  { %v2489_v43 = vcombine.low %v2480_v18, %v2487_v30  ;;  %v2219_v31 = vpop.f32.mrb[44].mxu0  ;;  %v2496_v39 = vrot.slane %v2488_v37, %v5600_v17 }
 0xc3d   :  { %v2529_v45 = vrot.slane %v2507_v20, %v5600_v17  ;;  %v2536_v46 = vrot.slane %v4220_v24, %v5600_v17  ;;  %v2537_v5 = vcombine.low %v2515_v40, %v2522_v27  ;;  %v2336_v23 = vcombine.high %v2219_v31, %v2219_v31  ;;  %v4507_v34 = vpop.f32.mrb[45].mxu0 }
 0xc3e   :  { %v2503_v36 = vrot.slane %v2489_v43, %v5600_v17  ;;  %v2343_v49 = vrot.slane %v2219_v31, %v5600_v17  ;;  %v2222_v35 = vpop.f32.mrb[46].mxu0 }
 0xc3f   :  { %v2538_v50 = vcombine.low %v2529_v45, %v2536_v46  ;;  %v2545_v11 = vrot.slane %v2537_v5, %v5600_v17  ;;  %v2350_v22 = vrot.slane %v2336_v23, %v5600_v17  ;;  %v2385_v53 = vcombine.high %v2222_v35, %v2222_v35  ;;  %v4508_v54 = vpop.f32.mrb[47].mxu0 }
 0xc40   :  { %v2504_v57 = vcombine.low %v2496_v39, %v2503_v36  ;;  %v2351_v51 = vcombine.high %v2343_v49, %v2343_v49  ;;  %v2359_v59 = vrot.slane %v2343_v49, %v5600_v17  ;;  %v2392_v25 = vrot.slane %v2222_v35, %v5600_v17 }
 0xc41   :  { %v2552_v29 = vrot.slane %v2538_v50, %v5600_v17  ;;  %v2352_v42 = vcombine.high %v2350_v22, %v2350_v22  ;;  %v2366_v44 = vrot.slane %v2350_v22, %v5600_v17  ;;  %v2399_v55 = vrot.slane %v2385_v53, %v5600_v17 }
 0xc42   :  { %v2373_v62 = vrot.slane %v2351_v51, %v5600_v17  ;;  %v2381_v0 = vcombine.high %v2359_v59, %v2359_v59  ;;  %v2560_v6 = vrot.slane %v2359_v59, %v5600_v17  ;;  %v2400_v52 = vcombine.high %v2392_v25, %v2392_v25 }
 0xc43   :  { %v2553_v47 = vcombine.low %v2545_v11, %v2552_v29  ;;  %v2380_v61 = vrot.slane %v2352_v42, %v5600_v17  ;;  %v2382_v1 = vcombine.high %v2366_v44, %v2366_v44  ;;  %v2401_v58 = vcombine.high %v2399_v55, %v2399_v55 }
 0xc44   :  { %v2383_v2 = vcombine.high %v2373_v62, %v2373_v62  ;;  %v2567_v60 = vrot.slane %v2560_v6, %v5600_v17  ;;  %v2568_v48 = vcombine.low %v2373_v62, %v2381_v0  ;;  %v2408_v9 = vrot.slane %v2392_v25, %v5600_v17  ;;  %v2227_v7 = vpop.f32.mrb[48].mxu0 }
 0xc45   :  { %v5736_v38 = vpack.c.bf16 %v2553_v47, %v2504_v57  ;;  %v2570_v13 = vcombine.low %v2380_v61, %v2382_v1  ;;  %v2384_v18 = vcombine.high %v2380_v61, %v2380_v61  ;;  %v2415_v30 = vrot.slane %v2399_v55, %v5600_v17  ;;  %v4511_v37 = vpop.f32.mrb[49].mxu0 }
 0xc46   :  { %v2569_v20 = vcombine.low %v2383_v2, %v2366_v44  ;;  %v2578_v24 = vrot.slane %v2568_v48, %v5600_v17  ;;  %v5740_v40 = vpack.c.bf16 %v2567_v60, %v2567_v60  ;;  %v2422_v27 = vrot.slane %v2400_v52, %v5600_v17  ;;  %v2230_v43 = vpop.f32.mrb[50].mxu0 }
 0xc47   :  { %v2429_v31 = vrot.slane %v2401_v58, %v5600_v17  ;;  %v2430_v45 = vcombine.high %v2408_v9, %v2408_v9  ;;  %v2431_v46 = vcombine.high %v2415_v30, %v2415_v30  ;;  %v2571_v5 = vcombine.low %v2384_v18, %v2408_v9  ;;  %v4512_v23 = vpop.f32.mrb[51].mxu0  ;;  %2692 = vrot.lane.b32.xlu1 %v5736_v38, %s4983_s9 }
 0xc48   :  { %v2585_v34 = vrot.slane %v2569_v20, %v5600_v17  ;;  %v2432_v39 = vcombine.high %v2422_v27, %v2422_v27  ;;  %v2592_v36 = vrot.slane %v2570_v13, %v5600_v17  ;;  %v2440_v49 = vrot.slane %v2227_v7, %v5600_v17  ;;  %2694 = vrot.lane.b32.xlu0 %v5740_v40, %s4983_s9 }
 0xc49   :  { %v2599_v35 = vrot.slane %v2571_v5, %v5600_v17  ;;  %v2617_v50 = vcombine.low %v2422_v27, %v2430_v45  ;;  %v2619_v11 = vcombine.low %v2429_v31, %v2431_v46  ;;  %v2433_v22 = vcombine.high %v2429_v31, %v2429_v31  ;;  %4517 = vmatprep.mubr.msk.bf16.mxu1 %vm156_vm2, %v5736_v38 }
 0xc4a   :  { %v2600_v53 = vcombine.low %v2578_v24, %v2585_v34  ;;  %v2618_v54 = vcombine.low %v2432_v39, %v2415_v30  ;;  %v2441_v57 = vcombine.high %v2440_v49, %v2440_v49  ;;  %v2448_v51 = vrot.slane %v2440_v49, %v5600_v17 }
 0xc4b   :  { %v2601_v59 = vcombine.low %v2592_v36, %v2599_v35  ;;  %v2627_v25 = vrot.slane %v2617_v50, %v5600_v17  ;;  %v2641_v6 = vrot.slane %v2619_v11, %v5600_v17 }
 0xc4c   :  { %v2634_v29 = vrot.slane %v2618_v54, %v5600_v17  ;;  %v2620_v42 = vcombine.low %v2433_v22, %v2448_v51  ;;  %2912 = vrot.lane.b32.xlu0 %v5736_v38, %s4982_s30  ;;  %v2608_v44 = vrot.slane %v2600_v53, %v5600_v17  ;;  %v2455_v0 = vrot.slane %v2441_v57, %v5600_v17 }
 0xc4d   :  { %v2615_v55 = vrot.slane %v2601_v59, %v5600_v17 }
 0xc4e   :  { %v2649_v62 = vcombine.low %v2627_v25, %v2634_v29  ;;  %v2648_v52 = vrot.slane %v2620_v42, %v5600_v17  ;;  %v2672_v2 = vrot.slane %v2455_v0, %v5600_v17 }
 0xc4f   :  { %v2616_v47 = vcombine.low %v2608_v44, %v2615_v55 }
 0xc50   :  { %v2650_v61 = vcombine.low %v2641_v6, %v2648_v52  ;;  %v2657_v1 = vrot.slane %v2649_v62, %v5600_v17  ;;  %v2679_v48 = vrot.slane %v2672_v2, %v5600_v17 }
 0xc52   :  { %v2664_v58 = vrot.slane %v2650_v61, %v5600_v17  ;;  %v2689_v7 = vpack.c.bf16 %v2679_v48, %v2679_v48  ;;  %v3582_v61 = vpack.c.bf16 %v5606_v19, %v5606_v19 }
 0xc54   :  { %v2665_v60 = vcombine.low %v2657_v1, %v2664_v58 }
 0xc56   :  { %v2688_v9 = vpack.c.bf16 %v2665_v60, %v2616_v47  ;;  %v3595_v60 = vand.u32 %v5680_v26, %v3582_v61 }
 0xc58   :  { %2980 = vrot.lane.b32.xlu0 %v2688_v9, %s4982_s30  ;;  %2758 = vrot.lane.b32.xlu1 %v2688_v9, %s4983_s9 }
 0xc59   :  { %4525 = vmatprep.mubr.msk.bf16.mxu0 %vm156_vm2, %v2688_v9 }
 0xc5c   :  { %2982 = vrot.lane.b32.xlu0 %v2689_v7, %s4982_s30  ;;  %2760 = vrot.lane.b32.xlu1 %v2689_v7, %s4983_s9 }
 0xc60   :  { %2910 = vrot.lane.b32.xlu0 %v5740_v40, %s4985_s28  ;;  %2914 = vrot.lane.b32.xlu1 %v5740_v40, %s4982_s30  ;;  %s4991_s30 = smov 1  }
 0xc64   :  { %3135 = vrot.lane.b32.xlu0 %v5740_v40, %s4984_s5  ;;  %2908 = vrot.lane.b32.xlu1 %v5736_v38, %s4985_s28 }
 0xc68   :  { %2978 = vrot.lane.b32.xlu0 %v2689_v7, %s4985_s28  ;;  %3133 = vrot.lane.b32.xlu1 %v5736_v38, %s4984_s5 }
 0xc6c   :  { %3203 = vrot.lane.b32.xlu0 %v2689_v7, %s4984_s5  ;;  %2976 = vrot.lane.b32.xlu1 %v2688_v9, %s4985_s28 }
 0xc70   :  { %3131 = vrot.lane.b32.xlu0 %v5740_v40, %s4987_s10  ;;  %3201 = vrot.lane.b32.xlu1 %v2688_v9, %s4984_s5 }
 0xc74   :  { %3356 = vrot.lane.b32.xlu0 %v5740_v40, %s6515_s12  ;;  %3129 = vrot.lane.b32.xlu1 %v5736_v38, %s4987_s10 }
 0xc78   :  { %3199 = vrot.lane.b32.xlu0 %v2689_v7, %s4987_s10  ;;  %3354 = vrot.lane.b32.xlu1 %v5736_v38, %s6515_s12 }
 0xc7c   :  { %3352 = vrot.lane.b32.xlu0 %v5740_v40, %s6516_s14  ;;  %3197 = vrot.lane.b32.xlu1 %v2688_v9, %s4987_s10 }
 0xc80   :  { %3418 = vrot.lane.b32.xlu0 %v2688_v9, %s6516_s14  ;;  %3422 = vrot.lane.b32.xlu1 %v2688_v9, %s6515_s12 }
 0xc84   :  { %3350 = vrot.lane.b32.xlu1 %v5736_v38, %s6516_s14 }
 0xc88   :  { %3424 = vrot.lane.b32.xlu1 %v2689_v7, %s6515_s12 }
 0xc8c   :  { %3420 = vrot.lane.b32.xlu1 %v2689_v7, %s6516_s14 }
 0xcb9   :  { %v2693_v17 = vpop.permute.xlu1 %2692 }
 0xcba   :  { %v2703_v13 = vsel %vm156_vm2, %v2693_v17, 0  ;;  %4619 = vmatprep.subr.msk.bf16.mxu1 %vm156_vm2, %v2693_v17  ;;  %v2695_v18 = vpop.permute.xlu0 %2694 }
 0xcbb   :  { %4514 = vmatpush3.bf16.xpose.msra.mxu1 %v2703_v13  ;;  %v2706_v30 = vsel %vm156_vm2, %v2695_v18, 0 }
 0xcbc   :  { %4620 = vmatprep.subr.msk.bf16.mxu1 %vm156_vm2, %v2695_v18 }
 0xcbe   :  { %v2913_v37 = vpop.permute.xlu0 %2912 }
 0xcbf   :  { %v2923_v38 = vsel %vm156_vm2, %v2913_v37, 0 }
 0xcc3   :  { %4516 = vmatpush3.bf16.xpose.msra.mxu1 %v2706_v30 }
 0xcc4   :  { %4623 = vmatprep.subr.msk.bf16.mxu1 %vm156_vm2, %v2913_v37 }
 0xcca   :  { %v2981_v20 = vpop.permute.xlu0 %2980  ;;  %v2759_v24 = vpop.permute.xlu1 %2758  ;;  %4518 = vmatmul.mubr.msk.bf16.vlgmr.msra.gmra.mrb[36].mxu1 %vm156_vm2, %v5740_v40 }
 0xccb   :  { %v2769_v27 = vsel %vm156_vm2, %v2759_v24, 0  ;;  %4621 = vmatprep.subr.msk.bf16.mxu0 %vm156_vm2, %v2759_v24  ;;  %4530 = vmatpush3.bf16.xpose.msra.mxu1 %v2923_v38  ;;  %v2991_v49 = vsel %vm156_vm2, %v2981_v20, 0 }
 0xccc   :  { %4522 = vmatpush3.bf16.xpose.msra.mxu0 %v2769_v27 }
 0xcce   :  { %v2983_v43 = vpop.permute.xlu0 %2982  ;;  %v2761_v31 = vpop.permute.xlu1 %2760 }
 0xccf   :  { %4622 = vmatprep.subr.msk.bf16.mxu0 %vm156_vm2, %v2761_v31  ;;  %v2772_v5 = vsel %vm156_vm2, %v2761_v31, 0  ;;  %v2994_v53 = vsel %vm156_vm2, %v2983_v43, 0 }
 0xcd2   :  { %v2911_v45 = vpop.permute.xlu0 %2910  ;;  %v2915_v46 = vpop.permute.xlu1 %2914 }
 0xcd3   :  { %v2926_v23 = vsel %vm156_vm2, %v2915_v46, 0  ;;  %4624 = vmatprep.subr.msk.bf16.mxu1 %vm156_vm2, %v2915_v46 }
 0xcd4   :  { %4524 = vmatpush3.bf16.xpose.msra.mxu0 %v2772_v5  ;;  %4532 = vmatpush3.bf16.xpose.msra.mxu1 %v2926_v23 }
 0xcd5   :  { %4625 = vmatprep.subr.msk.bf16.mxu0 %vm156_vm2, %v2981_v20 }
 0xcd6   :  { %v3136_v40 = vpop.permute.xlu0 %3135  ;;  %v2909_v34 = vpop.permute.xlu1 %2908 }
 0xcd7   :  { %4533 = vmatprep.mubr.msk.bf16.mxu1 %vm156_vm2, %v2909_v34  ;;  %v3147_v57 = vsel %vm156_vm2, %v3136_v40, 0 }
 0xcda   :  { %v2979_v39 = vpop.permute.xlu0 %2978  ;;  %v3134_v36 = vpop.permute.xlu1 %3133 }
 0xcdb   :  { %4526 = vmatmul.mubr.msk.bf16.vlgmr.msra.gmra.mrb[52].mxu0 %vm156_vm2, %v2689_v7  ;;  %4627 = vmatprep.subr.msk.bf16.mxu1 %vm156_vm2, %v3134_v36  ;;  %v3144_v35 = vsel %vm156_vm2, %v3134_v36, 0 }
 0xcdc   :  { %4538 = vmatpush3.bf16.xpose.msra.mxu0 %v2991_v49  ;;  %4534 = vmatmul.mubr.msk.bf16.vlgmr.msra.gmra.mrb[40].mxu1 %vm156_vm2, %v2911_v45 }
 0xcdd   :  { %4626 = vmatprep.subr.msk.bf16.mxu0 %vm156_vm2, %v2983_v43  ;;  %4546 = vmatpush3.bf16.xpose.msra.mxu1 %v3144_v35 }
 0xcde   :  { %v3204_v50 = vpop.permute.xlu0 %3203  ;;  %v2977_v11 = vpop.permute.xlu1 %2976  ;;  %4628 = vmatprep.subr.msk.bf16.mxu1 %vm156_vm2, %v3136_v40 }
 0xcdf   :  { %4541 = vmatprep.mubr.msk.bf16.mxu0 %vm156_vm2, %v2977_v11  ;;  %v3215_v0 = vsel %vm156_vm2, %v3204_v50, 0 }
 0xce2   :  { %v3202_v22 = vpop.permute.xlu1 %3201  ;;  %v3132_v54 = vpop.permute.xlu0 %3131 }
 0xce3   :  { %v3212_v29 = vsel %vm156_vm2, %v3202_v22, 0 }
 0xce4   :  { %4540 = vmatpush3.bf16.xpose.msra.mxu0 %v2994_v53 }
 0xce5   :  { %4629 = vmatprep.subr.msk.bf16.mxu0 %vm156_vm2, %v3202_v22  ;;  %4548 = vmatpush3.bf16.xpose.msra.mxu1 %v3147_v57 }
 0xce6   :  { %v3130_v51 = vpop.permute.xlu1 %3129  ;;  %v3357_v59 = vpop.permute.xlu0 %3356 }
 0xce7   :  { %4549 = vmatprep.mubr.msk.bf16.mxu1 %vm156_vm2, %v3130_v51  ;;  %v3368_v6 = vsel %vm156_vm2, %v3357_v59, 0 }
 0xcea   :  { %v3355_v25 = vpop.permute.xlu1 %3354  ;;  %v3200_v55 = vpop.permute.xlu0 %3199 }
 0xceb   :  { %4542 = vmatmul.mubr.msk.bf16.vlgmr.msra.gmra.mrb[56].mxu0 %vm156_vm2, %v2979_v39  ;;  %4631 = vmatprep.subr.msk.bf16.mxu1 %vm156_vm2, %v3355_v25  ;;  %v3365_v42 = vsel %vm156_vm2, %v3355_v25, 0 }
 0xcec   :  { %4554 = vmatpush3.bf16.xpose.msra.mxu0 %v3212_v29  ;;  %4550 = vmatmul.mubr.msk.bf16.vlgmr.msra.gmra.mrb[44].mxu1 %vm156_vm2, %v3132_v54 }
 0xced   :  { %4630 = vmatprep.subr.msk.bf16.mxu0 %vm156_vm2, %v3204_v50  ;;  %4562 = vmatpush3.bf16.xpose.msra.mxu1 %v3365_v42 }
 0xcee   :  { %v3198_v44 = vpop.permute.xlu1 %3197  ;;  %4632 = vmatprep.subr.msk.bf16.mxu1 %vm156_vm2, %v3357_v59  ;;  %v3353_v52 = vpop.permute.xlu0 %3352 }
 0xcef   :  { %4557 = vmatprep.mubr.msk.bf16.mxu0 %vm156_vm2, %v3198_v44 }
 0xcf2   :  { %v3423_v62 = vpop.permute.xlu1 %3422  ;;  %v3419_v1 = vpop.permute.xlu0 %3418 }
 0xcf3   :  { %v3433_v58 = vsel %vm156_vm2, %v3423_v62, 0 }
 0xcf4   :  { %4556 = vmatpush3.bf16.xpose.msra.mxu0 %v3215_v0 }
 0xcf5   :  { %4633 = vmatprep.subr.msk.bf16.mxu0 %vm156_vm2, %v3423_v62  ;;  %4564 = vmatpush3.bf16.xpose.msra.mxu1 %v3368_v6 }
 0xcf6   :  { %v3351_v47 = vpop.permute.xlu1 %3350  ;;  %4577 = vmatprep.subr.bf16.mxu1 %v5675_v10 }
 0xcf7   :  { %4565 = vmatprep.mubr.msk.bf16.mxu1 %vm156_vm2, %v3351_v47 }
 0xcfa   :  { %v3425_v2 = vpop.permute.xlu1 %3424 }
 0xcfb   :  { %4558 = vmatmul.mubr.msk.bf16.vlgmr.msra.gmra.mrb[60].mxu0 %vm156_vm2, %v3200_v55  ;;  %v3436_v19 = vsel %vm156_vm2, %v3425_v2, 0 }
 0xcfc   :  { %4570 = vmatpush3.bf16.xpose.msra.mxu0 %v3433_v58  ;;  %4573 = vmatprep.mubr.msk.bf16.mxu0 %vm156_vm2, %v3419_v1 }
 0xcfd   :  { %4634 = vmatprep.subr.msk.bf16.mxu0 %vm156_vm2, %v3425_v2  ;;  %4566 = vmatmul.mubr.msk.bf16.vlgmr.msra.gmra.mrb[48].mxu1 %vm156_vm2, %v3353_v52 }
 0xcfe   :  { %4578 = vmatpush3.bf16.msra.mxu1 %v5675_v10  ;;  %v3421_v48 = vpop.permute.xlu1 %3420 }
 0xcff   :  { %4579 = vmatprep.subr.bf16.mxu1 %v3595_v60 }
 0xd02   :  { %4580 = vmatpush3.bf16.msra.mxu1 %v3595_v60 }
 0xd03   :  { %4585 = vmatprep.subr.bf16.mxu1 %v5685_v33 }
 0xd04   :  { %4572 = vmatpush3.bf16.xpose.msra.mxu0 %v3436_v19 }
 0xd05   :  { %4593 = vmatprep.subr.bf16.mxu0 %v4980_v12 }
 0xd0b   :  { %4574 = vmatmul.mubr.msk.bf16.vlgmr.msra.gmra.mrb[64].mxu0 %vm156_vm2, %v3421_v48 }
 0xd0c   :  { %4595 = vmatprep.mubr.msk.bf16.mxu0 %vm6489_vm1, %v4980_v12 }
 0xd9d   :  { %v4519_v9 = vpop.f32.mrb[36].mxu1 }
 0xd9e   :  { %v5861_v26 = vmul.f32 0.35355338, %v4519_v9  ;;  %v2742_v10 = vpop.f32.mrb[37].mxu1 }
 0xd9f   :  { %v5863_v7 = vmul.f32 0.35355338, %v2742_v10  ;;  %v4520_v17 = vpop.f32.mrb[38].mxu1 }
 0xda0   :  { %v2745_v13 = vpop.f32.mrb[39].mxu1  ;;  %v2836_v18 = vsel %vm2835_vm15, %v5861_v26, -inf }
 0xda1   :  { %v5867_v30 = vmul.f32 0.35355338, %v2745_v13  ;;  %2837 = vmax.xlane.f32.xlu1 %v2836_v18  ;;  %v2829_v37 = vsel %vm2828_vm5, %v5863_v7, -inf }
 0xda2   :  { %2830 = vmax.xlane.f32.xlu0 %v2829_v37 }
 0xda3   :  { %v2832_v38 = vsel %vm2828_vm5, %v5867_v30, -inf }
 0xda5   :  { %2833 = vmax.xlane.f32.xlu1 %v2832_v38 }
 0xdae   :  { %v4527_v20 = vpop.f32.mrb[52].mxu0 }
 0xdaf   :  { %v5873_v24 = vmul.f32 0.35355338, %v4527_v20  ;;  %v2808_v27 = vpop.f32.mrb[53].mxu0  ;;  %v4535_v43 = vpop.f32.mrb[40].mxu1 }
 0xdb0   :  { %v4528_v31 = vpop.f32.mrb[54].mxu0  ;;  %v2962_v45 = vpop.f32.mrb[41].mxu1  ;;  %v5875_v46 = vmul.f32 0.35355338, %v2808_v27  ;;  %v5881_v39 = vmul.f32 0.35355338, %v4535_v43 }
 0xdb1   :  { %v2811_v5 = vpop.f32.mrb[55].mxu0  ;;  %v2845_v23 = vsel %vm2835_vm15, %v5873_v24, -inf  ;;  %v4536_v40 = vpop.f32.mrb[42].mxu1  ;;  %v5889_v11 = vmul.f32 0.35355338, %v2962_v45 }
 0xdb2   :  { %v5879_v34 = vmul.f32 0.35355338, %v2811_v5  ;;  %2846 = vmax.xlane.f32.xlu1 %v2845_v23  ;;  %v2965_v36 = vpop.f32.mrb[43].mxu1  ;;  %v2839_v35 = vsel %vm2828_vm5, %v5875_v46, -inf  ;;  %v3056_v50 = vsel %vm2835_vm15, %v5881_v39, -inf }
 0xdb3   :  { %v5891_v22 = vmul.f32 0.35355338, %v2965_v36  ;;  %v3050_v53 = vsel %vm2828_vm5, %v5889_v11, -inf }
 0xdb4   :  { %v2842_v49 = vsel %vm2828_vm5, %v5879_v34, -inf }
 0xdb5   :  { %2843 = vmax.xlane.f32.xlu0 %v2842_v49  ;;  %v3053_v59 = vsel %vm2828_vm5, %v5891_v22, -inf }
 0xdb6   :  { %2840 = vmax.xlane.f32.xlu1 %v2839_v35 }
 0xdb9   :  { %3057 = vmax.xlane.f32.xlu0 %v3056_v50 }
 0xdbd   :  { %3051 = vmax.xlane.f32.xlu0 %v3050_v53 }
 0xdbe   :  { %v4543_v54 = vpop.f32.mrb[56].mxu0 }
 0xdbf   :  { %v5895_v57 = vmul.f32 0.35355338, %v4543_v54  ;;  %v3030_v51 = vpop.f32.mrb[57].mxu0  ;;  %v4551_v25 = vpop.f32.mrb[44].mxu1 }
 0xdc0   :  { %v5899_v29 = vmul.f32 0.35355338, %v3030_v51  ;;  %v4544_v42 = vpop.f32.mrb[58].mxu0  ;;  %v5901_v44 = vmul.f32 0.35355338, %v4551_v25  ;;  %v3183_v55 = vpop.f32.mrb[45].mxu1 }
 0xdc1   :  { %v3033_v62 = vpop.f32.mrb[59].mxu0  ;;  %3054 = vmax.xlane.f32.xlu0 %v3053_v59  ;;  %v4552_v0 = vpop.f32.mrb[46].mxu1  ;;  %v3065_v61 = vsel %vm2835_vm15, %v5895_v57, -inf  ;;  %v5911_v58 = vmul.f32 0.35355338, %v3183_v55 }
 0xdc2   :  { %v3059_v6 = vsel %vm2828_vm5, %v5899_v29, -inf  ;;  %v3186_v52 = vpop.f32.mrb[47].mxu1  ;;  %v5905_v47 = vmul.f32 0.35355338, %v3033_v62  ;;  %v3277_v1 = vsel %vm2835_vm15, %v5901_v44, -inf }
 0xdc3   :  { %3060 = vmax.xlane.f32.xlu1 %v3059_v6  ;;  %v5913_v2 = vmul.f32 0.35355338, %v3186_v52  ;;  %v3271_v19 = vsel %vm2828_vm5, %v5911_v58, -inf }
 0xdc4   :  { %v3062_v60 = vsel %vm2828_vm5, %v5905_v47, -inf }
 0xdc5   :  { %3066 = vmax.xlane.f32.xlu0 %v3065_v61  ;;  %v3274_v48 = vsel %vm2828_vm5, %v5913_v2, -inf }
 0xdc7   :  { %3278 = vmax.xlane.f32.xlu1 %v3277_v1 }
 0xdc9   :  { %3063 = vmax.xlane.f32.xlu0 %v3062_v60 }
 0xdcb   :  { %3272 = vmax.xlane.f32.xlu1 %v3271_v19 }
 0xdcd   :  { %3275 = vmax.xlane.f32.xlu0 %v3274_v48 }
 0xdce   :  { %v4559_v9 = vpop.f32.mrb[60].mxu0 }
 0xdcf   :  { %v3251_v10 = vpop.f32.mrb[61].mxu0  ;;  %v5933_v40 = vmul.f32 0.35355338, %v4559_v9 }
 0xdd0   :  { %v5921_v17 = vmul.f32 0.35355338, %v3251_v10  ;;  %v4560_v13 = vpop.f32.mrb[62].mxu0  ;;  %v4567_v18 = vpop.f32.mrb[48].mxu1 }
 0xdd1   :  { %v3254_v37 = vpop.f32.mrb[63].mxu0  ;;  %v5923_v38 = vmul.f32 0.35355338, %v4567_v18  ;;  %v3404_v20 = vpop.f32.mrb[49].mxu1  ;;  %v3286_v50 = vsel %vm2835_vm15, %v5933_v40, -inf }
 0xdd2   :  { %v3280_v27 = vsel %vm2828_vm5, %v5921_v17, -inf  ;;  %v4568_v43 = vpop.f32.mrb[50].mxu1  ;;  %v5927_v31 = vmul.f32 0.35355338, %v3404_v20  ;;  %v5937_v49 = vmul.f32 0.35355338, %v3254_v37 }
 0xdd3   :  { %3281 = vmax.xlane.f32.xlu1 %v3280_v27  ;;  %v3407_v45 = vpop.f32.mrb[51].mxu1  ;;  %v3498_v5 = vsel %vm2835_vm15, %v5923_v38, -inf }
 0xdd4   :  { %v5931_v23 = vmul.f32 0.35355338, %v3407_v45  ;;  %3499 = vmax.xlane.f32.xlu0 %v3498_v5  ;;  %v3492_v35 = vsel %vm2828_vm5, %v5927_v31, -inf  ;;  %v3283_v53 = vsel %vm2828_vm5, %v5937_v49, -inf }
 0xdd6   :  { %v3495_v36 = vsel %vm2828_vm5, %v5931_v23, -inf }
 0xdd7   :  { %3496 = vmax.xlane.f32.xlu1 %v3495_v36 }
 0xdd8   :  { %3493 = vmax.xlane.f32.xlu0 %v3492_v35 }
 0xddb   :  { %3287 = vmax.xlane.f32.xlu1 %v3286_v50 }
 0xddc   :  { %3284 = vmax.xlane.f32.xlu0 %v3283_v53 }
 0xdde   :  { %v4575_v54 = vpop.f32.mrb[64].mxu0 }
 0xddf   :  { %v3472_v51 = vpop.f32.mrb[65].mxu0  ;;  %v5947_v55 = vmul.f32 0.35355338, %v4575_v54 }
 0xde0   :  { %v5945_v59 = vmul.f32 0.35355338, %v3472_v51  ;;  %v4576_v25 = vpop.f32.mrb[66].mxu0 }
 0xde1   :  { %v3475_v42 = vpop.f32.mrb[67].mxu0  ;;  %v3507_v52 = vsel %vm2835_vm15, %v5947_v55, -inf }
 0xde2   :  { %v5949_v62 = vmul.f32 0.35355338, %v3475_v42  ;;  %v3501_v0 = vsel %vm2828_vm5, %v5945_v59, -inf }
 0xde3   :  { %3502 = vmax.xlane.f32.xlu0 %v3501_v0 }
 0xde4   :  { %v3504_v6 = vsel %vm2828_vm5, %v5949_v62, -inf }
 0xde5   :  { %3505 = vmax.xlane.f32.xlu1 %v3504_v6 }
 0xde7   :  { %3508 = vmax.xlane.f32.xlu0 %v3507_v52 }
 0xe2e   :  { %v2838_v61 = vpop.xlane.xlu1 %2837 }
 0xe2f   :  { %v2850_v1 = vsub.f32 %v5861_v26, %v2838_v61  ;;  %v2831_v60 = vpop.xlane.xlu0 %2830 }
 0xe30   :  { %v2848_v19 = vsub.f32 %v5863_v7, %v2831_v60 }
 0xe31   :  { %v2858_v48 = vmul.f32 1.442695, %v2850_v1 }
 0xe32   :  { %v2854_v9 = vmul.f32 1.442695, %v2848_v19  ;;  %v2834_v10 = vpop.xlane.xlu1 %2833 }
 0xe33   :  { %4770 = vpow2.f32 %v2858_v48  ;;  %v2849_v13 = vsub.f32 %v5867_v30, %v2834_v10 }
 0xe34   :  { %4772 = vpow2.f32 %v2854_v9 }
 0xe35   :  { %v2856_v18 = vmul.f32 1.442695, %v2849_v13 }
 0xe37   :  { %4774 = vpow2.f32 %v2856_v18 }
 0xe3d   :  { %v5960_v37 = vpop.eup %4770 }
 0xe3e   :  { %v2872_v20 = vsel %vm2835_vm15, %v5960_v37, 0.0  ;;  %v5964_v27 = vpop.eup %4772 }
 0xe3f   :  { %v2847_v26 = vpop.xlane.xlu1 %2846  ;;  %2873 = vadd.xlane.f32.xlu1 %v2872_v20  ;;  %v2866_v30 = vsel %vm2828_vm5, %v5964_v27, 0.0 }
 0xe40   :  { %v2853_v7 = vsub.f32 %v5873_v24, %v2847_v26 }
 0xe41   :  { %v5967_v43 = vpop.eup %4774 }
 0xe42   :  { %v2864_v45 = vmul.f32 1.442695, %v2853_v7  ;;  %v2844_v5 = vpop.xlane.xlu0 %2843  ;;  %v2869_v36 = vsel %vm2828_vm5, %v5967_v43, 0.0 }
 0xe43   :  { %v2852_v35 = vsub.f32 %v5879_v34, %v2844_v5  ;;  %v2841_v50 = vpop.xlane.xlu1 %2840  ;;  %2867 = vadd.xlane.f32.xlu1 %v2866_v30  ;;  %2870 = vadd.xlane.f32.xlu0 %v2869_v36 }
 0xe44   :  { %4776 = vpow2.f32 %v2864_v45  ;;  %v2851_v53 = vsub.f32 %v5875_v46, %v2841_v50 }
 0xe45   :  { %v2862_v54 = vmul.f32 1.442695, %v2852_v35 }
 0xe46   :  { %v2860_v24 = vmul.f32 1.442695, %v2851_v53  ;;  %v3058_v51 = vpop.xlane.xlu0 %3057 }
 0xe47   :  { %4778 = vpow2.f32 %v2862_v54  ;;  %v3070_v25 = vsub.f32 %v5881_v39, %v3058_v51 }
 0xe48   :  { %4780 = vpow2.f32 %v2860_v24 }
 0xe49   :  { %v3078_v42 = vmul.f32 1.442695, %v3070_v25 }
 0xe4a   :  { %v3052_v0 = vpop.xlane.xlu0 %3051 }
 0xe4b   :  { %4782 = vpow2.f32 %v3078_v42  ;;  %v3068_v6 = vsub.f32 %v5889_v11, %v3052_v0 }
 0xe4d   :  { %v3074_v52 = vmul.f32 1.442695, %v3068_v6 }
 0xe4e   :  { %v5977_v34 = vpop.eup %4776  ;;  %v3055_v61 = vpop.xlane.xlu0 %3054 }
 0xe4f   :  { %4784 = vpow2.f32 %v3074_v52  ;;  %v3069_v1 = vsub.f32 %v5891_v22, %v3055_v61  ;;  %v2881_v46 = vsel %vm2835_vm15, %v5977_v34, 0.0 }
 0xe50   :  { %v3061_v60 = vpop.xlane.xlu1 %3060  ;;  %2882 = vadd.xlane.f32.xlu1 %v2881_v46 }
 0xe51   :  { %v5982_v19 = vpop.eup %4778  ;;  %v3076_v39 = vmul.f32 1.442695, %v3069_v1  ;;  %v3071_v48 = vsub.f32 %v5899_v29, %v3061_v60 }
 0xe52   :  { %v5985_v9 = vpop.eup %4780  ;;  %v3067_v11 = vpop.xlane.xlu0 %3066  ;;  %v2878_v10 = vsel %vm2828_vm5, %v5982_v19, 0.0 }
 0xe53   :  { %4786 = vpow2.f32 %v3076_v39  ;;  %v3080_v13 = vmul.f32 1.442695, %v3071_v48  ;;  %v3073_v22 = vsub.f32 %v5895_v57, %v3067_v11  ;;  %2879 = vadd.xlane.f32.xlu0 %v2878_v10  ;;  %v2875_v18 = vsel %vm2828_vm5, %v5985_v9, 0.0 }
 0xe54   :  { %2876 = vadd.xlane.f32.xlu1 %v2875_v18  ;;  %v3279_v20 = vpop.xlane.xlu1 %3278 }
 0xe55   :  { %v5992_v26 = vpop.eup %4782  ;;  %4788 = vpow2.f32 %v3080_v13  ;;  %v3084_v29 = vmul.f32 1.442695, %v3073_v22  ;;  %v3291_v7 = vsub.f32 %v5901_v44, %v3279_v20 }
 0xe56   :  { %v3064_v45 = vpop.xlane.xlu0 %3063  ;;  %v3092_v5 = vsel %vm2835_vm15, %v5992_v26, 0.0 }
 0xe57   :  { %4790 = vpow2.f32 %v3084_v29  ;;  %v3299_v30 = vmul.f32 1.442695, %v3291_v7  ;;  %v3072_v57 = vsub.f32 %v5905_v47, %v3064_v45  ;;  %3093 = vadd.xlane.f32.xlu0 %v3092_v5 }
 0xe58   :  { %v3273_v36 = vpop.xlane.xlu1 %3272 }
 0xe59   :  { %v5998_v35 = vpop.eup %4784  ;;  %4792 = vpow2.f32 %v3299_v30  ;;  %v3082_v50 = vmul.f32 1.442695, %v3072_v57  ;;  %v3289_v53 = vsub.f32 %v5911_v58, %v3273_v36 }
 0xe5a   :  { %v3276_v54 = vpop.xlane.xlu0 %3275  ;;  %v3086_v44 = vsel %vm2828_vm5, %v5998_v35, 0.0 }
 0xe5b   :  { %4794 = vpow2.f32 %v3082_v50  ;;  %v3295_v24 = vmul.f32 1.442695, %v3289_v53  ;;  %v3290_v51 = vsub.f32 %v5913_v2, %v3276_v54  ;;  %3087 = vadd.xlane.f32.xlu1 %v3086_v44 }
 0xe5d   :  { %v6004_v25 = vpop.eup %4786  ;;  %4796 = vpow2.f32 %v3295_v24  ;;  %v3297_v47 = vmul.f32 1.442695, %v3290_v51 }
 0xe5e   :  { %v3089_v42 = vsel %vm2828_vm5, %v6004_v25, 0.0 }
 0xe5f   :  { %v6008_v0 = vpop.eup %4788  ;;  %4798 = vpow2.f32 %v3297_v47  ;;  %3090 = vadd.xlane.f32.xlu0 %v3089_v42 }
 0xe60   :  { %v3282_v58 = vpop.xlane.xlu1 %3281  ;;  %v3095_v6 = vsel %vm2828_vm5, %v6008_v0, 0.0 }
 0xe61   :  { %v6012_v52 = vpop.eup %4790  ;;  %v3292_v2 = vsub.f32 %v5921_v17, %v3282_v58  ;;  %3096 = vadd.xlane.f32.xlu1 %v3095_v6  ;;  %v3500_v61 = vpop.xlane.xlu0 %3499 }
 0xe62   :  { %v3101_v1 = vsel %vm2835_vm15, %v6012_v52, 0.0  ;;  %v3512_v46 = vsub.f32 %v5923_v38, %v3500_v61 }
 0xe63   :  { %v6018_v60 = vpop.eup %4792  ;;  %v3301_v39 = vmul.f32 1.442695, %v3292_v2  ;;  %3102 = vadd.xlane.f32.xlu0 %v3101_v1 }
 0xe64   :  { %v3520_v48 = vmul.f32 1.442695, %v3512_v46  ;;  %v3313_v11 = vsel %vm2835_vm15, %v6018_v60, 0.0  ;;  %v3497_v10 = vpop.xlane.xlu1 %3496 }
 0xe65   :  { %v6022_v13 = vpop.eup %4794  ;;  %4800 = vpow2.f32 %v3301_v39  ;;  %3314 = vadd.xlane.f32.xlu1 %v3313_v11  ;;  %v3511_v17 = vsub.f32 %v5931_v23, %v3497_v10  ;;  %v3494_v22 = vpop.xlane.xlu0 %3493 }
 0xe66   :  { %4802 = vpow2.f32 %v3520_v48  ;;  %v3098_v38 = vsel %vm2828_vm5, %v6022_v13, 0.0  ;;  %v3510_v18 = vsub.f32 %v5927_v31, %v3494_v22 }
 0xe67   :  { %v6028_v20 = vpop.eup %4796  ;;  %3099 = vadd.xlane.f32.xlu0 %v3098_v38  ;;  %v3518_v29 = vmul.f32 1.442695, %v3511_v17 }
 0xe68   :  { %v3516_v7 = vmul.f32 1.442695, %v3510_v18  ;;  %v3307_v45 = vsel %vm2828_vm5, %v6028_v20, 0.0  ;;  %v3288_v5 = vpop.xlane.xlu1 %3287 }
 0xe69   :  { %v6032_v30 = vpop.eup %4798  ;;  %4804 = vpow2.f32 %v3518_v29  ;;  %3308 = vadd.xlane.f32.xlu1 %v3307_v45  ;;  %v3294_v23 = vsub.f32 %v5933_v40, %v3288_v5  ;;  %v3285_v57 = vpop.xlane.xlu0 %3284 }
 0xe6a   :  { %4806 = vpow2.f32 %v3516_v7  ;;  %v3310_v31 = vsel %vm2828_vm5, %v6032_v30, 0.0  ;;  %v3293_v36 = vsub.f32 %v5937_v49, %v3285_v57 }
 0xe6b   :  { %3311 = vadd.xlane.f32.xlu0 %v3310_v31  ;;  %v3305_v50 = vmul.f32 1.442695, %v3294_v23 }
 0xe6c   :  { %v3303_v53 = vmul.f32 1.442695, %v3293_v36 }
 0xe6d   :  { %4808 = vpow2.f32 %v3305_v50 }
 0xe6e   :  { %4810 = vpow2.f32 %v3303_v53 }
 0xe6f   :  { %v6038_v54 = vpop.eup %4800 }
 0xe70   :  { %v6040_v44 = vpop.eup %4802  ;;  %v3316_v24 = vsel %vm2828_vm5, %v6038_v54, 0.0  ;;  %v3503_v40 = vpop.xlane.xlu0 %3502 }
 0xe71   :  { %3317 = vadd.xlane.f32.xlu1 %v3316_v24  ;;  %v3513_v51 = vsub.f32 %v5945_v59, %v3503_v40  ;;  %v3534_v47 = vsel %vm2835_vm15, %v6040_v44, 0.0 }
 0xe72   :  { %v3506_v49 = vpop.xlane.xlu1 %3505  ;;  %3535 = vadd.xlane.f32.xlu0 %v3534_v47 }
 0xe73   :  { %v6047_v42 = vpop.eup %4804  ;;  %v3522_v58 = vmul.f32 1.442695, %v3513_v51  ;;  %v3514_v6 = vsub.f32 %v5949_v62, %v3506_v49 }
 0xe74   :  { %v6050_v2 = vpop.eup %4806  ;;  %v3509_v61 = vpop.xlane.xlu0 %3508  ;;  %v3531_v1 = vsel %vm2828_vm5, %v6047_v42, 0.0 }
 0xe75   :  { %4812 = vpow2.f32 %v3522_v58  ;;  %v3524_v46 = vmul.f32 1.442695, %v3514_v6  ;;  %v3515_v59 = vsub.f32 %v5947_v55, %v3509_v61  ;;  %3532 = vadd.xlane.f32.xlu1 %v3531_v1  ;;  %v3528_v39 = vsel %vm2828_vm5, %v6050_v2, 0.0 }
 0xe76   :  { %3529 = vadd.xlane.f32.xlu0 %v3528_v39 }
 0xe77   :  { %v6057_v48 = vpop.eup %4808  ;;  %4814 = vpow2.f32 %v3524_v46  ;;  %v3526_v11 = vmul.f32 1.442695, %v3515_v59 }
 0xe78   :  { %v6059_v62 = vpop.eup %4810  ;;  %v3322_v10 = vsel %vm2835_vm15, %v6057_v48, 0.0 }
 0xe79   :  { %4816 = vpow2.f32 %v3526_v11  ;;  %3323 = vadd.xlane.f32.xlu1 %v3322_v10  ;;  %v3319_v17 = vsel %vm2828_vm5, %v6059_v62, 0.0 }
 0xe7a   :  { %3320 = vadd.xlane.f32.xlu0 %v3319_v17 }
 0xe7f   :  { %v6065_v55 = vpop.eup %4812 }
 0xe80   :  { %v3537_v22 = vsel %vm2828_vm5, %v6065_v55, 0.0 }
 0xe81   :  { %v6069_v38 = vpop.eup %4814  ;;  %3538 = vadd.xlane.f32.xlu0 %v3537_v22 }
 0xe82   :  { %v3540_v18 = vsel %vm2828_vm5, %v6069_v38, 0.0 }
 0xe83   :  { %v6073_v29 = vpop.eup %4816  ;;  %3541 = vadd.xlane.f32.xlu1 %v3540_v18 }
 0xe84   :  { %v3543_v7 = vsel %vm2835_vm15, %v6073_v29, 0.0 }
 0xe85   :  { %3544 = vadd.xlane.f32.xlu0 %v3543_v7 }
 0xecc   :  { %v2874_v45 = vpop.xlane.xlu1 %2873 }
 0xecd   :  { %4818 = vrcp.f32 %v2874_v45 }
 0xed0   :  { %v2868_v5 = vpop.xlane.xlu1 %2867  ;;  %v2871_v23 = vpop.xlane.xlu0 %2870 }
 0xed1   :  { %4820 = vrcp.f32 %v2868_v5 }
 0xed2   :  { %4822 = vrcp.f32 %v2871_v23 }
 0xed7   :  { %v4819_v57 = vpop.eup %4818 }
 0xed8   :  { %v6078_v31 = vmul.f32 %v4819_v57, %v5960_v37 }
 0xeda   :  { %2898 = vst.msk [vmem:[%s6472_s25 + $0x10] sm:$0x1] %vm2835_vm15, %v6078_v31 }
 0xedb   :  { %v4821_v36 = vpop.eup %4820 }
 0xedc   :  { %v4823_v50 = vpop.eup %4822  ;;  %v6086_v53 = vmul.f32 %v4821_v36, %v5964_v27 }
 0xedd   :  { %v6089_v24 = vmul.f32 %v4823_v50, %v5967_v43  ;;  %v2883_v40 = vpop.xlane.xlu1 %2882 }
 0xede   :  { %2896 = vst.msk [vmem:[%s6472_s25] sm:$0xff] %vm2828_vm5, %v6086_v53  ;;  %4824 = vrcp.f32 %v2883_v40 }
 0xedf   :  { %2897 = vst.msk [vmem:[%s6472_s25 + $0x8] sm:$0xff] %vm2828_vm5, %v6089_v24 }
 0xee0   :  { %v2880_v37 = vpop.xlane.xlu0 %2879 }
 0xee1   :  { %4826 = vrcp.f32 %v2880_v37  ;;  %v2877_v27 = vpop.xlane.xlu1 %2876 }
 0xee2   :  { %4828 = vrcp.f32 %v2877_v27 }
 0xee4   :  { %v3094_v43 = vpop.xlane.xlu0 %3093 }
 0xee5   :  { %4830 = vrcp.f32 %v3094_v43 }
 0xee8   :  { %v4825_v51 = vpop.eup %4824  ;;  %v3088_v47 = vpop.xlane.xlu1 %3087 }
 0xee9   :  { %v6102_v49 = vmul.f32 %v4825_v51, %v5977_v34  ;;  %4832 = vrcp.f32 %v3088_v47 }
 0xeeb   :  { %v4827_v58 = vpop.eup %4826  ;;  %2901 = vst.msk [vmem:[%s6472_s25 + $0x70] sm:$0x1] %vm2835_vm15, %v6102_v49 }
 0xeec   :  { %v4829_v6 = vpop.eup %4828  ;;  %v6110_v61 = vmul.f32 %v4827_v58, %v5982_v19  ;;  %v3091_v1 = vpop.xlane.xlu0 %3090 }
 0xeed   :  { %v6113_v46 = vmul.f32 %v4829_v6, %v5985_v9  ;;  %4834 = vrcp.f32 %v3091_v1 }
 0xeee   :  { %2900 = vst.msk [vmem:[%s6472_s25 + $0x68] sm:$0xff] %vm2828_vm5, %v6110_v61  ;;  %v3097_v34 = vpop.xlane.xlu1 %3096 }
 0xeef   :  { %v4831_v59 = vpop.eup %4830  ;;  %2899 = vst.msk [vmem:[%s6472_s25 + $0x60] sm:$0xff] %vm2828_vm5, %v6113_v46  ;;  %4836 = vrcp.f32 %v3097_v34 }
 0xef0   :  { %v3109_v19 = vmul.f32 %v4831_v59, %v5992_v26  ;;  %v3103_v9 = vpop.xlane.xlu0 %3102 }
 0xef1   :  { %4838 = vrcp.f32 %v3103_v9 }
 0xef2   :  { %4231 = vst.msk [vmem:[%s6472_s25 + $0x28] sm:$0x1] %vm2835_vm15, %v3109_v19  ;;  %v3315_v39 = vpop.xlane.xlu1 %3314  ;;  %v3125_v1 = vadd.f32 %v3109_v19, %v6078_v31 }
 0xef3   :  { %v4833_v11 = vpop.eup %4832  ;;  %4840 = vrcp.f32 %v3315_v39 }
 0xef4   :  { %v3105_v10 = vmul.f32 %v4833_v11, %v5998_v35  ;;  %v3100_v17 = vpop.xlane.xlu0 %3099  ;;  %v6197_v11 = vand.u32 127, %v1726_v8 }
 0xef5   :  { %4842 = vrcp.f32 %v3100_v17 }
 0xef6   :  { %4229 = vst.msk [vmem:[%s6472_s25 + $0x18] sm:$0xff] %vm2828_vm5, %v3105_v10  ;;  %v3309_v26 = vpop.xlane.xlu1 %3308  ;;  %v3123_v9 = vadd.f32 %v3105_v10, %v6086_v53  ;;  %vm3761_vm2 = vcmp.lt.s32.totalorder %v6197_v11, %v5597_v16 }
 0xef7   :  { %v4835_v22 = vpop.eup %4834  ;;  %4844 = vrcp.f32 %v3309_v26 }
 0xef8   :  { %v3107_v18 = vmul.f32 %v4835_v22, %v6004_v25  ;;  %v3312_v7 = vpop.xlane.xlu0 %3311 }
 0xef9   :  { %v4837_v45 = vpop.eup %4836  ;;  %4846 = vrcp.f32 %v3312_v7 }
 0xefa   :  { %4230 = vst.msk [vmem:[%s6472_s25 + $0x20] sm:$0xff] %vm2828_vm5, %v3107_v18  ;;  %v6141_v35 = vmul.f32 %v4837_v45, %v6008_v0 }
 0xefb   :  { %v4839_v5 = vpop.eup %4838 }
 0xefc   :  { %4232 = vst.msk [vmem:[%s6472_s25 + $0x78] sm:$0xff] %vm2828_vm5, %v6141_v35  ;;  %v6149_v25 = vmul.f32 %v4839_v5, %v6012_v52 }
 0xefd   :  { %v4841_v23 = vpop.eup %4840 }
 0xefe   :  { %4234 = vst.msk [vmem:[%s6472_s25 + $0x88] sm:$0x1] %vm2835_vm15, %v6149_v25  ;;  %v3330_v0 = vmul.f32 %v4841_v23, %v6018_v60  ;;  %v3318_v57 = vpop.xlane.xlu1 %3317 }
 0xeff   :  { %v4843_v36 = vpop.eup %4842  ;;  %4848 = vrcp.f32 %v3318_v57  ;;  %v3536_v50 = vpop.xlane.xlu0 %3535 }
 0xf00   :  { %4241 = vst.msk [vmem:[%s6472_s25 + $0x40] sm:$0x1] %vm2835_vm15, %v3330_v0  ;;  %v6162_v52 = vmul.f32 %v4843_v36, %v6022_v13  ;;  %4850 = vrcp.f32 %v3536_v50  ;;  %v3346_v39 = vadd.f32 %v3330_v0, %v3125_v1  ;;  %v3126_v50 = vadd.f32 %v6141_v35, %v6113_v46 }
 0xf01   :  { %v4845_v40 = vpop.eup %4844  ;;  %v3128_v46 = vadd.f32 %v6149_v25, %v6102_v49 }
 0xf02   :  { %4233 = vst.msk [vmem:[%s6472_s25 + $0x80] sm:$0xff] %vm2828_vm5, %v6162_v52  ;;  %v3326_v60 = vmul.f32 %v4845_v40, %v6028_v20  ;;  %v3533_v37 = vpop.xlane.xlu1 %3532 }
 0xf03   :  { %v4847_v27 = vpop.eup %4846  ;;  %4852 = vrcp.f32 %v3533_v37  ;;  %v3530_v43 = vpop.xlane.xlu0 %3529 }
 0xf04   :  { %4239 = vst.msk [vmem:[%s6472_s25 + $0x30] sm:$0xff] %vm2828_vm5, %v3326_v60  ;;  %v3328_v13 = vmul.f32 %v4847_v27, %v6032_v30  ;;  %4854 = vrcp.f32 %v3530_v43  ;;  %v3124_v30 = vadd.f32 %v3107_v18, %v6089_v24  ;;  %v6194_v24 = vsub.s32 0, %v5597_v16 }
 0xf05   :  { %v3344_v17 = vadd.f32 %v3326_v60, %v3123_v9  ;;  %v3127_v60 = vadd.f32 %v6162_v52, %v6110_v61 }
 0xf06   :  { %4240 = vst.msk [vmem:[%s6472_s25 + $0x38] sm:$0xff] %vm2828_vm5, %v3328_v13  ;;  %v3324_v51 = vpop.xlane.xlu1 %3323  ;;  %v3345_v19 = vadd.f32 %v3328_v13, %v3124_v30 }
 0xf07   :  { %4856 = vrcp.f32 %v3324_v51  ;;  %v3321_v20 = vpop.xlane.xlu0 %3320 }
 0xf08   :  { %4858 = vrcp.f32 %v3321_v20 }
 0xf09   :  { %v4849_v47 = vpop.eup %4848 }
 0xf0a   :  { %v4851_v58 = vpop.eup %4850  ;;  %v3332_v6 = vmul.f32 %v4849_v47, %v6038_v54 }
 0xf0b   :  { %v3551_v34 = vmul.f32 %v4851_v58, %v6040_v44 }
 0xf0c   :  { %4242 = vst.msk [vmem:[%s6472_s25 + $0x90] sm:$0xff] %vm2828_vm5, %v3332_v6  ;;  %v3347_v37 = vadd.f32 %v3332_v6, %v3126_v50 }
 0xf0d   :  { %v4853_v59 = vpop.eup %4852  ;;  %4251 = vst.msk [vmem:[%s6472_s25 + $0x58] sm:$0x1] %vm2835_vm15, %v3551_v34  ;;  %v3567_v10 = vadd.f32 %v3551_v34, %v3346_v39 }
 0xf0e   :  { %v4855_v54 = vpop.eup %4854  ;;  %v3549_v31 = vmul.f32 %v4853_v59, %v6047_v42  ;;  %v3539_v44 = vpop.xlane.xlu0 %3538 }
 0xf0f   :  { %v3547_v53 = vmul.f32 %v4855_v54, %v6050_v2  ;;  %4860 = vrcp.f32 %v3539_v44  ;;  %v3573_v0 = vmul.f32 0.25, %v3567_v10 }
 0xf10   :  { %4250 = vst.msk [vmem:[%s6472_s25 + $0x50] sm:$0xff] %vm2828_vm5, %v3549_v31  ;;  %v3542_v26 = vpop.xlane.xlu1 %3541  ;;  %v3566_v42 = vadd.f32 %v3549_v31, %v3345_v19 }
 0xf11   :  { %v4857_v22 = vpop.eup %4856  ;;  %4249 = vst.msk [vmem:[%s6472_s25 + $0x48] sm:$0xff] %vm2828_vm5, %v3547_v53  ;;  %v3565_v8 = vadd.f32 %v3547_v53, %v3344_v17  ;;  %4862 = vrcp.f32 %v3542_v26  ;;  %v3578_v36 = vpack.c.bf16 %v3573_v0, %v3573_v0 }
 0xf12   :  { %v4859_v18 = vpop.eup %4858  ;;  %v3336_v2 = vmul.f32 %v4857_v22, %v6057_v48  ;;  %v3545_v7 = vpop.xlane.xlu0 %3544  ;;  %v3572_v45 = vmul.f32 0.25, %v3566_v42 }
 0xf13   :  { %v3334_v5 = vmul.f32 %v4859_v18, %v6059_v62  ;;  %4864 = vrcp.f32 %v3545_v7  ;;  %v6213_v23 = vrot.slane %v3565_v8, %v6194_v24  ;;  %v3571_v57 = vmul.f32 0.25, %v3565_v8 }
 0xf14   :  { %4244 = vst.msk [vmem:[%s6472_s25 + $0xa0] sm:$0x1] %vm2835_vm15, %v3336_v2  ;;  %v3767_v62 = vsel %vm3761_vm2, 1, %v4990_v15  ;;  %v4259_v35 = vmul.f32 -1.442695, %v3565_v8 }
 0xf15   :  { %4243 = vst.msk [vmem:[%s6472_s25 + $0x98] sm:$0xff] %vm2828_vm5, %v3334_v5  ;;  %3739 = vbcast.lane.b32.xlu0 %v6213_v23, 265  ;;  %3735 = vbcast.lane.b32.xlu1 %v6213_v23, 257  ;;  %v3577_v48 = vpack.c.bf16 %v3572_v45, %v3571_v57  ;;  %v3348_v52 = vadd.f32 %v3334_v5, %v3127_v60 }
 0xf16   :  { %4866 = vpow2.f32 %v4259_v35  ;;  %v1094_v35 = vadd.f32 %v5472_v32, %v5467_v28 }
 0xf17   :  { %4581 = vmatprep.mubr.msk.bf16.mxu1 %vm2828_vm5, %v3577_v48 }
 0xf18   :  { %4582 = vmatmul.mubr.msk.bf16.vlgmr.msra.gmra.mrb[52].mxu1 %vm2828_vm5, %v3578_v36 }
 0xf19   :  { %v4861_v40 = vpop.eup %4860  ;;  %3769 = vrot.lane.b32.xlu0 %v3767_v62, %s4991_s30  ;;  %4586 = vmatpush3.bf16.msra.mxu1 %v5685_v33  ;;  %v3726_v33 = vadd.s32 8, %v5597_v16 }
 0xf1a   :  { %v3553_v27 = vmul.f32 %v4861_v40, %v6065_v55  ;;  %4587 = vmatprep.subr.bf16.mxu1 %v5691_v41  ;;  %v3349_v55 = vadd.f32 %v3336_v2, %v3128_v46 }
 0xf1b   :  { %v4863_v43 = vpop.eup %4862  ;;  %vm3762_vm7 = vcmp.lt.s32.totalorder %v6197_v11, %v3726_v33 }
 0xf1c   :  { %4252 = vst.msk [vmem:[%s6472_s25 + $0xa8] sm:$0xff] %vm2828_vm5, %v3553_v27  ;;  %v3568_v13 = vadd.f32 %v3553_v27, %v3347_v37  ;;  %v3555_v61 = vmul.f32 %v4863_v43, %v6069_v38  ;;  %v3768_v59 = vsel %vm3762_vm7, 1, %v4990_v15  ;;  %v1087_v27 = vadd.f32 %v5460_v21, %v5455_v14 }
 0xf1d   :  { %v4865_v51 = vpop.eup %4864  ;;  %4588 = vmatpush3.bf16.msra.mxu1 %v5691_v41 }
 0xf1e   :  { %4253 = vst.msk [vmem:[%s6472_s25 + $0xb0] sm:$0xff] %vm2828_vm5, %v3555_v61  ;;  %v3557_v49 = vmul.f32 %v4865_v51, %v6073_v29  ;;  %v3744_v25 = vrot.slane %v3568_v13, %v6194_v24  ;;  %v3569_v20 = vadd.f32 %v3555_v61, %v3348_v52  ;;  %v3574_v47 = vmul.f32 0.25, %v3568_v13  ;;  %4599 = vmatprep.subr.bf16.mxu1 %v4980_v12 }
 0xf1f   :  { %v3825_v38 = vrot.slane %v3568_v13, 7  ;;  %v4260_v58 = vmul.f32 -1.442695, %v3568_v13  ;;  %v1088_v46 = vrot.slane %v1087_v27, 4 }
 0xf20   :  { %4254 = vst.msk [vmem:[%s6472_s25 + $0xb8] sm:$0x1] %vm2835_vm15, %v3557_v49  ;;  %3747 = vbcast.lane.b32.xlu1 %v3744_v25, 257  ;;  %v3575_v6 = vmul.f32 0.25, %v3569_v20  ;;  %v3570_v1 = vadd.f32 %v3557_v49, %v3349_v55  ;;  %v4867_v9 = vpop.eup %4866  ;;  %s4992_s25 = smov 127  }
 0xf21   :  { %v3826_v29 = vsel %vm6490_vm6, %v3825_v38, %v3565_v8  ;;  %4868 = vpow2.f32 %v4260_v58  ;;  %v3708_v54 = vadd.f32 1.0, %v4867_v9  ;;  %v1089_v49 = vadd.f32 %v1088_v46, %v1087_v27 }
 0xf22   :  { %v3579_v41 = vpack.c.bf16 %v3575_v6, %v3574_v47  ;;  %v3576_v34 = vmul.f32 0.25, %v3570_v1 }
 0xf23   :  { %v1090_v14 = vrot.slane %v1089_v49, 2 }
 0xf24   :  { %4589 = vmatprep.mubr.msk.bf16.mxu1 %vm2828_vm5, %v3579_v41  ;;  %3751 = vbcast.lane.b32.xlu1 %v3744_v25, 265  ;;  %v3580_v30 = vpack.c.bf16 %v3576_v34, %v3576_v34 }
 0xf25   :  { %v1091_v58 = vadd.f32 %v1090_v14, %v1089_v49 }
 0xf26   :  { %4590 = vmatmul.mubr.msk.bf16.vlgmr.msra.gmra.mrb[56].mxu1 %vm2828_vm5, %v3580_v30 }
 0xf27   :  { %4607 = vmatprep.mubr.msk.bf16.mxu1 %vm6489_vm1, %v4980_v12  ;;  %v1092_v6 = vrot.slane %v1091_v58, 1 }
 0xf28   :  { %3771 = vrot.lane.b32.xlu1 %v3768_v59, %s4991_s30 }
 0xf29   :  { %v1093_v32 = vadd.f32 %v1092_v6, %v1091_v58 }
 0xf2b   :  { %v4869_v39 = vpop.eup %4868 }
 0xf2c   :  { %v3709_v31 = vadd.f32 1.0, %v4869_v39 }
 0xf2e   :  { %4870 = vrcp.f32 %v3709_v31 }
 0xf2f   :  { %4872 = vrcp.f32 %v3708_v54 }
 0xf38   :  { %v4871_v44 = vpop.eup %4870 }
 0xf39   :  { %v3716_v19 = vrot.slane %v4871_v44, 7  ;;  %v4873_v11 = vpop.eup %4872 }
 0xf3b   :  { %v6265_v17 = vsel %vm6490_vm6, %v3716_v19, %v4873_v11 }
 0xf87   :  { %v6267_v15 = vpop.permute.xlu0 %3739  ;;  %v6269_v53 = vpop.permute.xlu1 %3735 }
 0xf88   :  { %vm3757_vm10 = vcmp.eq.f32.partialorder %v6213_v23, %v6269_v53  ;;  %vm3753_vm14 = vcmp.gt.f32.partialorder %v6213_v23, %v6269_v53  ;;  %vm3758_vm2 = vcmp.eq.f32.partialorder %v6213_v23, %v6267_v15  ;;  %vm3754_vm1 = vcmp.gt.f32.partialorder %v6213_v23, %v6267_v15 }
 0xf8b   :  { %v3770_v10 = vpop.permute.xlu0 %3769 }
 0xf8c   :  { %vm3773_vm8 = vcmp.ne.s32.totalorder %v3770_v10, 0 }
 0xf8d   :  { %vm3775_vm11 = vmand %vm3757_vm10, %vm3773_vm8 }
 0xf8e   :  { %vm3779_vm15 = vmor %vm3753_vm14, %vm3775_vm11  ;;  %vm1144_vm14 = vcmask 0  }
 0xf8f   :  { %v4261_v8 = vsel %vm3779_vm15, 1.0, %v4980_v12  ;;  %vm6517_vm15 = vcmask 1041409  }
 0xf92   :  { %v6271_v26 = vpop.permute.xlu1 %3747 }
 0xf93   :  { %vm3759_vm9 = vcmp.eq.f32.partialorder %v3744_v25, %v6271_v26  ;;  %vm3755_vm12 = vcmp.gt.f32.partialorder %v3744_v25, %v6271_v26 }
 0xf94   :  { %vm3777_vm13 = vmand %vm3759_vm9, %vm3773_vm8 }
 0xf95   :  { %vm3781_vm5 = vmor %vm3755_vm12, %vm3777_vm13  ;;  %vm3722_vm13 = vcmask 123904  }
 0xf96   :  { %v6276_v42 = vpop.permute.xlu1 %3751  ;;  %v4263_v2 = vsel %vm3781_vm5, 1.0, %v4980_v12  ;;  %vm6518_vm5 = vmmov 0  }
 0xf97   :  { %vm3760_vm0 = vcmp.eq.f32.partialorder %v3744_v25, %v6276_v42  ;;  %vm3756_vm6 = vcmp.gt.f32.partialorder %v3744_v25, %v6276_v42  ;;  %v1095_v25 = vrot.slane %v1094_v35, 4 }
 0xf99   :  { %v1096_v21 = vadd.f32 %v1095_v25, %v1094_v35  ;;  %v3839_v35 = vsub.s32 1, %v5597_v16 }
 0xf9a   :  { %v3772_v22 = vpop.permute.xlu1 %3771 }
 0xf9b   :  { %vm3774_vm7 = vcmp.ne.s32.totalorder %v3772_v22, 0  ;;  %v1097_v38 = vrot.slane %v1096_v21, 2 }
 0xf9c   :  { %vm3776_vm4 = vmand %vm3758_vm2, %vm3774_vm7  ;;  %vm6519_vm2 = vcmask 523264  }
 0xf9d   :  { %vm3778_vm10 = vmand %vm3760_vm0, %vm3774_vm7  ;;  %vm3828_vm0 = vcmask 132104   ;;  %v1098_v28 = vadd.f32 %v1097_v38, %v1096_v21 }
 0xf9e   :  { %vm3780_vm8 = vmor %vm3754_vm1, %vm3776_vm4  ;;  %v3829_v23 = vsel %vm3828_vm0, %v3826_v29, -inf  ;;  %vm3879_vm1 = vcmask 1046528   ;;  %v1102_v29 = vmul.f32 0.00390625, %v1093_v32 }
 0xf9f   :  { %vm3782_vm9 = vmor %vm3756_vm6, %vm3778_vm10  ;;  %v4262_v18 = vsel %vm3780_vm8, 1.0, %v4980_v12  ;;  %v1099_v1 = vrot.slane %v1098_v28, 1  ;;  %vm6520_vm10 = vcmask 261120  }
 0xfa0   :  { %v4264_v7 = vsel %vm3782_vm9, 1.0, %v4980_v12  ;;  %v4654_v45 = vpack.i.bf16 %v4262_v18, %v4261_v8  ;;  %v1104_v39 = vsub.f32 %v5424_v56, %v1102_v29  ;;  %v1105_v54 = vsub.f32 %v5434_v3, %v1102_v29 }
 0xfa1   :  { %v4659_v5 = vpack.i.bf16 %v4264_v7, %v4263_v2  ;;  %v1100_v41 = vadd.f32 %v1099_v1, %v1098_v28 }
 0xfa2   :  { %4655 = vrot.lane.b32.xlu0 %v4654_v45, %s4992_s25  ;;  %v1108_v22 = vmul.f32 %v1104_v39, %v1104_v39  ;;  %v1109_v8 = vmul.f32 %v1105_v54, %v1105_v54 }
 0xfa3   :  { %4660 = vrot.lane.b32.xlu1 %v4659_v5, %s4992_s25  ;;  %v1103_v31 = vmul.f32 0.00390625, %v1100_v41 }
 0xfa4   :  { %v1112_v3 = vsel %vm258_vm3, %v1108_v22, 0.0  ;;  %v1115_v45 = vsel %vm258_vm3, %v1109_v8, 0.0 }
 0xfa5   :  { %v1106_v7 = vsub.f32 %v5422_v4, %v1103_v31  ;;  %v1107_v56 = vsub.f32 %v5428_v63, %v1103_v31  ;;  %v3920_v4 = vld [vmem:[%s6464_s17] sm:$0xff]  ;;  %v3921_v63 = vld [vmem:[%s6464_s17 + $0x8] sm:$0xff] }
 0xfa7   :  { %v1110_v5 = vmul.f32 %v1106_v7, %v1106_v7 }
 0xfc1   :  { %3830 = vmax.xlane.f32.xlu0 %v3829_v23  ;;  %v1111_v23 = vmul.f32 %v1107_v56, %v1107_v56 }
 0xfeb   :  { %v4583_v0 = vpop.f32.mrb[52].mxu1 }
 0xfec   :  { %v3631_v57 = vpop.f32.mrb[53].mxu1  ;;  %v3883_v36 = vrot.slane %v4583_v0, 1  ;;  %v1118_v0 = vsel %vm258_vm3, %v1110_v5, 0.0 }
 0xfed   :  { %v4584_v48 = vpop.f32.mrb[54].mxu1  ;;  %v3880_v50 = vrot.slane %v3631_v57, 1  ;;  %v1121_v57 = vsel %vm258_vm3, %v1111_v23, 0.0 }
 0xfee   :  { %v3634_v62 = vpop.f32.mrb[55].mxu1  ;;  %v3924_v48 = vpack.c.bf16 %v3921_v63, %v3920_v4 }
 0xfef   :  { %v3881_v40 = vrot.slane %v3634_v62, 1  ;;  %v3984_v62 = vld [vmem:[%s6466_s19] sm:$0xff] }
 0xff0   :  { %4594 = vmatpush3.bf16.msra.mxu0 %v3924_v48 }
 0xff1   :  { %v6294_v60 = vsel %vm3879_vm1, %v3881_v40, %v3883_v36  ;;  %v6297_v37 = vsel %vm3879_vm1, %v3880_v50, %v3881_v40  ;;  %4611 = vmatprep.subr.bf16.mxu0 %v4980_v12  ;;  %v3986_v36 = vld [vmem:[%s6466_s19 + $0x10] sm:$0xff]  ;;  %v3987_v40 = vld [vmem:[%s6466_s19 + $0x18] sm:$0xff] }
 0xff2   :  { %v3994_v27 = vpack.c.bf16 %v3987_v40, %v3986_v36 }
 0xff9   :  { %v4591_v43 = vpop.f32.mrb[56].mxu1 }
 0xffa   :  { %v3688_v13 = vpop.f32.mrb[57].mxu1  ;;  %v3888_v51 = vrot.slane %v4591_v43, 1 }
 0xffb   :  { %v4592_v61 = vpop.f32.mrb[58].mxu1  ;;  %v3885_v55 = vrot.slane %v3688_v13, 1 }
 0xffc   :  { %v3691_v52 = vpop.f32.mrb[59].mxu1 }
 0xffd   :  { %v3886_v33 = vrot.slane %v3691_v52, 1 }
 0xfff   :  { %v6304_v20 = vsel %vm3879_vm1, %v3885_v55, %v3886_v33  ;;  %v6307_v47 = vsel %vm3879_vm1, %v3886_v33, %v3888_v51 }
0x1014   :  { %v4656_v34 = vpop.permute.xlu0 %4655 }
0x1015   :  { %v4661_v30 = vpop.permute.xlu1 %4660  ;;  %v4658_v59 = vunpack.i.h.bf16 %v4656_v34  ;;  %v4657_v9 = vunpack.i.l.bf16 %v4656_v34 }
0x1016   :  { %v4663_v44 = vunpack.i.h.bf16 %v4661_v30  ;;  %v4662_v19 = vunpack.i.l.bf16 %v4661_v30 }
0x1017   :  { %v3810_v11 = vsel %vm258_vm3, %v4658_v59, 0.0  ;;  %v3807_v10 = vsel %vm258_vm3, %v4657_v9, 0.0 }
0x1018   :  { %3811 = vadd.xlane.f32.xlu0 %v3810_v11  ;;  %3808 = vadd.xlane.f32.xlu1 %v3807_v10  ;;  %v3813_v18 = vsel %vm258_vm3, %v4662_v19, 0.0  ;;  %v3816_v2 = vsel %vm258_vm3, %v4663_v44, 0.0 }
0x101c   :  { %3814 = vadd.xlane.f32.xlu0 %v3813_v18  ;;  %3817 = vadd.xlane.f32.xlu1 %v3816_v2 }
0x1020   :  { %1113 = vadd.xlane.f32.xlu0 %v1112_v3  ;;  %1116 = vadd.xlane.f32.xlu1 %v1115_v45 }
0x1024   :  { %1119 = vadd.xlane.f32.xlu0 %v1118_v0  ;;  %1122 = vadd.xlane.f32.xlu1 %v1121_v57 }
0x103a   :  { %3719 = vrot.lane.b32.xlu0 %v6265_v17, %s4992_s25  ;;  %v3985_v17 = vld [vmem:[%s6466_s19 + $0x8] sm:$0xff] }
0x103b   :  { %v3993_v50 = vpack.c.bf16 %v3985_v17, %v3984_v62 }
0x103d   :  { %4600 = vmatpush3.bf16.msra.mxu1 %v3993_v50 }
0x103e   :  { %4601 = vmatprep.subr.bf16.mxu1 %v4980_v12 }
0x1041   :  { %4602 = vmatpush3.bf16.msra.mxu1 %v3994_v27 }
0x1042   :  { %4603 = vmatprep.subr.bf16.mxu1 %v4980_v12 }
0x104e   :  { %v3831_v43 = vpop.xlane.xlu0 %3830 }
0x104f   :  { %v3836_v46 = vrot.slane %v3831_v43, %v6194_v24  ;;  %v3840_v61 = vrot.slane %v3831_v43, %v3839_v35 }
0x1051   :  { %v3843_v13 = vsub.f32 %v6269_v53, %v3836_v46  ;;  %v3844_v52 = vsub.f32 %v6267_v15, %v3836_v46  ;;  %v3845_v55 = vsub.f32 %v6271_v26, %v3840_v61  ;;  %v3846_v49 = vsub.f32 %v6276_v42, %v3840_v61 }
0x1053   :  { %v3847_v51 = vmul.f32 1.442695, %v3843_v13  ;;  %v3849_v33 = vmul.f32 1.442695, %v3844_v52  ;;  %v3851_v25 = vmul.f32 1.442695, %v3845_v55 }
0x1054   :  { %v3853_v14 = vmul.f32 1.442695, %v3846_v49 }
0x1055   :  { %4874 = vpow2.f32 %v3847_v51 }
0x1056   :  { %4876 = vpow2.f32 %v3849_v33 }
0x1057   :  { %4878 = vpow2.f32 %v3851_v25 }
0x1058   :  { %4880 = vpow2.f32 %v3853_v14 }
0x105f   :  { %v4875_v24 = vpop.eup %4874 }
0x1060   :  { %v4877_v38 = vpop.eup %4876 }
0x1061   :  { %v4879_v32 = vpop.eup %4878 }
0x1062   :  { %v4881_v34 = vpop.eup %4880 }
0x10a5   :  { %v3812_v21 = vpop.xlane.xlu0 %3811  ;;  %v3809_v16 = vpop.xlane.xlu1 %3808 }
0x10a6   :  { %vm3820_vm4 = vcmp.lt.f32.partialorder %v3812_v21, 11.0  ;;  %vm3819_vm6 = vcmp.lt.f32.partialorder %v3809_v16, 11.0 }
0x10a7   :  { %v3856_v53 = vsel %vm3820_vm4, %v4877_v38, 0.0  ;;  %v3855_v15 = vsel %vm3819_vm6, %v4875_v24, 0.0 }
0x10a8   :  { %v3895_v58 = vmul.f32 %v6294_v60, %v3856_v53  ;;  %v3859_v26 = vadd.f32 %v3856_v53, %v3855_v15  ;;  %v3894_v6 = vmul.f32 %v6297_v37, %v3855_v15 }
0x10a9   :  { %v3815_v42 = vpop.xlane.xlu0 %3814  ;;  %v3818_v28 = vpop.xlane.xlu1 %3817 }
0x10aa   :  { %v3899_v1 = vsel %vm258_vm3, %v3895_v58, 0.0  ;;  %v3860_v29 = vrot.slane %v3859_v26, 4  ;;  %v3898_v41 = vsel %vm258_vm3, %v3894_v6, 0.0  ;;  %vm3821_vm11 = vcmp.lt.f32.partialorder %v3815_v42, 11.0 }
0x10ab   :  { %v3900_v30 = vadd.f32 %v3899_v1, %v3898_v41  ;;  %v3857_v59 = vsel %vm3821_vm11, %v4879_v32, 0.0  ;;  %vm3822_vm12 = vcmp.lt.f32.partialorder %v3818_v28, 11.0 }
0x10ac   :  { %v3861_v9 = vadd.f32 %v3860_v29, %v3859_v26  ;;  %v3896_v39 = vmul.f32 %v6304_v20, %v3857_v59  ;;  %v3858_v60 = vsel %vm3822_vm12, %v4881_v34, 0.0 }
0x10ad   :  { %v3901_v54 = vrot.slane %v3900_v30, 4  ;;  %v3866_v31 = vadd.f32 %v3858_v60, %v3857_v59  ;;  %v3897_v37 = vmul.f32 %v6307_v47, %v3858_v60  ;;  %v1114_v44 = vpop.xlane.xlu0 %1113  ;;  %v1117_v19 = vpop.xlane.xlu1 %1116  ;;  %v3990_v60 = vld [vmem:[%s6466_s19 + $0x30] sm:$0xff] }
0x10ae   :  { %v3862_v11 = vrot.slane %v3861_v9, 2  ;;  %v3907_v10 = vsel %vm258_vm3, %v3896_v39, 0.0  ;;  %v1124_v22 = vadd.f32 %v1117_v19, %v1114_v44  ;;  %v3989_v39 = vld [vmem:[%s6466_s19 + $0x28] sm:$0xff]  ;;  %v4265_v44 = vld [vmem:[%s6465_s18] ss:$0 sm:$0xff] }
0x10af   :  { %v3902_v8 = vadd.f32 %v3901_v54, %v3900_v30  ;;  %v3867_v18 = vrot.slane %v3866_v31, 4  ;;  %v3908_v2 = vsel %vm258_vm3, %v3897_v37, 0.0 }
0x10b0   :  { %v3863_v7 = vadd.f32 %v3862_v11, %v3861_v9  ;;  %v3909_v56 = vadd.f32 %v3908_v2, %v3907_v10  ;;  %v1125_v3 = vrot.slane %v1124_v22, 4  ;;  %v3988_v9 = vld [vmem:[%s6466_s19 + $0x20] sm:$0xff] }
0x10b1   :  { %v3868_v45 = vadd.f32 %v3867_v18, %v3866_v31  ;;  %v1120_v20 = vpop.xlane.xlu0 %1119  ;;  %v1123_v5 = vpop.xlane.xlu1 %1122  ;;  %v3903_v4 = vrot.slane %v3902_v8, 2  ;;  %v3995_v54 = vpack.c.bf16 %v3989_v39, %v3988_v9  ;;  %v3991_v31 = vld [vmem:[%s6466_s19 + $0x38] sm:$0xff] }
0x10b2   :  { %v3864_v23 = vrot.slane %v3863_v7, 1  ;;  %v3910_v0 = vrot.slane %v3909_v56, 4  ;;  %v1126_v57 = vadd.f32 %v1125_v3, %v1124_v22  ;;  %v1131_v47 = vadd.f32 %v1123_v5, %v1120_v20  ;;  %v4051_v3 = vld [vmem:[%s6468_s21 + $0x8] sm:$0xff]  ;;  %v4053_v5 = vld [vmem:[%s6468_s21 + $0x18] sm:$0xff] }
0x10b3   :  { %v3869_v63 = vrot.slane %v3868_v45, 2  ;;  %v3904_v35 = vadd.f32 %v3903_v4, %v3902_v8  ;;  %4604 = vmatpush3.bf16.msra.mxu1 %v3995_v54  ;;  %v3996_v37 = vpack.c.bf16 %v3991_v31, %v3990_v60 }
0x10b4   :  { %v3865_v48 = vadd.f32 %v3864_v23, %v3863_v7  ;;  %v3911_v62 = vadd.f32 %v3910_v0, %v3909_v56  ;;  %v1127_v17 = vrot.slane %v1126_v57, 2  ;;  %v1132_v36 = vrot.slane %v1131_v47, 4  ;;  %4605 = vmatprep.subr.bf16.mxu1 %v4980_v12  ;;  %v4050_v56 = vld [vmem:[%s6468_s21] sm:$0xff] }
0x10b5   :  { %v3870_v50 = vadd.f32 %v3869_v63, %v3868_v45  ;;  %v3720_v40 = vpop.permute.xlu0 %3719  ;;  %v3905_v33 = vrot.slane %v3904_v35, 1  ;;  %v4052_v45 = vld [vmem:[%s6468_s21 + $0x10] sm:$0xff]  ;;  %v4055_v20 = vpack.c.bf16 %v4051_v3, %v4050_v56  ;;  %v4267_v0 = vld [vmem:[%s6467_s20] ss:$0 sm:$0xff]  ;;  %s4993_s21 = smov [#allocation5]  }
0x10b6   :  { %4882 = vrcp.f32 %v3865_v48  ;;  %v1128_v27 = vadd.f32 %v1127_v17, %v1126_v57  ;;  %v1133_v43 = vadd.f32 %v1132_v36, %v1131_v47  ;;  %3723 = vst.msk [vmem:[#allocation5] sm:$0x3] %vm3722_vm13, %v3720_v40  ;;  %v3912_v13 = vrot.slane %v3911_v62, 2  ;;  %s4125_s2 = sshll.u32 %s4993_s21, 4  ;;  %s4126_s2 = int_to_ptr.vmem [resolvable:$true] %s4125_s2 }
0x10b7   :  { %v3871_v46 = vrot.slane %v3870_v50, 1  ;;  %v3906_v16 = vadd.f32 %v3905_v33, %v3904_v35  ;;  %4606 = vmatpush3.bf16.msra.mxu1 %v3996_v37  ;;  %v4056_v23 = vpack.c.bf16 %v4053_v5, %v4052_v45  ;;  %s4886_s12 = scalar_lea.vmem %s4126_s2, 32  ;;  %p4891_p1 = scmp.lt.s32.totalorder %s4126_s2, %s4126_s2 }
0x10b8   :  { %v1129_v61 = vrot.slane %v1128_v27, 1  ;;  %v1134_v52 = vrot.slane %v1133_v43, 2  ;;  %v3913_v49 = vadd.f32 %v3912_v13, %v3911_v62  ;;  %p4887_p0 = scmp.ne.s32.totalorder %s4126_s2, %s4886_s12  ;;  %p4892_p2 = scmp.lt.s32.totalorder %s4886_s12, %s4886_s12 }
0x10b9   :  { %v3872_v51 = vadd.f32 %v3871_v46, %v3870_v50 }
0x10ba   :  { %v1135_v55 = vadd.f32 %v1134_v52, %v1133_v43  ;;  %v1130_v25 = vadd.f32 %v1129_v61, %v1128_v27  ;;  %v3914_v38 = vrot.slane %v3913_v49, 1  ;;  %p4893_p3 = por %p4892_p2, %p4891_p1 }
0x10bb   :  { %4884 = vrcp.f32 %v3872_v51 }
0x10bc   :  { %v1136_v14 = vrot.slane %v1135_v55, 1  ;;  %v1139_v53 = vmul.f32 0.003921569, %v1130_v25  ;;  %v3915_v6 = vadd.f32 %v3914_v38, %v3913_v49  ;;  %p4894_p4 = pnand %p4893_p3, %p4887_p0 }
0x10be   :  { %v1137_v24 = vadd.f32 %v1136_v14, %v1135_v55 }
0x10c0   :  { %v4883_v21 = vpop.eup %4882  ;;  %v1140_v15 = vmul.f32 0.003921569, %v1137_v24 }
0x10c1   :  { %v3917_v58 = vmul.f32 %v4883_v21, %v3906_v16 }
0x10c2   :  { %v1141_v26 = vadd.f32 %v1140_v15, %v1139_v53 }
0x10c3   :  { %v3922_v32 = vpack.c.bf16 %v3917_v58, %v3917_v58 }
0x10c4   :  { %v1143_v42 = vmul.f32 0.5, %v1141_v26 }
0x10c5   :  { %v4885_v28 = vpop.eup %4884  ;;  %v3934_v41 = vunpack.c.l.b16 %v3922_v32 }
0x10c6   :  { %v3919_v1 = vmul.f32 %v4885_v28, %v3915_v6  ;;  %1145 = vst.msk [vmem:[#allocation8] sm:$0x1] %vm1144_vm14, %v1143_v42 }
0x10c8   :  { %v3923_v29 = vpack.c.bf16 %v3919_v1, %v3919_v1 }
0x10ca   :  { %v3935_v34 = vunpack.c.l.b16 %v3923_v29 }
0x10cc   :  { %v3936_v30 = vsel %vm6517_vm15, %v3935_v34, %v3934_v41 }
0x10cd   :  { %v3937_v59 = vpack.c.b16 %v3936_v30, %v3936_v30 }
0x10cf   :  { %4596 = vmatmul.mubr.msk.bf16.vlgmr.msra.gmra.mrb[68].mxu0 %vm258_vm3, %v3937_v59 }
0x10d0   :  { %4615 = vmatprep.mubr.msk.bf16.mxu0 %vm6518_vm5, %v4980_v12  ;;  %4612 = vmatpush3.bf16.msra.mxu0 %v4055_v20 }
0x10d1   :  { %4613 = vmatprep.subr.bf16.mxu0 %v4980_v12 }
0x10d4   :  { %4614 = vmatpush3.bf16.msra.mxu0 %v4056_v23 }
0x11a2   :  { %v3975_v19 = vpop.f32.mrb[68].mxu0 }
0x11a3   :  { %v3976_v11 = vadd.f32 %v4265_v44, %v3975_v19  ;;  %v4597_v10 = vpop.f32.mrb[69].mxu0 }
0x11a4   :  { %v3978_v22 = vpop.f32.mrb[70].mxu0 }
0x11a5   :  { %vm3981_vm3 = vcmp.ge.f32.partialorder %v3976_v11, 0.0  ;;  %v3982_v8 = vmul.f32 0.2, %v3976_v11  ;;  %v4598_v18 = vpop.f32.mrb[71].mxu0 }
0x11a7   :  { %v3983_v2 = vsel %vm3981_vm3, %v3976_v11, %v3982_v8 }
0x11a8   :  { %v3992_v7 = vpack.c.bf16 %v3983_v2, %v3983_v2 }
0x11aa   :  { %4608 = vmatmul.mubr.msk.bf16.vlgmr.msra.gmra.mrb[60].mxu1 %vm6519_vm2, %v3992_v7 }
0x127d   :  { %v4041_v57 = vpop.f32.mrb[60].mxu1 }
0x127e   :  { %v4042_v47 = vadd.f32 %v4267_v0, %v4041_v57  ;;  %v4609_v4 = vpop.f32.mrb[61].mxu1 }
0x127f   :  { %v4044_v63 = vpop.f32.mrb[62].mxu1 }
0x1280   :  { %vm4047_vm7 = vcmp.ge.f32.partialorder %v4042_v47, 0.0  ;;  %v4048_v48 = vmul.f32 0.2, %v4042_v47  ;;  %v4610_v62 = vpop.f32.mrb[63].mxu1 }
0x1282   :  { %v4049_v17 = vsel %vm4047_vm7, %v4042_v47, %v4048_v48 }
0x1283   :  { %v4054_v36 = vpack.c.bf16 %v4049_v17, %v4049_v17 }
0x1285   :  { %4616 = vmatmul.mubr.msk.bf16.vlgmr.msra.gmra.mrb[72].mxu0 %vm6520_vm10, %v4054_v36 }
0x1286   :  { %4897 = shalt.err (!%p4894_p4)
}
0x1287   :  { %s4898_s15 = scalar_lea.hbm %s6471_s24, 32 }
0x1288   :  { %p4899_p5 = scmp.ne.s32.totalorder %s6471_s24, %s4898_s15  ;;  %p4902_p6 = scmp.lt.u32.totalorder %s4898_s15, %s6471_s24 }
0x128a   :  { %p4904_p7 = pnand %p4902_p6, %p4899_p5 }
0x128c   :  { %4907 = shalt.err (!%p4904_p7)
}
0x128d   :  { %4128 = dma.vmem_to_hbm [thread:$0]  %s4126_s2, 32, %s6471_s24, [#allocation6]  }
0x128e   :  { %s4994_s10 = smov [#allocation7]  }
0x128f   :  { %s4136_s3 = sshll.u32 %s4994_s10, 4  ;;  %s4137_s3 = int_to_ptr.vmem [resolvable:$true] %s4136_s3 }
0x1290   :  { %s4908_s7 = scalar_lea.vmem %s4137_s3, 512  ;;  %p4913_p9 = scmp.lt.s32.totalorder %s4137_s3, %s4137_s3 }
0x1291   :  { %p4909_p8 = scmp.ne.s32.totalorder %s4137_s3, %s4908_s7  ;;  %p4914_p10 = scmp.lt.s32.totalorder %s4908_s7, %s4908_s7 }
0x1293   :  { %p4915_p11 = por %p4914_p10, %p4913_p9 }
0x1295   :  { %p4916_p12 = pnand %p4915_p11, %p4909_p8 }
0x1297   :  { %4919 = shalt.err (!%p4916_p12)
}
0x1298   :  { %s4920_s0 = scalar_lea.hbm %s6473_s26, 512 }
0x1299   :  { %p4921_p13 = scmp.ne.s32.totalorder %s6473_s26, %s4920_s0  ;;  %p4924_p0 = scmp.lt.u32.totalorder %s4920_s0, %s6473_s26 }
0x129b   :  { %p4926_p1 = pnand %p4924_p0, %p4921_p13 }
0x129d   :  { %4929 = shalt.err (!%p4926_p1)
}
0x129e   :  { %s4995_s29 = smov 128   ;;  %s4996_s6 = smov 8  }
0x129f   :  { %4142 = dma.vmem_to_hbm [thread:$0]  %s4137_s3, 512, %s6473_s26, [#allocation6], %s4995_s29, %s4995_s29, %s4996_s6  }
0x12a0   :  { %s4997_s11 = smov [#allocation8]  }
0x12a1   :  { %s4149_s21 = sshll.u32 %s4997_s11, 4  ;;  %s4150_s21 = int_to_ptr.vmem [resolvable:$true] %s4149_s21 }
0x12a2   :  { %s4930_s2 = scalar_lea.vmem %s4150_s21, 16  ;;  %s4934_s12 = scalar_lea.vmem %s4150_s21, 32 }
0x12a3   :  { %p4931_p2 = scmp.ne.s32.totalorder %s4150_s21, %s4930_s2  ;;  %p4935_p3 = scmp.lt.s32.totalorder %s4150_s21, %s4150_s21 }
0x12a4   :  { %p4936_p4 = scmp.lt.s32.totalorder %s4934_s12, %s4930_s2 }
0x12a6   :  { %p4937_p5 = por %p4936_p4, %p4935_p3 }
0x12a8   :  { %p4938_p6 = pnand %p4937_p5, %p4931_p2 }
0x12aa   :  { %4941 = shalt.err (!%p4938_p6)
}
0x12ab   :  { %s4942_s15 = scalar_lea.hbm %s6474_s27, 16 }
0x12ac   :  { %p4943_p7 = scmp.ne.s32.totalorder %s6474_s27, %s4942_s15  ;;  %p4946_p8 = scmp.lt.u32.totalorder %s4942_s15, %s6474_s27 }
0x12ae   :  { %p4948_p9 = pnand %p4946_p8, %p4943_p7 }
0x12b0   :  { %4951 = shalt.err (!%p4948_p9)
}
0x12b1   :  { %4152 = dma.vmem_to_hbm [thread:$0]  %s4150_s21, 16, %s6474_s27, [#allocation9]   ;;  %v4269_v12 = vld [vmem:[%s6469_s22] ss:$0 sm:$0xff]  ;;  %vm4107_vm8 = vcmask 9216  }
0x12b2   :  { %s4998_s3 = smov [#allocation3]  }
0x12b3   :  { %s4115_s7 = sshll.u32 %s4998_s3, 4  ;;  %s4116_s7 = int_to_ptr.vmem [resolvable:$true] %s4115_s7 }
0x12b4   :  { %s4952_s25 = scalar_lea.vmem %s4116_s7, 32  ;;  %p4957_p11 = scmp.lt.s32.totalorder %s4116_s7, %s4116_s7 }
0x12b5   :  { %p4953_p10 = scmp.ne.s32.totalorder %s4116_s7, %s4952_s25  ;;  %p4958_p12 = scmp.lt.s32.totalorder %s4952_s25, %s4952_s25 }
0x12b7   :  { %p4959_p13 = por %p4958_p12, %p4957_p11 }
0x12b9   :  { %p4960_p0 = pnand %p4959_p13, %p4953_p10 }
0x1358   :  { %v4101_v50 = vpop.f32.mrb[72].mxu0 }
0x1359   :  { %v4102_v40 = vadd.f32 %v4269_v12, %v4101_v50  ;;  %v4617_v27 = vpop.f32.mrb[73].mxu0 }
0x135a   :  { %v4104_v43 = vpop.f32.mrb[74].mxu0 }
0x135b   :  { %v4618_v46 = vpop.f32.mrb[75].mxu0  ;;  %4108 = vst.msk [vmem:[#allocation3] sm:$0x3] %vm4107_vm8, %v4102_v40 }
0x135c   :  { %4963 = shalt.err (!%p4960_p0)
}
0x135d   :  { %s4964_s22 = scalar_lea.hbm %s6470_s23, 32 }
0x135e   :  { %p4965_p1 = scmp.ne.s32.totalorder %s6470_s23, %s4964_s22  ;;  %p4968_p2 = scmp.lt.u32.totalorder %s4964_s22, %s6470_s23 }
0x1360   :  { %p4970_p3 = pnand %p4968_p2, %p4965_p1 }
0x1362   :  { %4973 = shalt.err (!%p4970_p3)
}
0x1363   :  { %4118 = dma.vmem_to_hbm [thread:$0]  %s4116_s7, 32, %s6470_s23, [#allocation4]  }
0x1364   :  { %4974 = dma.done.wait [#allocation4], 32  }
0x1365   :  { %4975 = vsyncadd [#allocation4], 4294967264 }
0x1366   :  { %4976 = dma.done.wait [#allocation6], 544  }
0x1367   :  { %4977 = vsyncadd [#allocation6], 4294966752 }
0x1368   :  { %4978 = dma.done.wait [#allocation9], 16  }
0x1369   :  { %4979 = vsyncadd [#allocation9], 4294967280 }
0x136a   :  { %4167 = vsyncpa [#allocation4], 1 }
0x136b   :  { %4168 = vsyncpa [#allocation6], 1 }
0x136c   :  { %4169 = vsyncpa [#allocation9], 1 }

</bundles_post_ra>
